<compile_context>
chip_gen: v7x
topology: tpu7x:2x2x1
jax: 0.10.0
libtpu: 0.0.40
codegen_flags: <defaults>
</compile_context>

<pallas_src>
import math

import jax
import jax.numpy as jnp
from jax import lax
from jax.experimental import pallas as pl
from jax.experimental.pallas import tpu as pltpu


def _gelu_tanh(x):
    # TODO(synk): torch F.gelu defaults to exact erf; the tanh approximation
    # (~1e-3 max abs deviation) is used because erf lowering is not guaranteed
    # in Mosaic.  The pure-JAX reference below uses exact erf.
    c = math.sqrt(2.0 / math.pi)
    return 0.5 * x * (1.0 + jnp.tanh(c * (x + 0.044715 * x * x * x)))


def _ffn_kernel(xm_ref, xu_ref, xd_ref,
                w_in1_ref, b_in1_ref, w_dw1_ref, b_dw1_ref,
                w_in2_ref, b_in2_ref, w_dw2_ref, b_dw2_ref,
                w_out_ref, b_out_ref, o_ref):
    t = pl.program_id(1)
    nt = pl.num_programs(1)
    _, dim, thw = xm_ref.shape            # (1, dim, TH*W)
    _, _, _, W = xu_ref.shape             # (1, dim, 8, W)
    TH = thw // W
    hidden = w_in1_ref.shape[1]
    f32 = jnp.float32

    # Halo rows outside the image must behave as zero padding for the dwconv.
    up_valid = (t > 0).astype(f32)
    dn_valid = (t < nt - 1).astype(f32)

    # bf16 MXU operands, f32 accumulation.
    xm = xm_ref[0].astype(jnp.bfloat16)            # (dim, TH*W) channels-major
    xu = xu_ref[0][:, 7, :].astype(jnp.bfloat16)   # (dim, W) image row t*TH - 1
    xd = xd_ref[0][:, 0, :].astype(jnp.bfloat16)   # (dim, W) image row (t+1)*TH

    cdims = (((0,), (0,)), ((), ()))               # contract over `dim` of both operands

    def project_in(w_ref, b_ref):
        w = w_ref[...]                             # (dim, hidden) bf16
        b = b_ref[...]                             # (1, hidden)   f32
        hm = lax.dot_general(xm, w, cdims, preferred_element_type=f32) + b   # (TH*W, hidden)
        hu = (lax.dot_general(xu, w, cdims, preferred_element_type=f32) + b) * up_valid
        hd = (lax.dot_general(xd, w, cdims, preferred_element_type=f32) + b) * dn_valid
        # (TH+2, W, hidden): leading-dim reshapes/concat keep the lane dim intact.
        return jnp.concatenate([hu.reshape(1, W, hidden),
                                hm.reshape(TH, W, hidden),
                                hd.reshape(1, W, hidden)], axis=0)

    def dwconv3x3(h_ext, w_dw_ref, b_dw_ref):
        # 3x3 depthwise conv, stride 1, zero padding 1, on (TH+2, W, C) f32.
        w_dw = w_dw_ref[...]                       # (9, C), rows ordered ky*3 + kx
        zcol = jnp.zeros((TH + 2, 1, hidden), f32)
        # Two W-shifted copies with the zero edge column built in; taps along H
        # are free leading-dim slices.
        h_l = jnp.concatenate([zcol, h_ext[:, :W - 1, :]], axis=1)   # value at col x-1
        h_r = jnp.concatenate([h_ext[:, 1:, :], zcol], axis=1)       # value at col x+1
        acc = None
        for ky in range(3):
            term = (h_l[ky:ky + TH] * w_dw[3 * ky + 0].reshape(1, 1, hidden)
                    + h_ext[ky:ky + TH] * w_dw[3 * ky + 1].reshape(1, 1, hidden)
                    + h_r[ky:ky + TH] * w_dw[3 * ky + 2].reshape(1, 1, hidden))
            acc = term if acc is None else acc + term
        return acc + b_dw_ref[...].reshape(1, 1, hidden)

    # The two gate halves are computed independently -> no lane slicing at the chunk().
    d1 = dwconv3x3(project_in(w_in1_ref, b_in1_ref), w_dw1_ref, b_dw1_ref)
    d2 = dwconv3x3(project_in(w_in2_ref, b_in2_ref), w_dw2_ref, b_dw2_ref)
    g = (_gelu_tanh(d1) * d2).reshape(TH * W, hidden).astype(jnp.bfloat16)

    # project_out: (dim, hidden) x (TH*W, hidden)^T -> (dim, TH*W): output is
    # lane-dense (TH*W multiple of 128) and already in flattened-NCHW order.
    y = lax.dot_general(w_out_ref[...], g, (((1,), (1,)), ((), ())),
                        preferred_element_type=f32)
    y = y + b_out_ref[...]                         # (dim, 1) broadcast over lanes
    o_ref[0] = y.astype(o_ref.dtype)


def _vmem_capacity_bytes():
    try:
        return int(pltpu.get_tpu_info().vmem_capacity_bytes)
    except Exception:
        return 64 * 1024 * 1024                    # conservative (v7x per-TC)


def _pick_tile_h(H, W, dim, hidden, act_itemsize, vmem_cap):
    budget = int(0.4 * vmem_cap)

    def est(th):
        io = 2 * 2 * (th * W * dim + 2 * 8 * W * dim) * act_itemsize  # dbl-buffered in/out blocks
        interm = 10 * (th + 2) * W * hidden * 4                       # f32 intermediates (rough)
        return io + interm

    candidates = [th for th in range(8, H + 1, 8)
                  if H % th == 0 and ((th * W) % 128 == 0 or th == H)]
    fitting = [th for th in candidates if est(th) <= budget]
    return max(fitting) if fitting else min(candidates)


def feed_forward_pallas(x, params, *, tile_h=None):
    """x: (B, dim, H, W) NCHW, matching the PyTorch module. Returns (B, dim, H, W)."""
    B, dim, H, W = x.shape
    w_in, b_in = params["project_in"]        # (2h, dim, 1, 1), (2h,)
    w_dw, b_dw = params["dwconv"]            # (2h, 1, 3, 3),   (2h,)
    w_out, b_out = params["project_out"]     # (dim, h, 1, 1),  (dim,)
    c2 = w_in.shape[0]
    hidden = c2 // 2

    if H % 8 != 0:
        raise ValueError("H must be a multiple of 8")  # TODO(synk): pad H for arbitrary sizes.
    act_itemsize = x.dtype.itemsize
    vmem_cap = _vmem_capacity_bytes()
    TH = _pick_tile_h(H, W, dim, hidden, act_itemsize, vmem_cap) if tile_h is None else tile_h
    assert H % TH == 0 and TH % 8 == 0, "tile_h must divide H and be a multiple of 8"
    assert (TH * W) % 128 == 0 or TH == H, "tile_h * W must be a multiple of 128"
    T = H // TH

    # ---- weights in kernel-friendly layouts (split into the two gate halves) ----
    bf16, f32 = jnp.bfloat16, jnp.float32
    w_in_m = w_in.reshape(c2, dim)
    w_in1 = jnp.transpose(w_in_m[:hidden]).astype(bf16)      # (dim, hidden)
    w_in2 = jnp.transpose(w_in_m[hidden:]).astype(bf16)
    b_in1 = b_in[:hidden].reshape(1, hidden).astype(f32)
    b_in2 = b_in[hidden:].reshape(1, hidden).astype(f32)
    w_dw_m = w_dw.reshape(c2, 9)
    w_dw1 = jnp.transpose(w_dw_m[:hidden]).astype(f32)       # (9, hidden), rows = ky*3+kx
    w_dw2 = jnp.transpose(w_dw_m[hidden:]).astype(f32)
    b_dw1 = b_dw[:hidden].reshape(1, hidden).astype(f32)
    b_dw2 = b_dw[hidden:].reshape(1, hidden).astype(f32)
    w_out_k = w_out.reshape(dim, hidden).astype(bf16)        # (dim, hidden)
    b_out_k = b_out.reshape(dim, 1).astype(f32)

    # NCHW stays NCHW: flattening (H, W) -> H*W is a free row-major reshape, so
    # the kernel reads/writes lane-dense (dim, TH*W) slabs with no transposes.
    x_flat = x.reshape(B, dim, H * W)

    nbytes = lambda a: a.size * a.dtype.itemsize
    w_arrays = (w_in1, w_in2, b_in1, b_in2, w_dw1, w_dw2, b_dw1, b_dw2, w_out_k, b_out_k)
    flops = B * H * W * (2 * dim * c2 + 18 * c2 + 10 * hidden + 2 * hidden * dim)
    bytes_accessed = (2 * nbytes(x)                                  # x in + y out
                      + B * T * 2 * dim * 8 * W * act_itemsize       # halo re-reads
                      + sum(nbytes(a) for a in w_arrays))

    halo_up = pl.BlockSpec(
        (1, dim, 8, W),
        lambda b, t: (b, 0, jnp.maximum(t * (TH // 8) - 1, 0), 0))
    halo_dn = pl.BlockSpec(
        (1, dim, 8, W),
        lambda b, t: (b, 0, jnp.minimum((t + 1) * (TH // 8), H // 8 - 1), 0))
    wspec = lambda shape: pl.BlockSpec(shape, lambda b, t: (0,) * len(shape))

    out_flat = pl.pallas_call(
        _ffn_kernel,
        out_shape=jax.ShapeDtypeStruct((B, dim, H * W), x.dtype),
        grid=(B, T),
        in_specs=[
            pl.BlockSpec((1, dim, TH * W), lambda b, t: (b, 0, t)),
            halo_up,
            halo_dn,
            wspec((dim, hidden)), wspec((1, hidden)), wspec((9, hidden)), wspec((1, hidden)),
            wspec((dim, hidden)), wspec((1, hidden)), wspec((9, hidden)), wspec((1, hidden)),
            wspec((dim, hidden)), wspec((dim, 1)),
        ],
        out_specs=pl.BlockSpec((1, dim, TH * W), lambda b, t: (b, 0, t)),
        compiler_params=pltpu.CompilerParams(
            dimension_semantics=("parallel", "parallel"),
            vmem_limit_bytes=int(min(0.9 * vmem_cap, 120 * 1024 * 1024))),
        cost_estimate=pl.CostEstimate(
            flops=int(flops),
            transcendentals=int(B * H * W * hidden),
            bytes_accessed=int(bytes_accessed)),
    )(x_flat, x, x, w_in1, b_in1, w_dw1, b_dw1, w_in2, b_in2, w_dw2, b_dw2,
      w_out_k, b_out_k)

    return out_flat.reshape(B, dim, H, W)


# ----------------------------- pure-JAX reference -----------------------------
def _conv2d_nchw(x, w, b, *, padding=0, groups=1):
    out = lax.conv_general_dilated(
        x, w, window_strides=(1, 1),
        padding=[(padding, padding), (padding, padding)],
        dimension_numbers=("NCHW", "OIHW", "NCHW"),
        feature_group_count=groups)
    return out + b[None, :, None, None]


def feed_forward_ref(x, params):
    w_in, b_in = params["project_in"]
    w_dw, b_dw = params["dwconv"]
    w_out, b_out = params["project_out"]
    c2 = w_in.shape[0]
    h = _conv2d_nchw(x, w_in, b_in)
    d = _conv2d_nchw(h, w_dw, b_dw, padding=1, groups=c2)
    x1, x2 = jnp.split(d, 2, axis=1)
    g = jax.nn.gelu(x1, approximate=False) * x2     # exact erf GELU, as in torch
    return _conv2d_nchw(g, w_out, b_out)


if __name__ == "__main__":
    # Small shapes consistent with the module: dim=4, ffn_expansion_factor=2.
    B, dim, H, W = 2, 4, 16, 16
    ffn_expansion_factor = 2
    hidden = int(dim * ffn_expansion_factor)   # 8
    c2 = 2 * hidden                            # 16

    key = jax.random.PRNGKey(0)
    ks = jax.random.split(key, 7)
    x = jax.random.normal(ks[0], (B, dim, H, W), dtype=jnp.float32)
    params = {
        "project_in": (0.5 * jax.random.normal(ks[1], (c2, dim, 1, 1), jnp.float32),
                       0.1 * jax.random.normal(ks[2], (c2,), jnp.float32)),
        "dwconv": (0.5 * jax.random.normal(ks[3], (c2, 1, 3, 3), jnp.float32),
                   0.1 * jax.random.normal(ks[4], (c2,), jnp.float32)),
        "project_out": (0.5 * jax.random.normal(ks[5], (dim, hidden, 1, 1), jnp.float32),
                        0.1 * jax.random.normal(ks[6], (dim,), jnp.float32)),
    }

    ref = feed_forward_ref(x, params)

    # Exercise both the multi-tile halo path (tile_h=8 -> 2 H-tiles) and the
    # auto-picked largest-tile path.  Tolerance 2e-2 accounts for bf16 MXU
    # operands and the tanh GELU approximation vs. the exact-erf reference.
    for th in (8, None):
        out = jax.block_until_ready(feed_forward_pallas(x, params, tile_h=th))
        assert out.shape == (B, dim, H, W)
        assert out.dtype == x.dtype
        rel_err = jnp.linalg.norm(out - ref) / (jnp.linalg.norm(ref) + 1e-12)
        assert rel_err < 2e-2, f"tile_h={th}: relative error too large: {rel_err}"

    print("KERNEL_OK")
</pallas_src>

<mosaic_0001>
module attributes {stable_mosaic.version = 11 : i64} {
  func.func @_ffn_kernel(%arg0: i32, %arg1: i32, %arg2: memref<1x4x128xf32, #tpu.memory_space<vmem>>, %arg3: memref<1x4x8x16xf32, #tpu.memory_space<vmem>>, %arg4: memref<1x4x8x16xf32, #tpu.memory_space<vmem>>, %arg5: memref<4x8xbf16, #tpu.memory_space<vmem>>, %arg6: memref<1x8xf32, #tpu.memory_space<vmem>>, %arg7: memref<9x8xf32, #tpu.memory_space<vmem>>, %arg8: memref<1x8xf32, #tpu.memory_space<vmem>>, %arg9: memref<4x8xbf16, #tpu.memory_space<vmem>>, %arg10: memref<1x8xf32, #tpu.memory_space<vmem>>, %arg11: memref<9x8xf32, #tpu.memory_space<vmem>>, %arg12: memref<1x8xf32, #tpu.memory_space<vmem>>, %arg13: memref<4x8xbf16, #tpu.memory_space<vmem>>, %arg14: memref<4x1xf32, #tpu.memory_space<vmem>>, %arg15: memref<1x4x128xf32, #tpu.memory_space<vmem>>) attributes {dimension_semantics = [#tpu.dimension_semantics<parallel>, #tpu.dimension_semantics<parallel>], iteration_bounds = array<i64: 2, 2>, scalar_prefetch = 0 : i64, scratch_operands = 0 : i64, tpu.core_type = #tpu.core_type<tc>, window_params = [{transform_indices = @transform_0, window_bounds = array<i64: 1, 4, 128>}, {transform_indices = @transform_1, window_bounds = array<i64: 1, 4, 8, 16>}, {transform_indices = @transform_2, window_bounds = array<i64: 1, 4, 8, 16>}, {pipeline_mode = #tpu.pipeline_mode<synchronous>, transform_indices = @transform_3, window_bounds = array<i64: 4, 8>}, {pipeline_mode = #tpu.pipeline_mode<synchronous>, transform_indices = @transform_4, window_bounds = array<i64: 1, 8>}, {pipeline_mode = #tpu.pipeline_mode<synchronous>, transform_indices = @transform_5, window_bounds = array<i64: 9, 8>}, {pipeline_mode = #tpu.pipeline_mode<synchronous>, transform_indices = @transform_6, window_bounds = array<i64: 1, 8>}, {pipeline_mode = #tpu.pipeline_mode<synchronous>, transform_indices = @transform_7, window_bounds = array<i64: 4, 8>}, {pipeline_mode = #tpu.pipeline_mode<synchronous>, transform_indices = @transform_8, window_bounds = array<i64: 1, 8>}, {pipeline_mode = #tpu.pipeline_mode<synchronous>, transform_indices = @transform_9, window_bounds = array<i64: 9, 8>}, {pipeline_mode = #tpu.pipeline_mode<synchronous>, transform_indices = @transform_10, window_bounds = array<i64: 1, 8>}, {pipeline_mode = #tpu.pipeline_mode<synchronous>, transform_indices = @transform_11, window_bounds = array<i64: 4, 8>}, {pipeline_mode = #tpu.pipeline_mode<synchronous>, transform_indices = @transform_12, window_bounds = array<i64: 4, 1>}, {transform_indices = @transform_13, window_bounds = array<i64: 1, 4, 128>}]} {
    %c0_i32 = arith.constant 0 : i32
    %0 = arith.cmpi sgt, %arg1, %c0_i32 : i32
    %1 = arith.extui %0 : i1 to i32
    %2 = arith.sitofp %1 : i32 to f32
    %c1_i32 = arith.constant 1 : i32
    %3 = arith.cmpi slt, %arg1, %c1_i32 : i32
    %4 = arith.extui %3 : i1 to i32
    %5 = arith.sitofp %4 : i32 to f32
    %c0 = arith.constant 0 : index
    %c0_0 = arith.constant 0 : index
    %c0_1 = arith.constant 0 : index
    %6 = vector.load %arg2[%c0, %c0_0, %c0_1] : memref<1x4x128xf32, #tpu.memory_space<vmem>>, vector<1x4x128xf32>
    %7 = vector.shape_cast %6 : vector<1x4x128xf32> to vector<4x128xf32>
    %8 = arith.truncf %7 : vector<4x128xf32> to vector<4x128xbf16>
    %c0_2 = arith.constant 0 : index
    %c0_3 = arith.constant 0 : index
    %c0_4 = arith.constant 0 : index
    %c0_5 = arith.constant 0 : index
    %9 = vector.load %arg3[%c0_2, %c0_3, %c0_4, %c0_5] : memref<1x4x8x16xf32, #tpu.memory_space<vmem>>, vector<1x4x8x16xf32>
    %10 = vector.shape_cast %9 : vector<1x4x8x16xf32> to vector<4x8x16xf32>
    %11 = vector.extract_strided_slice %10 {offsets = [0, 7, 0], sizes = [4, 1, 16], strides = [1, 1, 1]} : vector<4x8x16xf32> to vector<4x1x16xf32>
    %12 = vector.shape_cast %11 : vector<4x1x16xf32> to vector<4x16xf32>
    %13 = arith.truncf %12 : vector<4x16xf32> to vector<4x16xbf16>
    %c0_6 = arith.constant 0 : index
    %c0_7 = arith.constant 0 : index
    %c0_8 = arith.constant 0 : index
    %c0_9 = arith.constant 0 : index
    %14 = vector.load %arg4[%c0_6, %c0_7, %c0_8, %c0_9] : memref<1x4x8x16xf32, #tpu.memory_space<vmem>>, vector<1x4x8x16xf32>
    %15 = vector.shape_cast %14 : vector<1x4x8x16xf32> to vector<4x8x16xf32>
    %16 = vector.extract_strided_slice %15 {offsets = [0, 0, 0], sizes = [4, 1, 16], strides = [1, 1, 1]} : vector<4x8x16xf32> to vector<4x1x16xf32>
    %17 = vector.shape_cast %16 : vector<4x1x16xf32> to vector<4x16xf32>
    %18 = arith.truncf %17 : vector<4x16xf32> to vector<4x16xbf16>
    %c0_10 = arith.constant 0 : index
    %c0_11 = arith.constant 0 : index
    %19 = vector.load %arg5[%c0_10, %c0_11] : memref<4x8xbf16, #tpu.memory_space<vmem>>, vector<4x8xbf16>
    %c0_12 = arith.constant 0 : index
    %c0_13 = arith.constant 0 : index
    %20 = vector.load %arg6[%c0_12, %c0_13] : memref<1x8xf32, #tpu.memory_space<vmem>>, vector<1x8xf32>
    %cst = arith.constant dense<0.000000e+00> : vector<128x8xf32>
    %21 = tpu.matmul %8, %19, %cst {dimension_numbers = #tpu.dot_dimension_numbers<[0], [0], [1], [1], [0, 1, 1, 1], [], []>} : vector<4x128xbf16>, vector<4x8xbf16>, vector<128x8xf32> -> vector<128x8xf32>
    %22 = vector.broadcast %20 : vector<1x8xf32> to vector<128x8xf32>
    %23 = arith.addf %21, %22 : vector<128x8xf32>
    %cst_14 = arith.constant dense<0.000000e+00> : vector<16x8xf32>
    %24 = tpu.matmul %13, %19, %cst_14 {dimension_numbers = #tpu.dot_dimension_numbers<[0], [0], [1], [1], [0, 1, 1, 1], [], []>} : vector<4x16xbf16>, vector<4x8xbf16>, vector<16x8xf32> -> vector<16x8xf32>
    %25 = vector.broadcast %20 : vector<1x8xf32> to vector<16x8xf32>
    %26 = arith.addf %24, %25 : vector<16x8xf32>
    %27 = vector.broadcast %2 : f32 to vector<16x8xf32>
    %28 = arith.mulf %26, %27 : vector<16x8xf32>
    %cst_15 = arith.constant dense<0.000000e+00> : vector<16x8xf32>
    %29 = tpu.matmul %18, %19, %cst_15 {dimension_numbers = #tpu.dot_dimension_numbers<[0], [0], [1], [1], [0, 1, 1, 1], [], []>} : vector<4x16xbf16>, vector<4x8xbf16>, vector<16x8xf32> -> vector<16x8xf32>
    %30 = vector.broadcast %20 : vector<1x8xf32> to vector<16x8xf32>
    %31 = arith.addf %29, %30 : vector<16x8xf32>
    %32 = vector.broadcast %5 : f32 to vector<16x8xf32>
    %33 = arith.mulf %31, %32 : vector<16x8xf32>
    %34 = vector.shape_cast %28 : vector<16x8xf32> to vector<1x16x8xf32>
    %35 = vector.shape_cast %23 : vector<128x8xf32> to vector<8x16x8xf32>
    %36 = vector.shape_cast %33 : vector<16x8xf32> to vector<1x16x8xf32>
    %37 = tpu.concatenate %34, %35, %36 in 0 : vector<1x16x8xf32>, vector<8x16x8xf32>, vector<1x16x8xf32> -> vector<10x16x8xf32>
    %c0_16 = arith.constant 0 : index
    %c0_17 = arith.constant 0 : index
    %38 = vector.load %arg7[%c0_16, %c0_17] : memref<9x8xf32, #tpu.memory_space<vmem>>, vector<9x8xf32>
    %cst_18 = arith.constant 0.000000e+00 : f32
    %39 = vector.broadcast %cst_18 : f32 to vector<10x1x8xf32>
    %40 = vector.extract_strided_slice %37 {offsets = [0, 0, 0], sizes = [10, 15, 8], strides = [1, 1, 1]} : vector<10x16x8xf32> to vector<10x15x8xf32>
    %41 = tpu.concatenate %39, %40 in 1 : vector<10x1x8xf32>, vector<10x15x8xf32> -> vector<10x16x8xf32>
    %42 = vector.extract_strided_slice %37 {offsets = [0, 1, 0], sizes = [10, 15, 8], strides = [1, 1, 1]} : vector<10x16x8xf32> to vector<10x15x8xf32>
    %43 = tpu.concatenate %42, %39 in 1 : vector<10x15x8xf32>, vector<10x1x8xf32> -> vector<10x16x8xf32>
    %44 = vector.extract_strided_slice %41 {offsets = [0, 0, 0], sizes = [8, 16, 8], strides = [1, 1, 1]} : vector<10x16x8xf32> to vector<8x16x8xf32>
    %45 = vector.extract_strided_slice %38 {offsets = [0, 0], sizes = [1, 8], strides = [1, 1]} : vector<9x8xf32> to vector<1x8xf32>
    %46 = vector.shape_cast %45 : vector<1x8xf32> to vector<8xf32>
    %47 = vector.shape_cast %46 : vector<8xf32> to vector<1x1x8xf32>
    %48 = vector.broadcast %47 : vector<1x1x8xf32> to vector<8x16x8xf32>
    %49 = arith.mulf %44, %48 : vector<8x16x8xf32>
    %50 = vector.extract_strided_slice %37 {offsets = [0, 0, 0], sizes = [8, 16, 8], strides = [1, 1, 1]} : vector<10x16x8xf32> to vector<8x16x8xf32>
    %51 = vector.extract_strided_slice %38 {offsets = [1, 0], sizes = [1, 8], strides = [1, 1]} : vector<9x8xf32> to vector<1x8xf32>
    %52 = vector.shape_cast %51 : vector<1x8xf32> to vector<8xf32>
    %53 = vector.shape_cast %52 : vector<8xf32> to vector<1x1x8xf32>
    %54 = vector.broadcast %53 : vector<1x1x8xf32> to vector<8x16x8xf32>
    %55 = arith.mulf %50, %54 : vector<8x16x8xf32>
    %56 = arith.addf %49, %55 : vector<8x16x8xf32>
    %57 = vector.extract_strided_slice %43 {offsets = [0, 0, 0], sizes = [8, 16, 8], strides = [1, 1, 1]} : vector<10x16x8xf32> to vector<8x16x8xf32>
    %58 = vector.extract_strided_slice %38 {offsets = [2, 0], sizes = [1, 8], strides = [1, 1]} : vector<9x8xf32> to vector<1x8xf32>
    %59 = vector.shape_cast %58 : vector<1x8xf32> to vector<8xf32>
    %60 = vector.shape_cast %59 : vector<8xf32> to vector<1x1x8xf32>
    %61 = vector.broadcast %60 : vector<1x1x8xf32> to vector<8x16x8xf32>
    %62 = arith.mulf %57, %61 : vector<8x16x8xf32>
    %63 = arith.addf %56, %62 : vector<8x16x8xf32>
    %64 = vector.extract_strided_slice %41 {offsets = [1, 0, 0], sizes = [8, 16, 8], strides = [1, 1, 1]} : vector<10x16x8xf32> to vector<8x16x8xf32>
    %65 = vector.extract_strided_slice %38 {offsets = [3, 0], sizes = [1, 8], strides = [1, 1]} : vector<9x8xf32> to vector<1x8xf32>
    %66 = vector.shape_cast %65 : vector<1x8xf32> to vector<8xf32>
    %67 = vector.shape_cast %66 : vector<8xf32> to vector<1x1x8xf32>
    %68 = vector.broadcast %67 : vector<1x1x8xf32> to vector<8x16x8xf32>
    %69 = arith.mulf %64, %68 : vector<8x16x8xf32>
    %70 = vector.extract_strided_slice %37 {offsets = [1, 0, 0], sizes = [8, 16, 8], strides = [1, 1, 1]} : vector<10x16x8xf32> to vector<8x16x8xf32>
    %71 = vector.extract_strided_slice %38 {offsets = [4, 0], sizes = [1, 8], strides = [1, 1]} : vector<9x8xf32> to vector<1x8xf32>
    %72 = vector.shape_cast %71 : vector<1x8xf32> to vector<8xf32>
    %73 = vector.shape_cast %72 : vector<8xf32> to vector<1x1x8xf32>
    %74 = vector.broadcast %73 : vector<1x1x8xf32> to vector<8x16x8xf32>
    %75 = arith.mulf %70, %74 : vector<8x16x8xf32>
    %76 = arith.addf %69, %75 : vector<8x16x8xf32>
    %77 = vector.extract_strided_slice %43 {offsets = [1, 0, 0], sizes = [8, 16, 8], strides = [1, 1, 1]} : vector<10x16x8xf32> to vector<8x16x8xf32>
    %78 = vector.extract_strided_slice %38 {offsets = [5, 0], sizes = [1, 8], strides = [1, 1]} : vector<9x8xf32> to vector<1x8xf32>
    %79 = vector.shape_cast %78 : vector<1x8xf32> to vector<8xf32>
    %80 = vector.shape_cast %79 : vector<8xf32> to vector<1x1x8xf32>
    %81 = vector.broadcast %80 : vector<1x1x8xf32> to vector<8x16x8xf32>
    %82 = arith.mulf %77, %81 : vector<8x16x8xf32>
    %83 = arith.addf %76, %82 : vector<8x16x8xf32>
    %84 = arith.addf %63, %83 : vector<8x16x8xf32>
    %85 = vector.extract_strided_slice %41 {offsets = [2, 0, 0], sizes = [8, 16, 8], strides = [1, 1, 1]} : vector<10x16x8xf32> to vector<8x16x8xf32>
    %86 = vector.extract_strided_slice %38 {offsets = [6, 0], sizes = [1, 8], strides = [1, 1]} : vector<9x8xf32> to vector<1x8xf32>
    %87 = vector.shape_cast %86 : vector<1x8xf32> to vector<8xf32>
    %88 = vector.shape_cast %87 : vector<8xf32> to vector<1x1x8xf32>
    %89 = vector.broadcast %88 : vector<1x1x8xf32> to vector<8x16x8xf32>
    %90 = arith.mulf %85, %89 : vector<8x16x8xf32>
    %91 = vector.extract_strided_slice %37 {offsets = [2, 0, 0], sizes = [8, 16, 8], strides = [1, 1, 1]} : vector<10x16x8xf32> to vector<8x16x8xf32>
    %92 = vector.extract_strided_slice %38 {offsets = [7, 0], sizes = [1, 8], strides = [1, 1]} : vector<9x8xf32> to vector<1x8xf32>
    %93 = vector.shape_cast %92 : vector<1x8xf32> to vector<8xf32>
    %94 = vector.shape_cast %93 : vector<8xf32> to vector<1x1x8xf32>
    %95 = vector.broadcast %94 : vector<1x1x8xf32> to vector<8x16x8xf32>
    %96 = arith.mulf %91, %95 : vector<8x16x8xf32>
    %97 = arith.addf %90, %96 : vector<8x16x8xf32>
    %98 = vector.extract_strided_slice %43 {offsets = [2, 0, 0], sizes = [8, 16, 8], strides = [1, 1, 1]} : vector<10x16x8xf32> to vector<8x16x8xf32>
    %99 = vector.extract_strided_slice %38 {offsets = [8, 0], sizes = [1, 8], strides = [1, 1]} : vector<9x8xf32> to vector<1x8xf32>
    %100 = vector.shape_cast %99 : vector<1x8xf32> to vector<8xf32>
    %101 = vector.shape_cast %100 : vector<8xf32> to vector<1x1x8xf32>
    %102 = vector.broadcast %101 : vector<1x1x8xf32> to vector<8x16x8xf32>
    %103 = arith.mulf %98, %102 : vector<8x16x8xf32>
    %104 = arith.addf %97, %103 : vector<8x16x8xf32>
    %105 = arith.addf %84, %104 : vector<8x16x8xf32>
    %c0_19 = arith.constant 0 : index
    %c0_20 = arith.constant 0 : index
    %106 = vector.load %arg8[%c0_19, %c0_20] : memref<1x8xf32, #tpu.memory_space<vmem>>, vector<1x8xf32>
    %107 = vector.shape_cast %106 : vector<1x8xf32> to vector<1x1x8xf32>
    %108 = vector.broadcast %107 : vector<1x1x8xf32> to vector<8x16x8xf32>
    %109 = arith.addf %105, %108 : vector<8x16x8xf32>
    %c0_21 = arith.constant 0 : index
    %c0_22 = arith.constant 0 : index
    %110 = vector.load %arg9[%c0_21, %c0_22] : memref<4x8xbf16, #tpu.memory_space<vmem>>, vector<4x8xbf16>
    %c0_23 = arith.constant 0 : index
    %c0_24 = arith.constant 0 : index
    %111 = vector.load %arg10[%c0_23, %c0_24] : memref<1x8xf32, #tpu.memory_space<vmem>>, vector<1x8xf32>
    %cst_25 = arith.constant dense<0.000000e+00> : vector<128x8xf32>
    %112 = tpu.matmul %8, %110, %cst_25 {dimension_numbers = #tpu.dot_dimension_numbers<[0], [0], [1], [1], [0, 1, 1, 1], [], []>} : vector<4x128xbf16>, vector<4x8xbf16>, vector<128x8xf32> -> vector<128x8xf32>
    %113 = vector.broadcast %111 : vector<1x8xf32> to vector<128x8xf32>
    %114 = arith.addf %112, %113 : vector<128x8xf32>
    %cst_26 = arith.constant dense<0.000000e+00> : vector<16x8xf32>
    %115 = tpu.matmul %13, %110, %cst_26 {dimension_numbers = #tpu.dot_dimension_numbers<[0], [0], [1], [1], [0, 1, 1, 1], [], []>} : vector<4x16xbf16>, vector<4x8xbf16>, vector<16x8xf32> -> vector<16x8xf32>
    %116 = vector.broadcast %111 : vector<1x8xf32> to vector<16x8xf32>
    %117 = arith.addf %115, %116 : vector<16x8xf32>
    %118 = vector.broadcast %2 : f32 to vector<16x8xf32>
    %119 = arith.mulf %117, %118 : vector<16x8xf32>
    %cst_27 = arith.constant dense<0.000000e+00> : vector<16x8xf32>
    %120 = tpu.matmul %18, %110, %cst_27 {dimension_numbers = #tpu.dot_dimension_numbers<[0], [0], [1], [1], [0, 1, 1, 1], [], []>} : vector<4x16xbf16>, vector<4x8xbf16>, vector<16x8xf32> -> vector<16x8xf32>
    %121 = vector.broadcast %111 : vector<1x8xf32> to vector<16x8xf32>
    %122 = arith.addf %120, %121 : vector<16x8xf32>
    %123 = vector.broadcast %5 : f32 to vector<16x8xf32>
    %124 = arith.mulf %122, %123 : vector<16x8xf32>
    %125 = vector.shape_cast %119 : vector<16x8xf32> to vector<1x16x8xf32>
    %126 = vector.shape_cast %114 : vector<128x8xf32> to vector<8x16x8xf32>
    %127 = vector.shape_cast %124 : vector<16x8xf32> to vector<1x16x8xf32>
    %128 = tpu.concatenate %125, %126, %127 in 0 : vector<1x16x8xf32>, vector<8x16x8xf32>, vector<1x16x8xf32> -> vector<10x16x8xf32>
    %c0_28 = arith.constant 0 : index
    %c0_29 = arith.constant 0 : index
    %129 = vector.load %arg11[%c0_28, %c0_29] : memref<9x8xf32, #tpu.memory_space<vmem>>, vector<9x8xf32>
    %cst_30 = arith.constant 0.000000e+00 : f32
    %130 = vector.broadcast %cst_30 : f32 to vector<10x1x8xf32>
    %131 = vector.extract_strided_slice %128 {offsets = [0, 0, 0], sizes = [10, 15, 8], strides = [1, 1, 1]} : vector<10x16x8xf32> to vector<10x15x8xf32>
    %132 = tpu.concatenate %130, %131 in 1 : vector<10x1x8xf32>, vector<10x15x8xf32> -> vector<10x16x8xf32>
    %133 = vector.extract_strided_slice %128 {offsets = [0, 1, 0], sizes = [10, 15, 8], strides = [1, 1, 1]} : vector<10x16x8xf32> to vector<10x15x8xf32>
    %134 = tpu.concatenate %133, %130 in 1 : vector<10x15x8xf32>, vector<10x1x8xf32> -> vector<10x16x8xf32>
    %135 = vector.extract_strided_slice %132 {offsets = [0, 0, 0], sizes = [8, 16, 8], strides = [1, 1, 1]} : vector<10x16x8xf32> to vector<8x16x8xf32>
    %136 = vector.extract_strided_slice %129 {offsets = [0, 0], sizes = [1, 8], strides = [1, 1]} : vector<9x8xf32> to vector<1x8xf32>
    %137 = vector.shape_cast %136 : vector<1x8xf32> to vector<8xf32>
    %138 = vector.shape_cast %137 : vector<8xf32> to vector<1x1x8xf32>
    %139 = vector.broadcast %138 : vector<1x1x8xf32> to vector<8x16x8xf32>
    %140 = arith.mulf %135, %139 : vector<8x16x8xf32>
    %141 = vector.extract_strided_slice %128 {offsets = [0, 0, 0], sizes = [8, 16, 8], strides = [1, 1, 1]} : vector<10x16x8xf32> to vector<8x16x8xf32>
    %142 = vector.extract_strided_slice %129 {offsets = [1, 0], sizes = [1, 8], strides = [1, 1]} : vector<9x8xf32> to vector<1x8xf32>
    %143 = vector.shape_cast %142 : vector<1x8xf32> to vector<8xf32>
    %144 = vector.shape_cast %143 : vector<8xf32> to vector<1x1x8xf32>
    %145 = vector.broadcast %144 : vector<1x1x8xf32> to vector<8x16x8xf32>
    %146 = arith.mulf %141, %145 : vector<8x16x8xf32>
    %147 = arith.addf %140, %146 : vector<8x16x8xf32>
    %148 = vector.extract_strided_slice %134 {offsets = [0, 0, 0], sizes = [8, 16, 8], strides = [1, 1, 1]} : vector<10x16x8xf32> to vector<8x16x8xf32>
    %149 = vector.extract_strided_slice %129 {offsets = [2, 0], sizes = [1, 8], strides = [1, 1]} : vector<9x8xf32> to vector<1x8xf32>
    %150 = vector.shape_cast %149 : vector<1x8xf32> to vector<8xf32>
    %151 = vector.shape_cast %150 : vector<8xf32> to vector<1x1x8xf32>
    %152 = vector.broadcast %151 : vector<1x1x8xf32> to vector<8x16x8xf32>
    %153 = arith.mulf %148, %152 : vector<8x16x8xf32>
    %154 = arith.addf %147, %153 : vector<8x16x8xf32>
    %155 = vector.extract_strided_slice %132 {offsets = [1, 0, 0], sizes = [8, 16, 8], strides = [1, 1, 1]} : vector<10x16x8xf32> to vector<8x16x8xf32>
    %156 = vector.extract_strided_slice %129 {offsets = [3, 0], sizes = [1, 8], strides = [1, 1]} : vector<9x8xf32> to vector<1x8xf32>
    %157 = vector.shape_cast %156 : vector<1x8xf32> to vector<8xf32>
    %158 = vector.shape_cast %157 : vector<8xf32> to vector<1x1x8xf32>
    %159 = vector.broadcast %158 : vector<1x1x8xf32> to vector<8x16x8xf32>
    %160 = arith.mulf %155, %159 : vector<8x16x8xf32>
    %161 = vector.extract_strided_slice %128 {offsets = [1, 0, 0], sizes = [8, 16, 8], strides = [1, 1, 1]} : vector<10x16x8xf32> to vector<8x16x8xf32>
    %162 = vector.extract_strided_slice %129 {offsets = [4, 0], sizes = [1, 8], strides = [1, 1]} : vector<9x8xf32> to vector<1x8xf32>
    %163 = vector.shape_cast %162 : vector<1x8xf32> to vector<8xf32>
    %164 = vector.shape_cast %163 : vector<8xf32> to vector<1x1x8xf32>
    %165 = vector.broadcast %164 : vector<1x1x8xf32> to vector<8x16x8xf32>
    %166 = arith.mulf %161, %165 : vector<8x16x8xf32>
    %167 = arith.addf %160, %166 : vector<8x16x8xf32>
    %168 = vector.extract_strided_slice %134 {offsets = [1, 0, 0], sizes = [8, 16, 8], strides = [1, 1, 1]} : vector<10x16x8xf32> to vector<8x16x8xf32>
    %169 = vector.extract_strided_slice %129 {offsets = [5, 0], sizes = [1, 8], strides = [1, 1]} : vector<9x8xf32> to vector<1x8xf32>
    %170 = vector.shape_cast %169 : vector<1x8xf32> to vector<8xf32>
    %171 = vector.shape_cast %170 : vector<8xf32> to vector<1x1x8xf32>
    %172 = vector.broadcast %171 : vector<1x1x8xf32> to vector<8x16x8xf32>
    %173 = arith.mulf %168, %172 : vector<8x16x8xf32>
    %174 = arith.addf %167, %173 : vector<8x16x8xf32>
    %175 = arith.addf %154, %174 : vector<8x16x8xf32>
    %176 = vector.extract_strided_slice %132 {offsets = [2, 0, 0], sizes = [8, 16, 8], strides = [1, 1, 1]} : vector<10x16x8xf32> to vector<8x16x8xf32>
    %177 = vector.extract_strided_slice %129 {offsets = [6, 0], sizes = [1, 8], strides = [1, 1]} : vector<9x8xf32> to vector<1x8xf32>
    %178 = vector.shape_cast %177 : vector<1x8xf32> to vector<8xf32>
    %179 = vector.shape_cast %178 : vector<8xf32> to vector<1x1x8xf32>
    %180 = vector.broadcast %179 : vector<1x1x8xf32> to vector<8x16x8xf32>
    %181 = arith.mulf %176, %180 : vector<8x16x8xf32>
    %182 = vector.extract_strided_slice %128 {offsets = [2, 0, 0], sizes = [8, 16, 8], strides = [1, 1, 1]} : vector<10x16x8xf32> to vector<8x16x8xf32>
    %183 = vector.extract_strided_slice %129 {offsets = [7, 0], sizes = [1, 8], strides = [1, 1]} : vector<9x8xf32> to vector<1x8xf32>
    %184 = vector.shape_cast %183 : vector<1x8xf32> to vector<8xf32>
    %185 = vector.shape_cast %184 : vector<8xf32> to vector<1x1x8xf32>
    %186 = vector.broadcast %185 : vector<1x1x8xf32> to vector<8x16x8xf32>
    %187 = arith.mulf %182, %186 : vector<8x16x8xf32>
    %188 = arith.addf %181, %187 : vector<8x16x8xf32>
    %189 = vector.extract_strided_slice %134 {offsets = [2, 0, 0], sizes = [8, 16, 8], strides = [1, 1, 1]} : vector<10x16x8xf32> to vector<8x16x8xf32>
    %190 = vector.extract_strided_slice %129 {offsets = [8, 0], sizes = [1, 8], strides = [1, 1]} : vector<9x8xf32> to vector<1x8xf32>
    %191 = vector.shape_cast %190 : vector<1x8xf32> to vector<8xf32>
    %192 = vector.shape_cast %191 : vector<8xf32> to vector<1x1x8xf32>
    %193 = vector.broadcast %192 : vector<1x1x8xf32> to vector<8x16x8xf32>
    %194 = arith.mulf %189, %193 : vector<8x16x8xf32>
    %195 = arith.addf %188, %194 : vector<8x16x8xf32>
    %196 = arith.addf %175, %195 : vector<8x16x8xf32>
    %c0_31 = arith.constant 0 : index
    %c0_32 = arith.constant 0 : index
    %197 = vector.load %arg12[%c0_31, %c0_32] : memref<1x8xf32, #tpu.memory_space<vmem>>, vector<1x8xf32>
    %198 = vector.shape_cast %197 : vector<1x8xf32> to vector<1x1x8xf32>
    %199 = vector.broadcast %198 : vector<1x1x8xf32> to vector<8x16x8xf32>
    %200 = arith.addf %196, %199 : vector<8x16x8xf32>
    %cst_33 = arith.constant 5.000000e-01 : f32
    %201 = vector.broadcast %cst_33 : f32 to vector<8x16x8xf32>
    %202 = arith.mulf %201, %109 : vector<8x16x8xf32>
    %cst_34 = arith.constant 4.471500e-02 : f32
    %203 = vector.broadcast %cst_34 : f32 to vector<8x16x8xf32>
    %204 = arith.mulf %203, %109 : vector<8x16x8xf32>
    %205 = arith.mulf %204, %109 : vector<8x16x8xf32>
    %206 = arith.mulf %205, %109 : vector<8x16x8xf32>
    %207 = arith.addf %109, %206 : vector<8x16x8xf32>
    %cst_35 = arith.constant 0.797884583 : f32
    %208 = vector.broadcast %cst_35 : f32 to vector<8x16x8xf32>
    %209 = arith.mulf %208, %207 : vector<8x16x8xf32>
    %210 = math.tanh %209 : vector<8x16x8xf32>
    %cst_36 = arith.constant 1.000000e+00 : f32
    %211 = vector.broadcast %cst_36 : f32 to vector<8x16x8xf32>
    %212 = arith.addf %211, %210 : vector<8x16x8xf32>
    %213 = arith.mulf %202, %212 : vector<8x16x8xf32>
    %214 = arith.mulf %213, %200 : vector<8x16x8xf32>
    %215 = vector.shape_cast %214 : vector<8x16x8xf32> to vector<128x8xf32>
    %216 = arith.truncf %215 : vector<128x8xf32> to vector<128x8xbf16>
    %c0_37 = arith.constant 0 : index
    %c0_38 = arith.constant 0 : index
    %217 = vector.load %arg13[%c0_37, %c0_38] : memref<4x8xbf16, #tpu.memory_space<vmem>>, vector<4x8xbf16>
    %cst_39 = arith.constant dense<0.000000e+00> : vector<4x128xf32>
    %218 = tpu.matmul %217, %216, %cst_39 {dimension_numbers = #tpu.dot_dimension_numbers<[1], [1], [0], [0], [0, 0, 1, 0], [], []>} : vector<4x8xbf16>, vector<128x8xbf16>, vector<4x128xf32> -> vector<4x128xf32>
    %c0_40 = arith.constant 0 : index
    %c0_41 = arith.constant 0 : index
    %219 = vector.load %arg14[%c0_40, %c0_41] : memref<4x1xf32, #tpu.memory_space<vmem>>, vector<4x1xf32>
    %220 = vector.broadcast %219 : vector<4x1xf32> to vector<4x128xf32>
    %221 = arith.addf %218, %220 : vector<4x128xf32>
    %c0_42 = arith.constant 0 : index
    %c0_43 = arith.constant 0 : index
    %c0_44 = arith.constant 0 : index
    %222 = vector.load %arg15[%c0_42, %c0_43, %c0_44] : memref<1x4x128xf32, #tpu.memory_space<vmem>>, vector<1x4x128xf32>
    %223 = vector.shape_cast %222 : vector<1x4x128xf32> to vector<4x128xf32>
    %224 = vector.shape_cast %221 : vector<4x128xf32> to vector<1x4x128xf32>
    tpu.vector_store %arg15[%c0_42, %c0_43, %c0_44], %224 {strides = array<i32>} : memref<1x4x128xf32, #tpu.memory_space<vmem>>, vector<1x4x128xf32>,
    return
  }
  func.func @transform_0(%arg0: i32, %arg1: i32) -> (i32, i32, i32) {
    %c0_i32 = arith.constant 0 : i32
    %c0_i32_0 = arith.constant 0 : i32
    return %arg0, %c0_i32, %arg1 : i32, i32, i32
  }
  func.func @transform_1(%arg0: i32, %arg1: i32) -> (i32, i32, i32, i32) {
    %c1_i32 = arith.constant 1 : i32
    %0 = arith.muli %arg1, %c1_i32 : i32
    %c1_i32_0 = arith.constant 1 : i32
    %1 = arith.subi %0, %c1_i32_0 : i32
    %c0_i32 = arith.constant 0 : i32
    %2 = arith.maxsi %1, %c0_i32 : i32
    %c0_i32_1 = arith.constant 0 : i32
    %c0_i32_2 = arith.constant 0 : i32
    %c0_i32_3 = arith.constant 0 : i32
    return %arg0, %c0_i32_1, %2, %c0_i32_2 : i32, i32, i32, i32
  }
  func.func @transform_2(%arg0: i32, %arg1: i32) -> (i32, i32, i32, i32) {
    %c1_i32 = arith.constant 1 : i32
    %0 = arith.addi %arg1, %c1_i32 : i32
    %c1_i32_0 = arith.constant 1 : i32
    %1 = arith.muli %0, %c1_i32_0 : i32
    %c1_i32_1 = arith.constant 1 : i32
    %2 = arith.minsi %1, %c1_i32_1 : i32
    %c0_i32 = arith.constant 0 : i32
    %c0_i32_2 = arith.constant 0 : i32
    %c0_i32_3 = arith.constant 0 : i32
    return %arg0, %c0_i32, %2, %c0_i32_2 : i32, i32, i32, i32
  }
  func.func @transform_3(%arg0: i32, %arg1: i32) -> (i32, i32) {
    %c0_i32 = arith.constant 0 : i32
    %c0_i32_0 = arith.constant 0 : i32
    %c0_i32_1 = arith.constant 0 : i32
    return %c0_i32, %c0_i32_0 : i32, i32
  }
  func.func @transform_4(%arg0: i32, %arg1: i32) -> (i32, i32) {
    %c0_i32 = arith.constant 0 : i32
    %c0_i32_0 = arith.constant 0 : i32
    %c0_i32_1 = arith.constant 0 : i32
    return %c0_i32, %c0_i32_0 : i32, i32
  }
  func.func @transform_5(%arg0: i32, %arg1: i32) -> (i32, i32) {
    %c0_i32 = arith.constant 0 : i32
    %c0_i32_0 = arith.constant 0 : i32
    %c0_i32_1 = arith.constant 0 : i32
    return %c0_i32, %c0_i32_0 : i32, i32
  }
  func.func @transform_6(%arg0: i32, %arg1: i32) -> (i32, i32) {
    %c0_i32 = arith.constant 0 : i32
    %c0_i32_0 = arith.constant 0 : i32
    %c0_i32_1 = arith.constant 0 : i32
    return %c0_i32, %c0_i32_0 : i32, i32
  }
  func.func @transform_7(%arg0: i32, %arg1: i32) -> (i32, i32) {
    %c0_i32 = arith.constant 0 : i32
    %c0_i32_0 = arith.constant 0 : i32
    %c0_i32_1 = arith.constant 0 : i32
    return %c0_i32, %c0_i32_0 : i32, i32
  }
  func.func @transform_8(%arg0: i32, %arg1: i32) -> (i32, i32) {
    %c0_i32 = arith.constant 0 : i32
    %c0_i32_0 = arith.constant 0 : i32
    %c0_i32_1 = arith.constant 0 : i32
    return %c0_i32, %c0_i32_0 : i32, i32
  }
  func.func @transform_9(%arg0: i32, %arg1: i32) -> (i32, i32) {
    %c0_i32 = arith.constant 0 : i32
    %c0_i32_0 = arith.constant 0 : i32
    %c0_i32_1 = arith.constant 0 : i32
    return %c0_i32, %c0_i32_0 : i32, i32
  }
  func.func @transform_10(%arg0: i32, %arg1: i32) -> (i32, i32) {
    %c0_i32 = arith.constant 0 : i32
    %c0_i32_0 = arith.constant 0 : i32
    %c0_i32_1 = arith.constant 0 : i32
    return %c0_i32, %c0_i32_0 : i32, i32
  }
  func.func @transform_11(%arg0: i32, %arg1: i32) -> (i32, i32) {
    %c0_i32 = arith.constant 0 : i32
    %c0_i32_0 = arith.constant 0 : i32
    %c0_i32_1 = arith.constant 0 : i32
    return %c0_i32, %c0_i32_0 : i32, i32
  }
  func.func @transform_12(%arg0: i32, %arg1: i32) -> (i32, i32) {
    %c0_i32 = arith.constant 0 : i32
    %c0_i32_0 = arith.constant 0 : i32
    %c0_i32_1 = arith.constant 0 : i32
    return %c0_i32, %c0_i32_0 : i32, i32
  }
  func.func @transform_13(%arg0: i32, %arg1: i32) -> (i32, i32, i32) {
    %c0_i32 = arith.constant 0 : i32
    %c0_i32_0 = arith.constant 0 : i32
    return %arg0, %c0_i32, %arg1 : i32, i32, i32
  }
}

</mosaic_0001>

<bundles_post_ra>
// kernel: tpu_custom_call.1
= control target key start
LH: loop header
LB: loop body
LE: loop exit
PB: predicated region body
PF: predicated region fallthrough
CT: control target
= control target key end

     0   :  { %s4951_s0 = inlined_call_operand.vmem [shape: f32[2,4,256], index: 0, kind: input, shape index: {}]   ;;  %s4952_s1 = inlined_call_operand.hbm [shape: f32[2,4,16,16], index: 1, kind: input, shape index: {}]   ;;  %s4953_s2 = inlined_call_operand.hbm [shape: f32[2,4,16,16], index: 2, kind: input, shape index: {}]   ;;  %s4954_s3 = inlined_call_operand.vmem [shape: bf16[4,8], index: 3, kind: input, shape index: {}]   ;;  %s4955_s4 = inlined_call_operand.vmem [shape: f32[1,8], index: 4, kind: input, shape index: {}]   ;;  %s4956_s5 = inlined_call_operand.vmem [shape: f32[9,8], index: 5, kind: input, shape index: {}]   ;;  %s4957_s6 = inlined_call_operand.vmem [shape: f32[1,8], index: 6, kind: input, shape index: {}]   ;;  %s4958_s7 = inlined_call_operand.vmem [shape: bf16[4,8], index: 7, kind: input, shape index: {}]   ;;  %s4959_s8 = inlined_call_operand.vmem [shape: f32[1,8], index: 8, kind: input, shape index: {}]   ;;  %s4960_s9 = inlined_call_operand.vmem [shape: f32[9,8], index: 9, kind: input, shape index: {}]   ;;  %s4961_s10 = inlined_call_operand.vmem [shape: f32[1,8], index: 10, kind: input, shape index: {}]   ;;  %s4962_s11 = inlined_call_operand.vmem [shape: bf16[4,8], index: 11, kind: input, shape index: {}]   ;;  %s4963_s12 = inlined_call_operand.vmem [shape: f32[4,1], index: 12, kind: input, shape index: {}]   ;;  %s4964_s13 = inlined_call_operand.hbm [shape: f32[2,4,256], index: 13, kind: output, shape index: {}]  }
   0x1   :  { %5023 = sst [smem:[#allocation97_spill]] %s4951_s0 }
   0x2   :  { %5024 = sst [smem:[#allocation98_spill]] %s4952_s1 }
   0x3   :  { %5025 = sst [smem:[#allocation99_spill]] %s4953_s2 }
   0x4   :  { %5026 = sst [smem:[#allocation100_spill]] %s4954_s3 }
   0x5   :  { %5027 = sst [smem:[#allocation101_spill]] %s4955_s4 }
   0x6   :  { %5028 = sst [smem:[#allocation102_spill]] %s4956_s5 }
   0x7   :  { %5029 = sst [smem:[#allocation103_spill]] %s4957_s6 }
   0x8   :  { %5030 = sst [smem:[#allocation104_spill]] %s4958_s7 }
   0x9   :  { %5031 = sst [smem:[#allocation105_spill]] %s4959_s8 }
   0xa   :  { %5032 = sst [smem:[#allocation106_spill]] %s4960_s9 }
   0xb   :  { %5033 = sst [smem:[#allocation107_spill]] %s4961_s10 }
   0xc   :  { %5034 = sst [smem:[#allocation108_spill]] %s4962_s11 }
   0xd   :  { %5035 = sst [smem:[#allocation109_spill]] %s4963_s12 }
   0xe   :  { %5036 = sst [smem:[#allocation110_spill]] %s4964_s13 }
   0xf   :  { %18 = vsyncpa [#allocation3], 0 }
  0x10   :  { %20 = vsyncpa [#allocation3 + $0x1], 0 }
  0x11   :  { %21 = vsyncpa [#allocation6], 0 }
  0x12   :  { %23 = vsyncpa [#allocation6 + $0x1], 0 }
  0x13   :  { %24 = vsyncpa [#allocation4], 0 }
  0x14   :  { %26 = vsyncpa [#allocation4 + $0x1], 0  ;;  %s3079_s25 = smov 0   ;;  %s3081_s26 = smov 0  }
  0x15   :  { %s3083_s27 = smov 0   ;;  %s3085_s28 = smov 0  }
  0x16   :  { %s3087_s29 = smov 0   ;;  %s3089_s30 = smov 0  }
  0x17   :  { %s3091_s14 = smov 0   ;;  %s3093_s15 = smov 0  }
  0x18   :  { %s3095_s16 = smov 0   ;;  %s3097_s17 = smov 0  }
  0x19   :  { %s3099_s18 = smov 0   ;;  %s3101_s19 = smov 0  }
  0x1a   :  { %s3103_s20 = smov 0   ;;  %s3105_s21 = smov 0  }
  0x1b LB: > { %5037 = sst [smem:[#allocation11_spill]] %s2978_s16  ;;  %s2441_s22 = sadd.s32 4294967295, %s2998_s21   ;;  %s2998_s21 = sphi %s3105_s21, %s32_s21   ;;  %s2994_s20 = sphi %s3103_s20, %s5335_s20   ;;  %s2990_s19 = sphi %s3101_s19, %s5334_s19   ;;  %s2986_s18 = sphi %s3099_s18, %s5333_s18   ;;  %s2982_s17 = sphi %s3097_s17, %s5321_s17   ;;  %s2978_s16 = sphi %s3095_s16, %s5320_s16   ;;  %s2974_s15 = sphi %s3093_s15, %s5332_s15   ;;  %s2970_s14 = sphi %s3091_s14, %s5331_s14   ;;  %s2966_s30 = sphi %s3089_s30, %s5330_s30   ;;  %s2962_s29 = sphi %s3087_s29, %s5329_s29   ;;  %s2958_s28 = sphi %s3085_s28, %s5328_s28   ;;  %s2954_s27 = sphi %s3083_s27, %s5327_s27   ;;  %s2950_s26 = sphi %s3081_s26, %s5326_s26   ;;  %s2946_s25 = sphi %s3079_s25, %s5325_s25  }
  0x1c   : > { %5038 = sst [smem:[#allocation12_spill]] %s2990_s19  ;;  %s2442_s23 = sadd.s32 4294967294, %s2998_s21  }
  0x1d   : > { %s41_s24 = sadd.s32 1, %s2990_s19  ;;  %s44_s13 = sadd.s32 1, %s2994_s20 }
  0x1e   : > { %p42_p0 = scmp.ge.s32.totalorder %s41_s24, 2  ;;  %s87_s11 = sadd.s32 1, %s2978_s16 }
  0x1f   : > { %p94_p2 = scmp.ne.s32.totalorder %s2978_s16, %s2974_s15  ;;  %p4978_p3 = scmp.eq.s32.totalorder %s2998_s21, 0 }
  0x20   : > { %s5337_s24 = smov (%p42_p0, %s41_s24), 0  ;;  %s5339_s13 = smov (!%p42_p0, %s44_s13), %s2994_s20 }
  0x21   : > { %5039 = sst [smem:[#allocation13_spill]] %s5337_s24  ;;  %p46_p1 = scmp.ge.s32.totalorder %s5339_s13, 2 }
  0x22   : > { %p100_p4 = scmp.ne.s32.totalorder %s2974_s15, %s2970_s14  ;;  %p3167_p5 = por %p4978_p3, %p94_p2 }
  0x23   : > { %s5341_s13 = smov (%p46_p1, %s5339_s13), 0  ;;  %p3172_p7 = scmp.eq.s32.totalorder %s2441_s22, 0 }
  0x24   : > { %5040 = sst [smem:[#allocation14_spill]] %s5341_s13  ;;  %s3161_s12 = ssub.s32 %s2994_s20, %s5341_s13 }
  0x25   : > { %p4977_p6 = scmp.eq.s32.totalorder %s3161_s12, 0  ;;  %s355_s13 = ssub.s32 %s2990_s19, %s5337_s24 }
  0x26   : > { %s359_s8 = sadd.s32 1, %s2954_s27  ;;  %p3186_p8 = por %p3172_p7, %p100_p4 }
  0x27   : > { %s3182_s4 = scalar_select %p4977_p6, %s2978_s16, %s87_s11  }
  0x28   : > { %s5044_s14 = scalar_select %p3186_p8, 1, 0 }
  0x29   : > { %5043 = sst [smem:[#allocation15_spill]] %s3182_s4  ;;  %s356_s9 = sor.u32 %s355_s13, %s3161_s12 }
  0x2a   : > { %p357_p9 = scmp.eq.s32.totalorder %s356_s9, 0  ;;  %p369_p10 = scmp.ne.s32.totalorder %s2954_s27, %s2950_s26 }
  0x2b   : > { %p370_p11 = scmp.eq.s32.totalorder %s2441_s22, 3  ;;  %p375_p12 = scmp.ne.s32.totalorder %s2950_s26, %s2946_s25 }
  0x2c   : > { %s3196_s5 = scalar_select %p357_p9, %s2954_s27, %s359_s8  }
  0x2d   : > { %p3198_p13 = por %p370_p11, %p369_p10  ;;  %p376_p0 = scmp.eq.s32.totalorder %s2442_s23, 3 }
  0x2e   : > { %5045 = sst [smem:[#allocation16_spill]] %s3196_s5  ;;  %p4976_p1 = scmp.lt.s32.totalorder %s2998_s21, 4 }
  0x2f   : > { %s5046_s24 = scalar_select %p3198_p13, 1, 0 }
  0x30   : > { %p3203_p2 = por %p376_p0, %p375_p12  ;;  %s437_s13 = sand.u32 1, %s2978_s16  }
  0x31   : > { %s2447_s19 = sshll.u32 %s437_s13, 5  ;;  %s4974_s7 = sshll.u32 %s2994_s20, 10 }
  0x32   : > { %s5047_s11 = scalar_select %p3203_p2, 1, 0 }
  0x33   : > { %s441_s9 = scalar_lea.vmem [#allocation2], %s2447_s19  ;;  %s5048_s1 = sld [smem:[#allocation98_spill]] }
  0x34   : > { %s452_s4 = sshll.u32 %s441_s9, 4  ;;  %p3222_p4 = pnand %p4976_p1, %p3167_p5  ;;  %s3209_s4 = int_to_ptr.vmem [resolvable:$true] %s452_s4 }
  0x35   : > { %s3226_s19 = scalar_lea.sflag [#allocation3], %s437_s13 }
  0x36   : > { %p2786_p10 = pneg %p3222_p4 }
  0x39   : > { %s3216_s5 = scalar_lea.hbm %s5048_s1, %s4974_s7  ;;  %s2789_s22 = scalar_lea.hbm %s5048_s1, 2048 }
  0x3a   : > { %s2784_s9 = scalar_lea.hbm %s3216_s5, 512  ;;  %p2790_p5 = scmp.lt.u32.totalorder %s3216_s5, %s5048_s1 }
  0x3b   : > { %p2785_p9 = scmp.ne.s32.totalorder %s3216_s5, %s2784_s9  ;;  %p2791_p0 = scmp.lt.u32.totalorder %s2789_s22, %s2784_s9 }
  0x3c   : > { %p2793_p6 = scmp.lt.u32.totalorder %s2784_s9, %s3216_s5 }
  0x3d   : > { %p2787_p11 = pnand %p2786_p10, %p2785_p9  ;;  %p2792_p1 = por %p2791_p0, %p2790_p5 }
  0x3f   : > { %p2788_p12 = pneg %p2787_p11  ;;  %p2794_p3 = por %p2793_p6, %p2792_p1 }
  0x41   : > { %p2795_p2 = pnand %p2794_p3, %p2788_p12 }
  0x43   : > { %2798 = shalt.err (!%p2795_p2)
}
  0x44   : > { %s2799_s13 = scalar_lea.vmem %s3209_s4, 512  ;;  %s3000_s10 = smov [#allocation2]  }
  0x45   : > { %p2800_p9 = scmp.ne.s32.totalorder %s3209_s4, %s2799_s13  ;;  %s2804_s8 = sshll.u32 %s3000_s10, 4  ;;  %s2805_s8 = int_to_ptr.vmem [resolvable:$false] %s2804_s8 }
  0x46   : > { %s2806_s7 = scalar_lea.vmem %s2805_s8, 1024  ;;  %p2807_p8 = scmp.lt.s32.totalorder %s3209_s4, %s2805_s8 }
  0x47   : > { %p2802_p11 = pnand %p2800_p9, %p2786_p10  ;;  %p2808_p5 = scmp.lt.s32.totalorder %s2806_s7, %s2799_s13 }
  0x49   : > { %p2803_p13 = pneg %p2802_p11  ;;  %p2809_p0 = por %p2808_p5, %p2807_p8 }
  0x4b   : > { %p2810_p6 = pnand %p2809_p0, %p2803_p13 }
  0x4d   : > { %2813 = shalt.err (!%p2810_p6)
}
  0x4e   : > { %s4981_s16 = smov 256   ;;  %s4982_s9 = smov 128  }
  0x4f   : > { %s4983_s22 = smov 8   ;;  %p2454_p3 = scmp.ge.s32.totalorder %s2998_s21, 1 }
  0x50   : > { %2618 = dma.hbm_to_vmem [thread:$0]  (!%p3222_p4), %s3216_s5, 512, %s3209_s4, %s3226_s19, %s4981_s16, %s4982_s9, %s4983_s22  }
  0x51   : > { %p485_p8 = scmp.lt.s32.totalorder %s2998_s21, 5  ;;  %s121_s10 = sadd.s32 1, %s2966_s30 }
  0x52   : > { %p128_p1 = scmp.ne.s32.totalorder %s2966_s30, %s2962_s29  ;;  %p134_p2 = scmp.ne.s32.totalorder %s2962_s29, %s2958_s28 }
  0x53   : > { %p3259_p13 = pnand %p2454_p3, %p485_p8  ;;  %s462_s8 = sand.u32 1, %s2966_s30  }
  0x54   : > { %p5051_p10 = scmp.eq.s32.totalorder %s2998_s21, 0  ;;  %p3273_p9 = por %p134_p2, %p3172_p7 }
  0x55   : > { %s2451_s7 = sshll.u32 %s462_s8, 5  ;;  %p5053_p4 = scmp.eq.s32.totalorder %s3161_s12, 0 }
  0x56   : > { %p130_p12 = por %p128_p1, %p5051_p10  ;;  %s466_s4 = scalar_lea.vmem [#allocation5], %s2451_s7 }
  0x57   : > { %s5052_s23 = scalar_select %p3273_p9, 1, 0 }
  0x58   : > { %s477_s5 = sshll.u32 %s466_s4, 4  ;;  %s5054_s16 = sshll.u32 %s2994_s20, 10  ;;  %s3284_s5 = int_to_ptr.vmem [resolvable:$true] %s477_s5 }
  0x59   : > { %s3280_s19 = scalar_select %p5053_p4, %s2966_s30, %s121_s10  }
  0x5a   : > { %s2942_s9 = sadd.s32 128, %s5054_s16  ;;  %s5055_s2 = sld [smem:[#allocation99_spill]] }
  0x5b   : > { %p5056_p11 = scmp.lt.s32.totalorder %s2998_s21, 4  ;;  %s3297_s12 = scalar_lea.sflag [#allocation6], %s462_s8 }
  0x5d   : > { %p3293_p7 = pnand %p5056_p11, %p130_p12 }
  0x5f   : > { %p2816_p0 = pneg %p3293_p7 }
  0x60   : > { %s3289_s1 = scalar_lea.hbm %s5055_s2, %s2942_s9  ;;  %s2819_s10 = scalar_lea.hbm %s5055_s2, 2048 }
  0x61   : > { %s2814_s16 = scalar_lea.hbm %s3289_s1, 512  ;;  %p2820_p8 = scmp.lt.u32.totalorder %s3289_s1, %s5055_s2 }
  0x62   : > { %p2815_p5 = scmp.ne.s32.totalorder %s3289_s1, %s2814_s16  ;;  %p2821_p1 = scmp.lt.u32.totalorder %s2819_s10, %s2814_s16 }
  0x63   : > { %p2823_p10 = scmp.lt.u32.totalorder %s2814_s16, %s3289_s1 }
  0x64   : > { %p2817_p6 = pnand %p2816_p0, %p2815_p5  ;;  %p2822_p2 = por %p2821_p1, %p2820_p8 }
  0x66   : > { %p2818_p3 = pneg %p2817_p6  ;;  %p2824_p12 = por %p2823_p10, %p2822_p2 }
  0x68   : > { %p2825_p4 = pnand %p2824_p12, %p2818_p3 }
  0x6a   : > { %2828 = shalt.err (!%p2825_p4)
}
  0x6b   : > { %s2829_s8 = scalar_lea.vmem %s3284_s5, 512  ;;  %s3004_s28 = smov [#allocation5]  }
  0x6c   : > { %p2830_p11 = scmp.ne.s32.totalorder %s3284_s5, %s2829_s8  ;;  %s2834_s9 = sshll.u32 %s3004_s28, 4  ;;  %s2835_s9 = int_to_ptr.vmem [resolvable:$false] %s2834_s9 }
  0x6d   : > { %s2836_s22 = scalar_lea.vmem %s2835_s9, 1024  ;;  %p2837_p9 = scmp.lt.s32.totalorder %s3284_s5, %s2835_s9 }
  0x6e   : > { %p2832_p5 = pnand %p2830_p11, %p2816_p0  ;;  %p2838_p8 = scmp.lt.s32.totalorder %s2836_s22, %s2829_s8 }
  0x70   : > { %p2833_p6 = pneg %p2832_p5  ;;  %p2839_p1 = por %p2838_p8, %p2837_p9 }
  0x72   : > { %p2840_p2 = pnand %p2839_p1, %p2833_p6 }
  0x74   : > { %2843 = shalt.err (!%p2840_p2)
}
  0x75   : > { %s5058_s16 = smov 8   ;;  %s5059_s10 = smov 128  }
  0x76   : > { %s5060_s7 = smov 256   ;;  %489 = sbr.rel (%p3259_p13) target bundleno = 966 (0x3c6), region = 72 }
  0x77   : > { %2621 = dma.hbm_to_vmem [thread:$0]  (!%p3293_p7), %s3289_s1, 512, %s3284_s5, %s3297_s12, %s5060_s7, %s5059_s10, %s5058_s16  }
  0x7d   : > { %s491_s4 = sand.u32 1, %s2974_s15   ;;  %p5061_p9 = scmp.ne.s32.totalorder %s5044_s14, 0 }
  0x7e   : > { %s2455_s28 = sshll.u32 %s491_s4, 5  ;;  %s492_s8 = scalar_lea.sflag [#allocation3], %s491_s4 }
  0x7f   : > { %s3331_s9 = scalar_lea.vmem [#allocation2], %s2455_s28 }
  0x80   : > { %2929 = dma.done.wait (%p5061_p9), %s492_s8, 512  }
  0x81   : > { %2931 = vsyncadd (%p5061_p9), %s492_s8, 4294966784  ;;  %s500_s6 = sand.u32 1, %s2962_s29   ;;  %p5062_p7 = scmp.ne.s32.totalorder %s5052_s23, 0 }
  0x82   : > { %s2456_s22 = sshll.u32 %s500_s6, 5  ;;  %s501_s1 = scalar_lea.sflag [#allocation6], %s500_s6 }
  0x83   : > { %s504_s5 = scalar_lea.vmem [#allocation5], %s2456_s22 }
  0x84   : > { %2933 = dma.done.wait (%p5062_p7), %s501_s1, 512  }
  0x85   : > { %2935 = vsyncadd (%p5062_p7), %s501_s1, 4294966784  ;;  %p560_p13 = scmp.lt.s32.totalorder %s2986_s18, 1  ;;  %p562_p0 = scmp.lt.s32.totalorder %s2982_s17, 1  ;;  %v591_v1 = vld [vmem:[%s504_s5] sm:$0xff]  ;;  %vm648_vm0 = vcmask 1041408   ;;  %v592_v3 = vld [vmem:[%s504_s5 + $0x8] sm:$0xff]  ;;  %v1055_v56 = vlaneseq }
  0x86   : > { %s5063_s0 = sld [smem:[#allocation97_spill]]  ;;  %v593_v4 = vld [vmem:[%s504_s5 + $0x10] sm:$0xff]  ;;  %v594_v5 = vld [vmem:[%s504_s5 + $0x18] sm:$0xff]  ;;  %v595_v6 = vpack.c.bf16 %v591_v1, %v591_v1  ;;  %v596_v7 = vpack.c.bf16 %v592_v3, %v592_v3  ;;  %s5064_s3 = sld [smem:[#allocation100_spill]]  ;;  %v583_v12 = vld [vmem:[%s3331_s9] sm:$0xff]  ;;  %vm759_vm1 = vcmask 1041409  }
  0x87   : > { %s561_s14 = scalar_select %p560_p13, %s2986_s18, 1  ;;  %v597_v10 = vpack.c.bf16 %v593_v4, %v593_v4  ;;  %v598_v11 = vpack.c.bf16 %v594_v5, %v594_v5  ;;  %v584_v13 = vld [vmem:[%s3331_s9 + $0x8] sm:$0xff]  ;;  %v585_v21 = vld [vmem:[%s3331_s9 + $0x10] sm:$0xff]  ;;  %v587_v22 = vpack.c.bf16 %v583_v12, %v583_v12  ;;  %v4985_v26 = vmov 0.0   ;;  %v586_v29 = vld [vmem:[%s3331_s9 + $0x18] sm:$0xff] }
  0x88   : > { %s563_s13 = scalar_select %p562_p0, %s2982_s17, 1  ;;  %v836_v14 = vunpack.c.l.b16 %v595_v6  ;;  %v837_v15 = vunpack.c.l.b16 %v596_v7  ;;  %v588_v23 = vpack.c.bf16 %v584_v13, %v584_v13  ;;  %vm762_vm2 = vcmask 1042434  }
  0x89   : > { %s2458_s12 = sshll.u32 %s561_s14, 1  ;;  %s5065_s1 = sld [smem:[#allocation104_spill]]  ;;  %v838_v16 = vunpack.c.l.b16 %v597_v10  ;;  %v839_v17 = vunpack.c.l.b16 %v598_v11  ;;  %vm765_vm3 = vcmask 1043459   ;;  %v589_v30 = vpack.c.bf16 %v585_v21, %v585_v21 }
  0x8a   : > { %s565_s16 = sadd.s32 %s2458_s12, %s563_s13  ;;  %v840_v19 = vrot.slane %v837_v15, 7  ;;  %v753_v32 = vunpack.c.l.b16 %v587_v22  ;;  %v754_v33 = vunpack.c.l.b16 %v588_v23  ;;  %v590_v35 = vpack.c.bf16 %v586_v29, %v586_v29  ;;  %s5066_s14 = sld [smem:[#allocation102_spill]] }
  0x8b   : > { %s2459_s10 = sshll.u32 %s565_s16, 2  ;;  %v842_v24 = vrot.slane %v838_v16, 6  ;;  %v844_v25 = vrot.slane %v839_v17, 5  ;;  %v755_v36 = vunpack.c.l.b16 %v589_v30  ;;  %vm623_vm4 = vcmask 31744   ;;  %s5071_s22 = sld [smem:[#allocation105_spill]] }
  0x8c   : > { %s567_s28 = scalar_lea.vmem %s5063_s0, %s2459_s10  ;;  %v599_v8 = vld [vmem:[%s5064_s3] sm:$0x3]  ;;  %v841_v27 = vsel %vm759_vm1, %v840_v19, %v836_v14  ;;  %v757_v37 = vrot.slane %v753_v32, 7  ;;  %v758_v38 = vrot.slane %v754_v33, 6  ;;  %v756_v39 = vunpack.c.l.b16 %v590_v35  ;;  %s5068_s10 = sld [smem:[#allocation106_spill]] }
  0x8d   : > { %v581_v0 = vld [vmem:[%s567_s28] sm:$0xf]  ;;  %2607 = vmatprep.subr.msk.bf16.mxu0 %vm648_vm0, %v599_v8  ;;  %v3362_v18 = vsel %vm648_vm0, %v599_v8, 0  ;;  %v843_v28 = vsel %vm762_vm2, %v842_v24, %v841_v27  ;;  %v761_v40 = vrot.slane %v755_v36, 5  ;;  %vm3006_vm5 = vmmov 0   ;;  %s5069_s28 = sld [smem:[#allocation101_spill]] }
  0x8e   : > { %v582_v2 = vpack.c.bf16 %v581_v0, %v581_v0  ;;  %2528 = vmatpush3.bf16.msra.mxu0 %v3362_v18  ;;  %v845_v31 = vsel %vm765_vm3, %v844_v25, %v843_v28  ;;  %v760_v41 = vsel %vm759_vm1, %v758_v38, %v757_v37  ;;  %v764_v42 = vrot.slane %v756_v39, 4  ;;  %s5165_s12 = sld [smem:[#allocation103_spill]]  ;;  %p575_p3 = scmp.gt.s32.totalorder %s2982_s17, 0 }
  0x8f   : > { %v1386_v9 = vld [vmem:[%s5065_s1] sm:$0x3]  ;;  %2545 = vmatprep.subr.bf16.mxu0 %v4985_v26  ;;  %v846_v34 = vpack.c.b16 %v845_v31, %v845_v31  ;;  %v763_v43 = vsel %vm762_vm2, %v761_v40, %v760_v41  ;;  %v1056_v57 = vshrl.u32 %v1055_v56, 7  ;;  %vm933_vm6 = vcmask 1040384   ;;  %s4378_s9 = scalar_select %p562_p0, 1, 0 }
  0x90   : > { %607 = vxpose.xlu0.c.b16.start.end [1/1] (short) %v582_v2, 128  ;;  %2608 = vmatprep.subr.msk.bf16.mxu1 %vm648_vm0, %v1386_v9  ;;  %v3366_v20 = vsel %vm648_vm0, %v1386_v9, 0  ;;  %v766_v44 = vsel %vm765_vm3, %v764_v42, %v763_v43  ;;  %s5067_s13 = smov %s5066_s14  ;;  %v911_v59 = vld [vmem:[%s5066_s14] sm:$0xff]  ;;  %vm994_vm7 = vcmask 1046528   ;;  %s5271_s8 = sld [smem:[#allocation107_spill]]  ;;  %vm2228_vm8 = vcmask 64512  }
  0x91   : > { %2558 = vmatpush3.bf16.msra.mxu1 %v3366_v20  ;;  %848 = vxpose.xlu1.c.b16.start.end [1/1] (short) (narrow) %v846_v34, 16  ;;  %v767_v45 = vpack.c.b16 %v766_v44, %v766_v44  ;;  %v1077_v58 = vsub.s32 1, %v1056_v57  ;;  %v1169_v60 = vsub.s32 4, %v1056_v57  ;;  %v1277_v61 = vsub.s32 7, %v1056_v57  ;;  %v3425_v2 = vld [vmem:[%s5071_s22] ss:$0 sm:$0xff]  ;;  %s580_s14 = scvt.s32.f32 %s4378_s9 }
  0x92   : > { %2587 = vmatprep.subr.bf16.mxu1 %v4985_v26  ;;  %v1580_v62 = vld [vmem:[%s5068_s10] sm:$0xff]  ;;  %v1057_v0 = vsub.s32 0, %v1056_v57  ;;  %v1149_v1 = vsub.s32 3, %v1056_v57  ;;  %v1257_v4 = vsub.s32 6, %v1056_v57  ;;  %v1113_v10 = vsub.s32 2, %v1056_v57  ;;  %s5313_s4 = sld [smem:[#allocation108_spill]] }
  0x93   : > { %s5070_s23 = smov %s5069_s28  ;;  %v3420_v63 = vld [vmem:[%s5069_s28] ss:$0 sm:$0xff]  ;;  %v3427_v3 = vrot.slane %v911_v59, %v1077_v58  ;;  %v3429_v6 = vrot.slane %v911_v59, %v1169_v60  ;;  %v3431_v7 = vrot.slane %v911_v59, %v1277_v61  ;;  %v3433_v9 = vrot.slane %v1580_v62, %v1077_v58  ;;  %s557_s28 = sand.u32 1, %s2950_s26  }
  0x94   : > { %v3441_v13 = vrot.slane %v1580_v62, %v1169_v60  ;;  %v1205_v16 = vsub.s32 5, %v1056_v57  ;;  %v3443_v17 = vrot.slane %v911_v59, %v1057_v0  ;;  %v3447_v19 = vrot.slane %v1580_v62, %v1277_v61  ;;  %s4367_s1 = scalar_select %p575_p3, 1, 0 }
  0x95   : > { %5072 = vst [vmem:[#allocation17_spill] sm:$0xff] %v3427_v3  ;;  %v3453_v24 = vrot.slane %v911_v59, %v1257_v4  ;;  %v3455_v25 = vrot.slane %v1580_v62, %v1057_v0  ;;  %v3457_v27 = vrot.slane %v1580_v62, %v1149_v1  ;;  %v3464_v31 = vrot.slane %v1580_v62, %v1257_v4  ;;  %s2488_s6 = sshll.u32 %s2986_s18, 1  ;;  %s5314_s3 = sld [smem:[#allocation110_spill]] }
  0x96   : > { %v3466_v32 = vrot.slane %v911_v59, %v1113_v10  ;;  %v3470_v35 = vrot.slane %v911_v59, %v1205_v16  ;;  %v3472_v36 = vrot.slane %v1580_v62, %v1113_v10  ;;  %v3479_v40 = vrot.slane %v1580_v62, %v1205_v16  ;;  %s577_s5 = scvt.s32.f32 %s4367_s1  ;;  %s2309_s1 = sadd.s32 %s2982_s17, %s2488_s6 }
  0x97   : > { %s2489_s9 = sshll.u32 %s2309_s1, 6  ;;  %s2298_s17 = scalar_lea.sflag [#allocation4], %s557_s28 }
  0x98   : > { %5073 = vst [vmem:[#allocation18_spill] sm:$0xff] %v3466_v32  ;;  %5074 = vst [vmem:[#allocation19_spill] sm:$0xff] %v3470_v35  ;;  %p5315_p12 = scmp.ne.s32.totalorder %s5046_s24, 0  ;;  %s3008_s16 = smov [#allocation7]  }
  0x99   : > { %5075 = vst [vmem:[#allocation20_spill] sm:$0xff] %v3472_v36  ;;  %5076 = vst [vmem:[#allocation21_spill] sm:$0xff] %v3479_v40  ;;  %s2848_s7 = sshll.u32 %s3008_s16, 4  ;;  %s2849_s7 = int_to_ptr.vmem [resolvable:$false] %s2848_s7 }
  0x9a   : > { %s2850_s0 = scalar_lea.vmem %s2849_s7, 128 }
  0xad   : > { %769 = vxpose.xlu0.c.b16.start.end [1/1] (short) (narrow) %v767_v45, 16 }
  0xf6   : > { %v615_v46 = vpop.trf.xlu0 }
  0xf7   : > { %2529 = vmatprep.mubr.msk.bf16.mxu0 %vm623_vm4, %v615_v46  ;;  %2559 = vmatprep.mubr.msk.bf16.mxu1 %vm623_vm4, %v615_v46  ;;  %v856_v55 = vpop.trf.xlu1 }
  0xfa   : > { %v616_v47 = vpop.trf.xlu0 }
  0xfb   : > { %2530 = vmatmul.mubr.msk.bf16.vlgmr.msra.gmra.mrb[0].mxu0 %vm623_vm4, %v616_v47  ;;  %2560 = vmatmul.mubr.msk.bf16.vlgmr.msra.gmra.mrb[0].mxu1 %vm623_vm4, %v616_v47 }
  0xfc   : > { %2546 = vmatpush3.bf16.msra.mxu0 %v3362_v18 }
  0xfd   : > { %2551 = vmatprep.subr.bf16.mxu0 %v4985_v26 }
  0xfe   : > { %v617_v48 = vpop.trf.xlu0 }
  0xff   : > { %2533 = vmatprep.mubr.msk.bf16.mxu0 %vm623_vm4, %v617_v48  ;;  %2563 = vmatprep.mubr.msk.bf16.mxu1 %vm623_vm4, %v617_v48 }
 0x102   : > { %v618_v49 = vpop.trf.xlu0 }
 0x103   : > { %2534 = vmatmul.mubr.msk.bf16.gmra.mrb[4].mxu0 %vm623_vm4, %v618_v49  ;;  %2564 = vmatmul.mubr.msk.bf16.gmra.mrb[4].mxu1 %vm623_vm4, %v618_v49 }
 0x106   : > { %v619_v50 = vpop.trf.xlu0 }
 0x107   : > { %2537 = vmatprep.mubr.msk.bf16.mxu0 %vm623_vm4, %v619_v50  ;;  %2567 = vmatprep.mubr.msk.bf16.mxu1 %vm623_vm4, %v619_v50 }
 0x10a   : > { %v620_v51 = vpop.trf.xlu0 }
 0x10b   : > { %2538 = vmatmul.mubr.msk.bf16.gmra.mrb[8].mxu0 %vm623_vm4, %v620_v51  ;;  %2568 = vmatmul.mubr.msk.bf16.gmra.mrb[8].mxu1 %vm623_vm4, %v620_v51 }
 0x10e   : > { %v621_v52 = vpop.trf.xlu0 }
 0x10f   : > { %2541 = vmatprep.mubr.msk.bf16.mxu0 %vm623_vm4, %v621_v52  ;;  %2571 = vmatprep.mubr.msk.bf16.mxu1 %vm623_vm4, %v621_v52 }
 0x112   : > { %v622_v53 = vpop.trf.xlu0 }
 0x113   : > { %2542 = vmatmul.mubr.msk.bf16.gmra.mrb[12].mxu0 %vm623_vm4, %v622_v53  ;;  %2572 = vmatmul.mubr.msk.bf16.gmra.mrb[12].mxu1 %vm623_vm4, %v622_v53 }
 0x114   : > { %2547 = vmatprep.mubr.msk.bf16.mxu0 %vm3006_vm5, %v4985_v26  ;;  %2603 = vmatprep.mubr.msk.bf16.mxu1 %vm3006_vm5, %v4985_v26 }
 0x116   : > { %v777_v54 = vpop.trf.xlu0 }
 0x11b   : > { %2548 = vmatmul.mubr.msk.bf16.vlgmr.msra.gmra.mrb[16].mxu0 %vm623_vm4, %v777_v54 }
 0x11c   : > { %2552 = vmatpush3.bf16.msra.mxu0 %v3362_v18  ;;  %2553 = vmatprep.mubr.msk.bf16.mxu0 %vm3006_vm5, %v4985_v26  ;;  %v3445_v18 = vrot.slane %v911_v59, %v1149_v1 }
 0x11d   : > { %2575 = vmatprep.subr.bf16.mxu0 %v4985_v26 }
 0x123   : > { %2554 = vmatmul.mubr.msk.bf16.vlgmr.msra.gmra.mrb[20].mxu0 %vm623_vm4, %v856_v55 }
 0x124   : > { %2576 = vmatpush3.bf16.msra.mxu0 %v3366_v20  ;;  %2577 = vmatprep.mubr.msk.bf16.mxu0 %vm3006_vm5, %v4985_v26 }
 0x125   : > { %2581 = vmatprep.subr.bf16.mxu0 %v4985_v26 }
 0x12b   : > { %2578 = vmatmul.mubr.msk.bf16.vlgmr.msra.gmra.mrb[24].mxu0 %vm623_vm4, %v777_v54 }
 0x12c   : > { %2582 = vmatpush3.bf16.msra.mxu0 %v3366_v20  ;;  %2583 = vmatprep.mubr.msk.bf16.mxu0 %vm3006_vm5, %v4985_v26 }
 0x133   : > { %2584 = vmatmul.mubr.msk.bf16.vlgmr.msra.gmra.mrb[28].mxu0 %vm623_vm4, %v856_v55 }
 0x1ce   : > { %v2531_v5 = vpop.f32.mrb[0].mxu0  ;;  %v2561_v8 = vpop.f32.mrb[0].mxu1 }
 0x1cf   : > { %v3436_v11 = vadd.f32 %v2531_v5, %v3420_v63  ;;  %v3439_v12 = vadd.f32 %v2561_v8, %v3425_v2  ;;  %v686_v14 = vpop.f32.mrb[1].mxu0  ;;  %v1431_v15 = vpop.f32.mrb[1].mxu1 }
 0x1d0   : > { %v3450_v20 = vadd.f32 %v3420_v63, %v686_v14  ;;  %v2532_v21 = vpop.f32.mrb[2].mxu0  ;;  %v2562_v22 = vpop.f32.mrb[2].mxu1  ;;  %v3485_v44 = vadd.f32 %v3425_v2, %v1431_v15 }
 0x1d1   : > { %v940_v23 = vrot.slane %v3436_v11, 7  ;;  %v3459_v28 = vpop.f32.mrb[3].mxu0  ;;  %v3461_v29 = vpop.f32.mrb[3].mxu1  ;;  %v4988_v30 = vrot.slane %v3439_v12, 7  ;;  %v1001_v41 = vrot.slane %v3436_v11, 1  ;;  %v1083_v45 = vmul.f32 %v3427_v3, %v3436_v11 }
 0x1d2   : > { %v4987_v34 = vrot.slane %v3450_v20, 7  ;;  %v1173_v46 = vmul.f32 %v3429_v6, %v3436_v11  ;;  %v1279_v51 = vmul.f32 %v3431_v7, %v3436_v11  ;;  %v1750_v53 = vmul.f32 %v3433_v9, %v3439_v12 }
 0x1d3   : > { %v986_v33 = vsel %vm933_vm6, 0.0, %v940_v23  ;;  %v1654_v39 = vsel %vm933_vm6, 0.0, %v4988_v30  ;;  %v1840_v59 = vmul.f32 %v3441_v13, %v3439_v12  ;;  %v1946_v60 = vmul.f32 %v3447_v19, %v3439_v12 }
 0x1d4   : > { %v1063_v37 = vmul.f32 %v3443_v17, %v986_v33  ;;  %v1153_v38 = vmul.f32 %v3445_v18, %v986_v33  ;;  %v1259_v42 = vmul.f32 %v3453_v24, %v986_v33  ;;  %v1730_v43 = vmul.f32 %v3455_v25, %v1654_v39 }
 0x1d5   : > { %v1820_v47 = vmul.f32 %v3457_v27, %v1654_v39  ;;  %v1926_v48 = vmul.f32 %v3464_v31, %v1654_v39  ;;  %v985_v54 = vsel %vm933_vm6, 0.0, %v4987_v34  ;;  %v698_v5 = vadd.f32 %v2532_v21, %v3420_v63 }
 0x1d6   : > { %v3493_v49 = vpop.f32.mrb[4].mxu0  ;;  %v3495_v50 = vpop.f32.mrb[4].mxu1  ;;  %v1099_v57 = vadd.f32 %v1083_v45, %v1063_v37  ;;  %v3509_v58 = vadd.f32 %v1173_v46, %v1153_v38  ;;  %v3519_v0 = vadd.f32 %v1279_v51, %v1259_v42  ;;  %v3521_v1 = vadd.f32 %v1750_v53, %v1730_v43 }
 0x1d7   : > { %v3505_v55 = vpop.f32.mrb[5].mxu0  ;;  %v3507_v56 = vpop.f32.mrb[5].mxu1  ;;  %v3529_v11 = vadd.f32 %v1840_v59, %v1820_v47  ;;  %v3531_v14 = vadd.f32 %v1946_v60, %v1926_v48  ;;  %v1061_v15 = vmul.f32 %v3443_v17, %v985_v54  ;;  %v3535_v16 = vadd.f32 %v2562_v22, %v3425_v2 }
 0x1d8   : > { %v3515_v61 = vpop.f32.mrb[6].mxu0  ;;  %v3517_v62 = vpop.f32.mrb[6].mxu1  ;;  %5077 = vst [vmem:[#allocation22_spill] sm:$0xff] %v3519_v0  ;;  %5078 = vst [vmem:[#allocation23_spill] sm:$0xff] %v3521_v1  ;;  %v1081_v33 = vmul.f32 %v3427_v3, %v3450_v20  ;;  %v4989_v37 = vrot.slane %v3485_v44, 7  ;;  %v941_v38 = vrot.slane %v698_v5, 7  ;;  %v1151_v39 = vmul.f32 %v3445_v18, %v985_v54 }
 0x1d9   : > { %v3525_v8 = vpop.f32.mrb[7].mxu0  ;;  %v3527_v10 = vpop.f32.mrb[7].mxu1  ;;  %5079 = vst [vmem:[#allocation24_spill] sm:$0xff] %v3529_v11  ;;  %5080 = vst [vmem:[#allocation25_spill] sm:$0xff] %v3531_v14  ;;  %v1002_v21 = vrot.slane %v698_v5, 1  ;;  %v1171_v42 = vmul.f32 %v3429_v6, %v3450_v20  ;;  %v1084_v45 = vmul.f32 %v3427_v3, %v698_v5  ;;  %v1174_v47 = vmul.f32 %v3429_v6, %v698_v5 }
 0x1da   : > { %v942_v46 = vsel %vm933_vm6, %v940_v23, %v941_v38  ;;  %v1609_v48 = vrot.slane %v3535_v16, 7  ;;  %v3567_v38 = vmul.f32 %v3433_v9, %v3485_v44  ;;  %v1280_v26 = vmul.f32 %v3431_v7, %v698_v5 }
 0x1db   : > { %v3547_v22 = vsel %vm994_vm7, %v1001_v41, %v1002_v21  ;;  %v3552_v51 = vsel %vm994_vm7, %v1002_v21, 0.0  ;;  %v1064_v53 = vmul.f32 %v3443_v17, %v942_v46  ;;  %v1154_v59 = vmul.f32 %v3445_v18, %v942_v46 }
 0x1dc   : > { %v1119_v54 = vmul.f32 %v3466_v32, %v3547_v22  ;;  %v1653_v41 = vsel %vm933_vm6, 0.0, %v4989_v37  ;;  %v1260_v21 = vmul.f32 %v3453_v24, %v942_v46  ;;  %v1120_v52 = vmul.f32 %v3466_v32, %v3552_v51 }
 0x1dd   : > { %v1100_v34 = vadd.f32 %v1084_v45, %v1064_v53  ;;  %v1190_v1 = vadd.f32 %v1174_v47, %v1154_v59  ;;  %v1209_v46 = vmul.f32 %v3470_v35, %v3547_v22  ;;  %v5086_v5 = vrot.slane %v3439_v12, 7 }
 0x1de   : > { %v3558_v60 = vpop.f32.mrb[8].mxu0  ;;  %v3560_v23 = vpop.f32.mrb[8].mxu1  ;;  %v3577_v30 = vadd.f32 %v1119_v54, %v1099_v57  ;;  %v3585_v14 = vadd.f32 %v1280_v26, %v1260_v21  ;;  %v4990_v45 = vrot.slane %v3535_v16, 1  ;;  %v1751_v59 = vmul.f32 %v3433_v9, %v3535_v16 }
 0x1df   : > { %v3571_v43 = vpop.f32.mrb[9].mxu0  ;;  %v3573_v4 = vpop.f32.mrb[9].mxu1  ;;  %v1610_v0 = vsel %vm933_vm6, %v5086_v5, %v1609_v48  ;;  %v3595_v47 = vadd.f32 %v1120_v52, %v1100_v34  ;;  %v1210_v21 = vmul.f32 %v3470_v35, %v3552_v51  ;;  %v5089_v48 = vrot.slane %v3439_v12, 1 }
 0x1e0   : > { %5081 = vst [vmem:[#allocation26_spill] sm:$0xff] %v3571_v43  ;;  %5082 = vst [vmem:[#allocation27_spill] sm:$0xff] %v3573_v4  ;;  %v3579_v37 = vpop.f32.mrb[10].mxu0  ;;  %v3581_v11 = vpop.f32.mrb[10].mxu1  ;;  %v1731_v54 = vmul.f32 %v3455_v25, %v1610_v0  ;;  %v1821_v26 = vmul.f32 %v3457_v27, %v1610_v0  ;;  %v1841_v34 = vmul.f32 %v3441_v13, %v3535_v16 }
 0x1e1   : > { %5083 = vst [vmem:[#allocation28_spill] sm:$0xff] %v3579_v37  ;;  %5084 = vst [vmem:[#allocation29_spill] sm:$0xff] %v3581_v11  ;;  %v3591_v53 = vpop.f32.mrb[11].mxu0  ;;  %v3593_v57 = vpop.f32.mrb[11].mxu1  ;;  %v3608_v5 = vsel %vm994_vm7, %v5089_v48, %v4990_v45  ;;  %v1927_v52 = vmul.f32 %v3464_v31, %v1610_v0  ;;  %v1947_v11 = vmul.f32 %v3447_v19, %v3535_v16 }
 0x1e2   : > { %5085 = vst [vmem:[#allocation30_spill] sm:$0xff] %v3585_v14  ;;  %5087 = vst [vmem:[#allocation31_spill] sm:$0xff] %v3591_v53  ;;  %v1097_v14 = vadd.f32 %v1081_v33, %v1061_v15  ;;  %v3613_v53 = vadd.f32 %v1751_v59, %v1731_v54  ;;  %v3617_v37 = vadd.f32 %v1841_v34, %v1821_v26 }
 0x1e3   : > { %5088 = vst [vmem:[#allocation32_spill] sm:$0xff] %v3593_v57  ;;  %5090 = vst [vmem:[#allocation33_spill] sm:$0xff] %v3608_v5  ;;  %v1187_v57 = vadd.f32 %v1171_v42, %v1151_v39  ;;  %v690_v12 = vadd.f32 %v3420_v63, %v3459_v28  ;;  %v1225_v48 = vadd.f32 %v1209_v46, %v3509_v58 }
 0x1e4   : > { %5091 = vst [vmem:[#allocation34_spill] sm:$0xff] %v3613_v53  ;;  %5092 = vst [vmem:[#allocation35_spill] sm:$0xff] %v3617_v37  ;;  %v1226_v45 = vadd.f32 %v1210_v21, %v1190_v1  ;;  %v1728_v5 = vmul.f32 %v3455_v25, %v1653_v41  ;;  %v3623_v4 = vadd.f32 %v1947_v11, %v1927_v52  ;;  %v5105_v37 = vrot.slane %v3485_v44, 1 }
 0x1e5   : > { %v1435_v0 = vadd.f32 %v3425_v2, %v3461_v29  ;;  %v3629_v15 = vadd.f32 %v3493_v49, %v3420_v63  ;;  %v1818_v28 = vmul.f32 %v3457_v27, %v1653_v41  ;;  %v938_v42 = vrot.slane %v690_v12, 7 }
 0x1e6   : > { %5093 = vst [vmem:[#allocation36_spill] sm:$0xff] %v3623_v4  ;;  %v3631_v33 = vpop.f32.mrb[12].mxu0  ;;  %v3633_v39 = vpop.f32.mrb[12].mxu1  ;;  %v999_v58 = vrot.slane %v690_v12, 1  ;;  %v3638_v1 = vadd.f32 %v3495_v50, %v3425_v2  ;;  %v1082_v29 = vmul.f32 %v3427_v3, %v690_v12  ;;  %v1172_v49 = vmul.f32 %v3429_v6, %v690_v12 }
 0x1e7   : > { %5094 = vst [vmem:[#allocation37_spill] sm:$0xff] %v3631_v33  ;;  %5095 = vst [vmem:[#allocation38_spill] sm:$0xff] %v3633_v39  ;;  %v3640_v11 = vpop.f32.mrb[13].mxu0  ;;  %v3642_v46 = vpop.f32.mrb[13].mxu1  ;;  %v1606_v54 = vrot.slane %v1435_v0, 7  ;;  %v1666_v59 = vrot.slane %v1435_v0, 1 }
 0x1e8   : > { %5096 = vst [vmem:[#allocation39_spill] sm:$0xff] %v3640_v11  ;;  %5097 = vst [vmem:[#allocation40_spill] sm:$0xff] %v3642_v46  ;;  %v3646_v26 = vpop.f32.mrb[14].mxu0  ;;  %v3648_v21 = vpop.f32.mrb[14].mxu1  ;;  %v5100_v41 = vrot.slane %v3450_v20, 7  ;;  %v5101_v50 = vrot.slane %v3450_v20, 1 }
 0x1e9   : > { %5098 = vst [vmem:[#allocation41_spill] sm:$0xff] %v3646_v26  ;;  %5099 = vst [vmem:[#allocation42_spill] sm:$0xff] %v3648_v21  ;;  %v1046_v53 = vsel %vm994_vm7, %v999_v58, 0.0  ;;  %v3658_v4 = vpop.f32.mrb[15].mxu0  ;;  %v3660_v12 = vpop.f32.mrb[15].mxu1  ;;  %v1713_v33 = vsel %vm994_vm7, %v1666_v59, 0.0 }
 0x1ea   : > { %v939_v34 = vsel %vm933_vm6, %v5100_v41, %v938_v42  ;;  %v1000_v52 = vsel %vm994_vm7, %v5101_v50, %v999_v58  ;;  %5102 = vst [vmem:[#allocation43_spill] sm:$0xff] %v3658_v4  ;;  %5103 = vst [vmem:[#allocation44_spill] sm:$0xff] %v3660_v12  ;;  %v1118_v46 = vmul.f32 %v3466_v32, %v1046_v53  ;;  %v5104_v58 = vrot.slane %v3485_v44, 7 }
 0x1eb   : > { %v1062_v26 = vmul.f32 %v3443_v17, %v939_v34  ;;  %v1117_v21 = vmul.f32 %v3466_v32, %v1000_v52  ;;  %v1152_v42 = vmul.f32 %v3445_v18, %v939_v34  ;;  %v1207_v20 = vmul.f32 %v3470_v35, %v1000_v52 }
 0x1ec   : > { %v1208_v41 = vmul.f32 %v3470_v35, %v1046_v53  ;;  %v1607_v50 = vsel %vm933_vm6, %v5104_v58, %v1606_v54  ;;  %v1667_v12 = vsel %vm994_vm7, %v5105_v37, %v1666_v59  ;;  %v1749_v52 = vmul.f32 %v3433_v9, %v1435_v0  ;;  %v3683_v54 = vld [vmem:[%s5067_s13 + $0x8] ss:$0 sm:$0xff] }
 0x1ed   : > { %v1098_v4 = vadd.f32 %v1082_v29, %v1062_v26  ;;  %v1133_v11 = vadd.f32 %v1117_v21, %v1097_v14  ;;  %v1188_v39 = vadd.f32 %v1172_v49, %v1152_v42  ;;  %v3675_v43 = vadd.f32 %v1207_v20, %v1187_v57 }
 0x1ee   : > { %v1729_v34 = vmul.f32 %v3455_v25, %v1607_v50  ;;  %v1839_v53 = vmul.f32 %v3441_v13, %v1435_v0  ;;  %v1819_v29 = vmul.f32 %v3457_v27, %v1607_v50  ;;  %v3690_v57 = vpop.f32.mrb[16].mxu0  ;;  %v1838_v49 = vmul.f32 %v3441_v13, %v3485_v44 }
 0x1ef   : > { %5106 = vst [vmem:[#allocation45_spill] sm:$0xff] %v3675_v43  ;;  %v1134_v58 = vadd.f32 %v1118_v46, %v1098_v4  ;;  %v3685_v37 = vadd.f32 %v1208_v41, %v1188_v39  ;;  %v3687_v14 = vadd.f32 %v1225_v48, %v1133_v11  ;;  %5108 = vst [vmem:[#allocation47_spill] sm:$0xff] %v3690_v57  ;;  %v5109_v26 = vrot.slane %v3629_v15, 7  ;;  %v2549_v42 = vpop.f32.mrb[17].mxu0 }
 0x1f0   : > { %v1765_v59 = vadd.f32 %v1749_v52, %v1729_v34  ;;  %v1785_v0 = vmul.f32 %v3472_v36, %v1713_v33  ;;  %v5110_v4 = vrot.slane %v3535_v16, 1  ;;  %v1855_v11 = vadd.f32 %v1839_v53, %v1819_v29  ;;  %v3706_v20 = vpop.f32.mrb[18].mxu0 }
 0x1f1   : > { %5107 = vst [vmem:[#allocation46_spill] sm:$0xff] %v3685_v37  ;;  %v988_v21 = vsel %vm933_vm6, 0.0, %v5109_v26  ;;  %v3703_v39 = vadd.f32 %v1226_v45, %v1134_v58  ;;  %v1875_v46 = vmul.f32 %v3479_v40, %v1713_v33  ;;  %5112 = vst [vmem:[#allocation49_spill] sm:$0xff] %v3706_v20  ;;  %v3709_v44 = vadd.f32 %v3567_v38, %v1728_v5  ;;  %v2550_v34 = vpop.f32.mrb[19].mxu0 }
 0x1f2   : > { %v3701_v48 = vsel %vm994_vm7, %v5110_v4, 0.0  ;;  %v3711_v41 = vadd.f32 %v1838_v49, %v1818_v28  ;;  %v3715_v50 = vmul.f32 %v3683_v54, %v3547_v22  ;;  %v3717_v16 = vadd.f32 %v1785_v0, %v1765_v59 }
 0x1f3   : > { %5111 = vst [vmem:[#allocation48_spill] sm:$0xff] %v3701_v48  ;;  %5113 = vst [vmem:[#allocation50_spill] sm:$0xff] %v3709_v44  ;;  %v3719_v52 = vadd.f32 %v1875_v46, %v1855_v11  ;;  %v1067_v45 = vmul.f32 %v3443_v17, %v988_v21  ;;  %v1157_v33 = vmul.f32 %v3445_v18, %v988_v21  ;;  %v4992_v53 = vrot.slane %v3638_v1, 7 }
 0x1f4   : > { %5114 = vst [vmem:[#allocation51_spill] sm:$0xff] %v3711_v41  ;;  %5115 = vst [vmem:[#allocation52_spill] sm:$0xff] %v3715_v50  ;;  %v3726_v38 = vmul.f32 %v3683_v54, %v3552_v51  ;;  %v3730_v5 = vmul.f32 %v3472_v36, %v3701_v48  ;;  %v3734_v22 = vmul.f32 %v3479_v40, %v3701_v48  ;;  %v1007_v0 = vrot.slane %v3629_v15, 1 }
 0x1f5   : > { %5116 = vst [vmem:[#allocation53_spill] sm:$0xff] %v3717_v16  ;;  %5117 = vst [vmem:[#allocation54_spill] sm:$0xff] %v3719_v52  ;;  %v3737_v28 = vmul.f32 %v3472_v36, %v1667_v12  ;;  %v1087_v58 = vmul.f32 %v3427_v3, %v3629_v15  ;;  %v1177_v29 = vmul.f32 %v3429_v6, %v3629_v15  ;;  %v1656_v49 = vsel %vm933_vm6, 0.0, %v4992_v53 }
 0x1f6   : > { %5118 = vst [vmem:[#allocation55_spill] sm:$0xff] %v3726_v38  ;;  %5119 = vst [vmem:[#allocation56_spill] sm:$0xff] %v3730_v5  ;;  %v1263_v51 = vmul.f32 %v3453_v24, %v988_v21  ;;  %v3748_v59 = vmul.f32 %v3479_v40, %v1667_v12  ;;  %v1283_v26 = vmul.f32 %v3431_v7, %v3629_v15  ;;  %v3759_v34 = vpop.f32.mrb[20].mxu0 }
 0x1f7   : > { %5120 = vst [vmem:[#allocation57_spill] sm:$0xff] %v3734_v22  ;;  %5121 = vst [vmem:[#allocation58_spill] sm:$0xff] %v3737_v28  ;;  %v3755_v42 = vadd.f32 %v3420_v63, %v3505_v55  ;;  %v1103_v4 = vadd.f32 %v1087_v58, %v1067_v45  ;;  %v1193_v11 = vadd.f32 %v1177_v29, %v1157_v33  ;;  %v2555_v16 = vpop.f32.mrb[21].mxu0 }
 0x1f8   : > { %5122 = vst [vmem:[#allocation59_spill] sm:$0xff] %v3748_v59  ;;  %v1734_v21 = vmul.f32 %v3455_v25, %v1656_v49  ;;  %v1824_v46 = vmul.f32 %v3457_v27, %v1656_v49  ;;  %5123 = vst [vmem:[#allocation60_spill] sm:$0xff] %v3759_v34  ;;  %v3765_v5 = vadd.f32 %v3425_v2, %v3507_v56  ;;  %v3777_v12 = vpop.f32.mrb[22].mxu0 }
 0x1f9   : > { %v4993_v53 = vrot.slane %v3755_v42, 7  ;;  %v714_v55 = vadd.f32 %v3515_v61, %v3420_v63  ;;  %v1299_v45 = vadd.f32 %v1283_v26, %v1263_v51  ;;  %v1754_v33 = vmul.f32 %v3433_v9, %v3638_v1  ;;  %5124 = vst [vmem:[#allocation61_spill] sm:$0xff] %v3777_v12  ;;  %v2556_v26 = vpop.f32.mrb[23].mxu0 }
 0x1fa   : > { %v1844_v58 = vmul.f32 %v3441_v13, %v3638_v1  ;;  %v3775_v29 = vmul.f32 %v3447_v19, %v3638_v1  ;;  %v3780_v56 = vmul.f32 %v3464_v31, %v1656_v49  ;;  %v3787_v16 = vadd.f32 %v3517_v62, %v3425_v2 }
 0x1fb   : > { %v987_v61 = vsel %vm933_vm6, 0.0, %v4993_v53  ;;  %v3791_v51 = vadd.f32 %v3420_v63, %v3525_v8  ;;  %v3793_v22 = vadd.f32 %v1754_v33, %v1734_v21  ;;  %v1085_v44 = vmul.f32 %v3427_v3, %v3755_v42 }
 0x1fc   : > { %v3795_v28 = vadd.f32 %v1844_v58, %v1824_v46  ;;  %v1065_v53 = vmul.f32 %v3443_v17, %v987_v61  ;;  %v947_v62 = vrot.slane %v714_v55, 7  ;;  %v1008_v52 = vrot.slane %v714_v55, 1 }
 0x1fd   : > { %5125 = vst [vmem:[#allocation62_spill] sm:$0xff] %v3793_v22  ;;  %v1175_v8 = vmul.f32 %v3429_v6, %v3755_v42  ;;  %v1281_v21 = vmul.f32 %v3431_v7, %v3755_v42  ;;  %v3809_v33 = vmul.f32 %v3433_v9, %v3765_v5  ;;  %v1155_v58 = vmul.f32 %v3445_v18, %v987_v61 }
 0x1fe   : > { %5126 = vst [vmem:[#allocation63_spill] sm:$0xff] %v3795_v28  ;;  %v1261_v26 = vmul.f32 %v3453_v24, %v987_v61  ;;  %v5127_v49 = vrot.slane %v3629_v15, 7  ;;  %v1009_v22 = vsel %vm994_vm7, %v1007_v0, %v1008_v52  ;;  %v3819_v28 = vmul.f32 %v3441_v13, %v3765_v5  ;;  %v3824_v37 = vpop.f32.mrb[24].mxu0 }
 0x1ff   : > { %v1049_v46 = vsel %vm994_vm7, %v1008_v52, 0.0  ;;  %v1088_v41 = vmul.f32 %v3427_v3, %v714_v55  ;;  %5129 = vst [vmem:[#allocation65_spill] sm:$0xff] %v3824_v37  ;;  %v1101_v43 = vadd.f32 %v1085_v44, %v1065_v53  ;;  %v5130_v61 = vrot.slane %v3765_v5, 7 }
 0x200   : > { %v948_v48 = vsel %vm933_vm6, %v5127_v49, %v947_v62  ;;  %5128 = vst [vmem:[#allocation64_spill] sm:$0xff] %v3819_v28  ;;  %v1123_v0 = vmul.f32 %v3466_v32, %v1009_v22  ;;  %v1124_v49 = vmul.f32 %v3466_v32, %v1049_v46  ;;  %v2579_v62 = vpop.f32.mrb[25].mxu0  ;;  %v1178_v34 = vmul.f32 %v3429_v6, %v714_v55 }
 0x201   : > { %v1068_v59 = vmul.f32 %v3443_v17, %v948_v48  ;;  %v3829_v15 = vsel %vm933_vm6, 0.0, %v5130_v61  ;;  %v1158_v52 = vmul.f32 %v3445_v18, %v948_v48  ;;  %v1213_v38 = vmul.f32 %v3470_v35, %v1009_v22  ;;  %v3836_v50 = vpop.f32.mrb[26].mxu0 }
 0x202   : > { %5131 = vst [vmem:[#allocation66_spill] sm:$0xff] %v3836_v50  ;;  %v3838_v44 = vadd.f32 %v1123_v0, %v1103_v4  ;;  %v1214_v53 = vmul.f32 %v3470_v35, %v1049_v46  ;;  %v1264_v61 = vmul.f32 %v3453_v24, %v948_v48  ;;  %v1284_v37 = vmul.f32 %v3431_v7, %v714_v55  ;;  %v2580_v20 = vpop.f32.mrb[27].mxu0 }
 0x203   : > { %v1104_v12 = vadd.f32 %v1088_v41, %v1068_v59  ;;  %v1194_v41 = vadd.f32 %v1178_v34, %v1158_v52  ;;  %v1229_v59 = vadd.f32 %v1213_v38, %v1193_v11  ;;  %v1319_v62 = vmul.f32 %v3683_v54, %v1009_v22 }
 0x204   : > { %5132 = vst [vmem:[#allocation67_spill] sm:$0xff] %v3838_v44  ;;  %v1300_v40 = vadd.f32 %v1284_v37, %v1264_v61  ;;  %v1320_v36 = vmul.f32 %v3683_v54, %v1049_v46  ;;  %v1615_v50 = vrot.slane %v3787_v16, 7  ;;  %v4999_v4 = vrot.slane %v3787_v16, 1 }
 0x205   : > { %v3843_v57 = vadd.f32 %v1124_v49, %v1104_v12  ;;  %v1191_v0 = vadd.f32 %v1175_v8, %v1155_v58  ;;  %v1297_v44 = vadd.f32 %v1281_v21, %v1261_v26  ;;  %v1230_v28 = vadd.f32 %v1214_v53, %v1194_v41 }
 0x206   : > { %v1335_v48 = vadd.f32 %v1319_v62, %v1299_v45  ;;  %v3851_v20 = vmul.f32 %v3455_v25, %v3829_v15  ;;  %v1336_v12 = vadd.f32 %v1320_v36, %v1300_v40  ;;  %v5134_v38 = vrot.slane %v3638_v1, 7  ;;  %v3869_v40 = vpop.f32.mrb[28].mxu0 }
 0x207   : > { %5133 = vst [vmem:[#allocation68_spill] sm:$0xff] %v3843_v57  ;;  %v5135_v37 = vrot.slane %v3638_v1, 1  ;;  %v1755_v55 = vmul.f32 %v3433_v9, %v3787_v16  ;;  %v1845_v36 = vmul.f32 %v3441_v13, %v3787_v16  ;;  %5137 = vst [vmem:[#allocation70_spill] sm:$0xff] %v3869_v40  ;;  %v1951_v1 = vmul.f32 %v3447_v19, %v3787_v16  ;;  %v2585_v46 = vpop.f32.mrb[29].mxu0 }
 0x208   : > { %v1616_v22 = vsel %vm933_vm6, %v5134_v38, %v1615_v50  ;;  %v944_v8 = vrot.slane %v3791_v51, 7  ;;  %v1005_v21 = vrot.slane %v3791_v51, 1  ;;  %v1086_v49 = vmul.f32 %v3427_v3, %v3791_v51  ;;  %v3884_v53 = vpop.f32.mrb[30].mxu0 }
 0x209   : > { %v3861_v11 = vsel %vm994_vm7, %v5135_v37, %v4999_v4  ;;  %v1735_v34 = vmul.f32 %v3455_v25, %v1616_v22  ;;  %v1825_v45 = vmul.f32 %v3457_v27, %v1616_v22  ;;  %v1931_v50 = vmul.f32 %v3464_v31, %v1616_v22  ;;  %5140 = vst [vmem:[#allocation73_spill] sm:$0xff] %v3884_v53 }
 0x20a   : > { %5136 = vst [vmem:[#allocation69_spill] sm:$0xff] %v3861_v11  ;;  %v1176_v52 = vmul.f32 %v3429_v6, %v3791_v51  ;;  %v5142_v41 = vrot.slane %v3755_v42, 7  ;;  %v5143_v38 = vrot.slane %v3755_v42, 1  ;;  %v1048_v37 = vsel %vm994_vm7, %v1005_v21, 0.0 }
 0x20b   : > { %v3876_v58 = vadd.f32 %v1755_v55, %v1735_v34  ;;  %v3878_v26 = vadd.f32 %v1845_v36, %v1825_v45  ;;  %v3886_v61 = vadd.f32 %v1951_v1, %v1931_v50  ;;  %v2586_v34 = vpop.f32.mrb[31].mxu0  ;;  %v1122_v36 = vmul.f32 %v3466_v32, %v1048_v37 }
 0x20c   : > { %v945_v62 = vsel %vm933_vm6, %v5142_v41, %v944_v8  ;;  %v1006_v22 = vsel %vm994_vm7, %v5143_v38, %v1005_v21  ;;  %v1212_v46 = vmul.f32 %v3470_v35, %v1048_v37  ;;  %v1282_v42 = vmul.f32 %v3431_v7, %v3791_v51 }
 0x20d   : > { %5138 = vst [vmem:[#allocation71_spill] sm:$0xff] %v3876_v58  ;;  %5139 = vst [vmem:[#allocation72_spill] sm:$0xff] %v3878_v26  ;;  %v1066_v55 = vmul.f32 %v3443_v17, %v945_v62  ;;  %v1121_v45 = vmul.f32 %v3466_v32, %v1006_v22  ;;  %v1156_v50 = vmul.f32 %v3445_v18, %v945_v62 }
 0x20e   : > { %5141 = vst [vmem:[#allocation74_spill] sm:$0xff] %v3886_v61  ;;  %v1211_v1 = vmul.f32 %v3470_v35, %v1006_v22  ;;  %v1262_v8 = vmul.f32 %v3453_v24, %v945_v62  ;;  %v1317_v34 = vmul.f32 %v3683_v54, %v1006_v22  ;;  %v1318_v26 = vmul.f32 %v3683_v54, %v1048_v37 }
 0x20f   : > { %v1102_v41 = vadd.f32 %v1086_v49, %v1066_v55  ;;  %v1137_v21 = vadd.f32 %v1121_v45, %v1101_v43  ;;  %v1192_v38 = vadd.f32 %v1176_v52, %v1156_v50  ;;  %v1451_v61 = vadd.f32 %v3425_v2, %v3527_v10  ;;  %v5154_v50 = vld [vmem:[#allocation26_spill] sm:$0xff] }
 0x210   : > { %v1227_v4 = vadd.f32 %v1211_v1, %v1191_v0  ;;  %v1298_v58 = vadd.f32 %v1282_v42, %v1262_v8  ;;  %v1333_v62 = vadd.f32 %v1317_v34, %v1297_v44  ;;  %v1822_v52 = vmul.f32 %v3457_v27, %v3829_v15  ;;  %v5157_v8 = vld [vmem:[#allocation64_spill] sm:$0xff] }
 0x211   : > { %v1138_v11 = vadd.f32 %v1122_v36, %v1102_v41  ;;  %v1228_v53 = vadd.f32 %v1212_v46, %v1192_v38  ;;  %v3908_v40 = vadd.f32 %v1229_v59, %v1137_v21  ;;  %v1612_v49 = vrot.slane %v1451_v61, 7  ;;  %v5163_v38 = vld [vmem:[#allocation21_spill] sm:$0xff] }
 0x212   : > { %v1243_v57 = vadd.f32 %v1227_v4, %v3577_v30  ;;  %v1334_v51 = vadd.f32 %v1318_v26, %v1298_v58  ;;  %v1672_v43 = vrot.slane %v1451_v61, 1  ;;  %v3917_v37 = vadd.f32 %v1333_v62, %v3687_v14 }
 0x213   : > { %v1244_v0 = vadd.f32 %v1228_v53, %v3595_v47  ;;  %v3914_v22 = vadd.f32 %v1230_v28, %v1138_v11  ;;  %v5146_v44 = vrot.slane %v3765_v5, 7  ;;  %v5147_v4 = vrot.slane %v3765_v5, 1 }
 0x214   : > { %5144 = vst [vmem:[#allocation75_spill] sm:$0xff] %v3917_v37  ;;  %v1350_v10 = vadd.f32 %v1334_v51, %v3703_v39  ;;  %v3920_v59 = vadd.f32 %v1335_v48, %v1243_v57  ;;  %v1753_v28 = vmul.f32 %v3433_v9, %v1451_v61  ;;  %v1928_v57 = vmul.f32 %v3464_v31, %v3829_v15 }
 0x215   : > { %v1613_v30 = vsel %vm933_vm6, %v5146_v44, %v1612_v49  ;;  %v3928_v58 = vsel %vm994_vm7, %v5147_v4, %v1672_v43  ;;  %v1352_v26 = vadd.f32 %v1336_v12, %v1244_v0  ;;  %v1948_v39 = vmul.f32 %v3447_v19, %v3765_v5  ;;  %v5170_v0 = vld [vmem:[#allocation27_spill] sm:$0xff]  ;;  %v5171_v4 = vld [vmem:[#allocation28_spill] sm:$0xff] }
 0x216   : > { %5145 = vst [vmem:[#allocation76_spill] sm:$0xff] %v3920_v59  ;;  %5148 = vst [vmem:[#allocation77_spill] sm:$0xff] %v3928_v58  ;;  %v1733_v47 = vmul.f32 %v3455_v25, %v1613_v30  ;;  %v1823_v14 = vmul.f32 %v3457_v27, %v1613_v30  ;;  %v5149_v48 = vrot.slane %v3787_v16, 1  ;;  %v1843_v53 = vmul.f32 %v3441_v13, %v1451_v61 }
 0x217   : > { %v3944_v12 = vsel %vm994_vm7, %v1672_v43, 0.0  ;;  %v1929_v45 = vmul.f32 %v3464_v31, %v1613_v30  ;;  %v1949_v36 = vmul.f32 %v3447_v19, %v1451_v61  ;;  %v727_v5 = vadd.f32 %v3558_v60, %v3420_v63 }
 0x218   : > { %v3940_v11 = vsel %vm994_vm7, %v5149_v48, 0.0  ;;  %5151 = vst [vmem:[#allocation79_spill] sm:$0xff] %v3944_v12  ;;  %v3946_v55 = vadd.f32 %v1753_v28, %v1733_v47  ;;  %v3950_v15 = vadd.f32 %v1843_v53, %v1823_v14  ;;  %v3956_v16 = vadd.f32 %v3560_v23, %v3425_v2  ;;  %v5161_v23 = vld [vmem:[#allocation20_spill] sm:$0xff] }
 0x219   : > { %5150 = vst [vmem:[#allocation78_spill] sm:$0xff] %v3940_v11  ;;  %v3960_v1 = vadd.f32 %v3420_v63, %v5154_v50  ;;  %v3964_v46 = vadd.f32 %v3775_v29, %v3780_v56  ;;  %v3968_v61 = vadd.f32 %v3809_v33, %v3851_v20  ;;  %v3971_v42 = vadd.f32 %v5157_v8, %v1822_v52  ;;  %v3988_v29 = vld [vmem:[%s5165_s12] ss:$0 sm:$0xff] }
 0x21a   : > { %5152 = vst [vmem:[#allocation80_spill] sm:$0xff] %v3946_v55  ;;  %5153 = vst [vmem:[#allocation81_spill] sm:$0xff] %v3950_v15  ;;  %v3973_v60 = vadd.f32 %v1949_v36, %v1929_v45  ;;  %v3975_v41 = vadd.f32 %v1948_v39, %v1928_v57  ;;  %v3979_v21 = vmul.f32 %v5161_v23, %v3940_v11  ;;  %v952_v56 = vrot.slane %v727_v5, 7 }
 0x21b   : > { %5155 = vst [vmem:[#allocation26_spill] sm:$0xff] %v3964_v46  ;;  %5156 = vst [vmem:[#allocation82_spill] sm:$0xff] %v3968_v61  ;;  %v3983_v34 = vmul.f32 %v5163_v38, %v3940_v11  ;;  %v3991_v33 = vadd.f32 %v3988_v29, %v1350_v10  ;;  %v3995_v20 = vmul.f32 %v5161_v23, %v3944_v12  ;;  %v5002_v51 = vrot.slane %v3956_v16, 7 }
 0x21c   : > { %5158 = vst [vmem:[#allocation64_spill] sm:$0xff] %v3971_v42  ;;  %5159 = vst [vmem:[#allocation83_spill] sm:$0xff] %v3973_v60  ;;  %v3999_v62 = vmul.f32 %v5163_v38, %v3944_v12  ;;  %v4003_v49 = vadd.f32 %v3988_v29, %v1352_v26  ;;  %v990_v43 = vsel %vm933_vm6, 0.0, %v952_v56  ;;  %v5001_v52 = vrot.slane %v3960_v1, 7  ;;  %v5172_v26 = vld [vmem:[#allocation29_spill] sm:$0xff] }
 0x21d   : > { %5160 = vst [vmem:[#allocation84_spill] sm:$0xff] %v3975_v41  ;;  %5162 = vst [vmem:[#allocation20_spill] sm:$0xff] %v3979_v21  ;;  %v4009_v10 = vadd.f32 %v3425_v2, %v5170_v0  ;;  %v1071_v44 = vmul.f32 %v3443_v17, %v990_v43  ;;  %v1658_v30 = vsel %vm933_vm6, 0.0, %v5002_v51  ;;  %v730_v47 = vadd.f32 %v5171_v4, %v3420_v63 }
 0x21e   : > { %5164 = vst [vmem:[#allocation21_spill] sm:$0xff] %v3983_v34  ;;  %5166 = vst [vmem:[#allocation85_spill] sm:$0xff] %v3991_v33  ;;  %v4019_v28 = vadd.f32 %v5172_v26, %v3425_v2  ;;  %v1013_v14 = vrot.slane %v727_v5, 1  ;;  %v1161_v57 = vmul.f32 %v3445_v18, %v990_v43  ;;  %v1267_v39 = vmul.f32 %v3453_v24, %v990_v43 }
 0x21f   : > { %5167 = vst [vmem:[#allocation86_spill] sm:$0xff] %v3995_v20  ;;  %5168 = vst [vmem:[#allocation87_spill] sm:$0xff] %v3999_v62  ;;  %v989_v48 = vsel %vm933_vm6, 0.0, %v5001_v52  ;;  %v1091_v53 = vmul.f32 %v3427_v3, %v727_v5  ;;  %v1181_v45 = vmul.f32 %v3429_v6, %v727_v5  ;;  %v1738_v36 = vmul.f32 %v3455_v25, %v1658_v30 }
 0x220   : > { %5169 = vst [vmem:[#allocation88_spill] sm:$0xff] %v4003_v49  ;;  %v1828_v50 = vmul.f32 %v3457_v27, %v1658_v30  ;;  %v1287_v8 = vmul.f32 %v3431_v7, %v727_v5  ;;  %v1680_v0 = vrot.slane %v3956_v16, 1  ;;  %v1758_v4 = vmul.f32 %v3433_v9, %v3956_v16 }
 0x221   : > { %v1848_v43 = vmul.f32 %v3441_v13, %v3956_v16  ;;  %v1107_v26 = vadd.f32 %v1091_v53, %v1071_v44  ;;  %v4037_v52 = vmul.f32 %v3464_v31, %v1658_v30  ;;  %v4041_v51 = vmul.f32 %v3447_v19, %v3956_v16 }
 0x222   : > { %v1069_v21 = vmul.f32 %v3443_v17, %v989_v48  ;;  %v1197_v34 = vadd.f32 %v1181_v45, %v1161_v57  ;;  %v1303_v5 = vadd.f32 %v1287_v8, %v1267_v39  ;;  %v1159_v20 = vmul.f32 %v3445_v18, %v989_v48 }
 0x223   : > { %v4046_v55 = vadd.f32 %v1758_v4, %v1738_v36  ;;  %v4048_v49 = vadd.f32 %v1848_v43, %v1828_v50  ;;  %v1089_v44 = vmul.f32 %v3427_v3, %v3960_v1  ;;  %v1179_v30 = vmul.f32 %v3429_v6, %v3960_v1 }
 0x224   : > { %v1265_v53 = vmul.f32 %v3453_v24, %v989_v48  ;;  %v1285_v57 = vmul.f32 %v3431_v7, %v3960_v1  ;;  %v953_v39 = vrot.slane %v730_v47, 7  ;;  %v1014_v45 = vrot.slane %v730_v47, 1 }
 0x225   : > { %5173 = vst [vmem:[#allocation27_spill] sm:$0xff] %v4046_v55  ;;  %5174 = vst [vmem:[#allocation28_spill] sm:$0xff] %v4048_v49  ;;  %v4057_v8 = vadd.f32 %v1089_v44, %v1069_v21  ;;  %v4063_v4 = vmul.f32 %v3433_v9, %v4009_v10  ;;  %v4065_v43 = vadd.f32 %v1179_v30, %v1159_v20  ;;  %v1621_v41 = vrot.slane %v4019_v28, 7 }
 0x226   : > { %v954_v61 = vsel %vm933_vm6, %v952_v56, %v953_v39  ;;  %v1015_v48 = vsel %vm994_vm7, %v1013_v14, %v1014_v45  ;;  %v1051_v55 = vsel %vm994_vm7, %v1014_v45, 0.0  ;;  %v4072_v21 = vmul.f32 %v3441_v13, %v4009_v10 }
 0x227   : > { %v1072_v44 = vmul.f32 %v3443_v17, %v954_v61  ;;  %v1092_v50 = vmul.f32 %v3427_v3, %v730_v47  ;;  %v1182_v36 = vmul.f32 %v3429_v6, %v730_v47  ;;  %v1127_v49 = vmul.f32 %v3466_v32, %v1015_v48 }
 0x228   : > { %v1128_v20 = vmul.f32 %v3466_v32, %v1051_v55  ;;  %v1162_v56 = vmul.f32 %v3445_v18, %v954_v61  ;;  %v1217_v14 = vmul.f32 %v3470_v35, %v1015_v48  ;;  %v1218_v39 = vmul.f32 %v3470_v35, %v1051_v55 }
 0x229   : > { %v1108_v30 = vadd.f32 %v1092_v50, %v1072_v44  ;;  %v1268_v45 = vmul.f32 %v3453_v24, %v954_v61  ;;  %v1288_v46 = vmul.f32 %v3431_v7, %v730_v47  ;;  %v4084_v11 = vadd.f32 %v1127_v49, %v1107_v26 }
 0x22a   : > { %v1198_v62 = vadd.f32 %v1182_v36, %v1162_v56  ;;  %v1233_v15 = vadd.f32 %v1217_v14, %v1197_v34  ;;  %v1323_v42 = vmul.f32 %v3683_v54, %v1015_v48  ;;  %v1324_v60 = vmul.f32 %v3683_v54, %v1051_v55 }
 0x22b   : > { %5175 = vst [vmem:[#allocation29_spill] sm:$0xff] %v4084_v11  ;;  %v4087_v59 = vadd.f32 %v1128_v20, %v1108_v30  ;;  %v1304_v33 = vadd.f32 %v1288_v46, %v1268_v45  ;;  %v5177_v50 = vrot.slane %v4009_v10, 7  ;;  %v1681_v49 = vrot.slane %v4019_v28, 1 }
 0x22c   : > { %v1234_v61 = vadd.f32 %v1218_v39, %v1198_v62  ;;  %v1339_v12 = vadd.f32 %v1323_v42, %v1303_v5  ;;  %v1301_v47 = vadd.f32 %v1285_v57, %v1265_v53  ;;  %v5178_v34 = vrot.slane %v3956_v16, 7  ;;  %v5183_v57 = vld [vmem:[#allocation32_spill] sm:$0xff] }
 0x22d   : > { %5176 = vst [vmem:[#allocation89_spill] sm:$0xff] %v4087_v59  ;;  %v1657_v44 = vsel %vm933_vm6, 0.0, %v5177_v50  ;;  %v1340_v26 = vadd.f32 %v1324_v60, %v1304_v33  ;;  %v1759_v46 = vmul.f32 %v3433_v9, %v4019_v28  ;;  %v4101_v55 = vsel %vm994_vm7, %v1680_v0, %v1681_v49 }
 0x22e   : > { %v1622_v36 = vsel %vm933_vm6, %v5178_v34, %v1621_v41  ;;  %5179 = vst [vmem:[#allocation90_spill] sm:$0xff] %v4101_v55  ;;  %v1849_v42 = vmul.f32 %v3441_v13, %v4019_v28  ;;  %v1736_v62 = vmul.f32 %v3455_v25, %v1657_v44  ;;  %v1955_v16 = vmul.f32 %v3447_v19, %v4019_v28  ;;  %v5180_v41 = vld [vmem:[#allocation31_spill] sm:$0xff] }
 0x22f   : > { %v1739_v48 = vmul.f32 %v3455_v25, %v1622_v36  ;;  %v1829_v20 = vmul.f32 %v3457_v27, %v1622_v36  ;;  %v1935_v60 = vmul.f32 %v3464_v31, %v1622_v36  ;;  %v722_v33 = vadd.f32 %v3420_v63, %v5180_v41 }
 0x230   : > { %v1826_v0 = vmul.f32 %v3457_v27, %v1657_v44  ;;  %v1467_v56 = vadd.f32 %v3425_v2, %v5183_v57  ;;  %v1932_v14 = vmul.f32 %v3464_v31, %v1657_v44 }
 0x231   : > { %v4114_v5 = vadd.f32 %v1759_v46, %v1739_v48  ;;  %v4116_v53 = vadd.f32 %v1849_v42, %v1829_v20  ;;  %v4121_v30 = vadd.f32 %v1955_v16, %v1935_v60  ;;  %v950_v39 = vrot.slane %v722_v33, 7 }
 0x232   : > { %v1011_v45 = vrot.slane %v722_v33, 1  ;;  %v1090_v28 = vmul.f32 %v3427_v3, %v722_v33  ;;  %v1180_v50 = vmul.f32 %v3429_v6, %v722_v33  ;;  %v1286_v34 = vmul.f32 %v3431_v7, %v722_v33 }
 0x233   : > { %5181 = vst [vmem:[#allocation31_spill] sm:$0xff] %v4114_v5  ;;  %5182 = vst [vmem:[#allocation91_spill] sm:$0xff] %v4116_v53  ;;  %v1618_v36 = vrot.slane %v1467_v56, 7  ;;  %v5185_v46 = vrot.slane %v3960_v1, 7  ;;  %v5186_v20 = vrot.slane %v3960_v1, 1  ;;  %v1678_v60 = vrot.slane %v1467_v56, 1 }
 0x234   : > { %5184 = vst [vmem:[#allocation32_spill] sm:$0xff] %v4121_v30  ;;  %v1050_v44 = vsel %vm994_vm7, %v1011_v45, 0.0 }
 0x235   : > { %v951_v48 = vsel %vm933_vm6, %v5185_v46, %v950_v39  ;;  %v1012_v42 = vsel %vm994_vm7, %v5186_v20, %v1011_v45  ;;  %v1126_v57 = vmul.f32 %v3466_v32, %v1050_v44  ;;  %v1216_v53 = vmul.f32 %v3470_v35, %v1050_v44 }
 0x236   : > { %v1070_v16 = vmul.f32 %v3443_v17, %v951_v48  ;;  %v1125_v41 = vmul.f32 %v3466_v32, %v1012_v42  ;;  %v1160_v33 = vmul.f32 %v3445_v18, %v951_v48  ;;  %v1215_v5 = vmul.f32 %v3470_v35, %v1012_v42 }
 0x237   : > { %v1266_v39 = vmul.f32 %v3453_v24, %v951_v48  ;;  %v1321_v1 = vmul.f32 %v3683_v54, %v1012_v42  ;;  %v1322_v30 = vmul.f32 %v3683_v54, %v1050_v44  ;;  %v5187_v32 = vrot.slane %v4009_v10, 7 }
 0x238   : > { %v1106_v46 = vadd.f32 %v1090_v28, %v1070_v16  ;;  %v1141_v45 = vadd.f32 %v1125_v41, %v4057_v8  ;;  %v1196_v20 = vadd.f32 %v1180_v50, %v1160_v33  ;;  %v1231_v55 = vadd.f32 %v1215_v5, %v4065_v43  ;;  %v5189_v8 = vld [vmem:[#allocation67_spill] sm:$0xff] }
 0x239   : > { %v1302_v58 = vadd.f32 %v1286_v34, %v1266_v39  ;;  %v1337_v37 = vadd.f32 %v1321_v1, %v1301_v47  ;;  %v1619_v59 = vsel %vm933_vm6, %v5187_v32, %v1618_v36  ;;  %v5188_v48 = vrot.slane %v4009_v10, 1  ;;  %v5190_v47 = vld [vmem:[#allocation37_spill] sm:$0xff]  ;;  %v5191_v32 = vld [vmem:[#allocation68_spill] sm:$0xff]  ;;  %v5199_v39 = vld [vmem:[#allocation39_spill] sm:$0xff] }
 0x23a   : > { %v1142_v11 = vadd.f32 %v1126_v57, %v1106_v46  ;;  %v1232_v35 = vadd.f32 %v1216_v53, %v1196_v20  ;;  %v4147_v3 = vadd.f32 %v1233_v15, %v1141_v45  ;;  %v1247_v50 = vadd.f32 %v1231_v55, %v5189_v8 }
 0x23b   : > { %v4152_v28 = vsel %vm994_vm7, %v5188_v48, %v1678_v60  ;;  %v1338_v42 = vadd.f32 %v1322_v30, %v1302_v58  ;;  %v4156_v43 = vadd.f32 %v1337_v37, %v3908_v40  ;;  %v4160_v5 = vadd.f32 %v5190_v47, %v3420_v63 }
 0x23c   : > { %v1248_v34 = vadd.f32 %v1232_v35, %v5191_v32  ;;  %v4163_v53 = vadd.f32 %v1234_v61, %v1142_v11  ;;  %v1737_v15 = vmul.f32 %v3455_v25, %v1619_v59  ;;  %v1757_v36 = vmul.f32 %v3433_v9, %v1467_v56 }
 0x23d   : > { %v1354_v44 = vadd.f32 %v1338_v42, %v3914_v22  ;;  %v4168_v16 = vadd.f32 %v1339_v12, %v1247_v50  ;;  %v1827_v58 = vmul.f32 %v3457_v27, %v1619_v59  ;;  %v1847_v40 = vmul.f32 %v3441_v13, %v1467_v56 }
 0x23e   : > { %v4173_v37 = vsel %vm994_vm7, %v1681_v49, 0.0  ;;  %v1356_v55 = vadd.f32 %v1340_v26, %v1248_v34  ;;  %v4175_v30 = vadd.f32 %v1757_v36, %v1737_v15  ;;  %v1933_v35 = vmul.f32 %v3464_v31, %v1619_v59  ;;  %v4254_v15 = vld [vmem:[%s5070_s23] ss:$0 sm:$0xff]  ;;  %v5206_v36 = vld [vmem:[#allocation41_spill] sm:$0xff] }
 0x23f   : > { %5192 = vst [vmem:[#allocation67_spill] sm:$0xff] %v4173_v37  ;;  %v4179_v11 = vsel %vm994_vm7, %v1678_v60, 0.0  ;;  %v4181_v61 = vadd.f32 %v1847_v40, %v1827_v58  ;;  %v1953_v22 = vmul.f32 %v3447_v19, %v1467_v56  ;;  %v958_v12 = vrot.slane %v4160_v5, 7  ;;  %v5198_v56 = vld [vmem:[#allocation38_spill] sm:$0xff] }
 0x240   : > { %5193 = vst [vmem:[#allocation37_spill] sm:$0xff] %v4175_v30  ;;  %v4187_v41 = vadd.f32 %v4041_v51, %v4037_v52  ;;  %v4190_v49 = vadd.f32 %v4063_v4, %v1736_v62  ;;  %v4193_v26 = vadd.f32 %v4072_v21, %v1826_v0  ;;  %v1952_v59 = vmul.f32 %v3447_v19, %v4009_v10 }
 0x241   : > { %5194 = vst [vmem:[#allocation68_spill] sm:$0xff] %v4181_v61  ;;  %v4197_v60 = vadd.f32 %v1953_v22, %v1933_v35  ;;  %v992_v57 = vsel %vm933_vm6, 0.0, %v958_v12  ;;  %v4202_v33 = vadd.f32 %v5198_v56, %v3425_v2  ;;  %v4206_v51 = vadd.f32 %v3420_v63, %v5199_v39  ;;  %v5207_v39 = vld [vmem:[#allocation17_spill] sm:$0xff] }
 0x242   : > { %5195 = vst [vmem:[#allocation92_spill] sm:$0xff] %v4187_v41  ;;  %5196 = vst [vmem:[#allocation93_spill] sm:$0xff] %v4190_v49  ;;  %v4208_v52 = vadd.f32 %v1952_v59, %v1932_v14  ;;  %v4212_v4 = vmul.f32 %v5161_v23, %v4173_v37  ;;  %v4216_v10 = vmul.f32 %v5163_v38, %v4173_v37  ;;  %v5204_v14 = vld [vmem:[#allocation40_spill] sm:$0xff]  ;;  %v1019_v8 = vrot.slane %v4160_v5, 1 }
 0x243   : > { %5197 = vst [vmem:[#allocation94_spill] sm:$0xff] %v4193_v26  ;;  %v4220_v21 = vmul.f32 %v5161_v23, %v4179_v11  ;;  %v4223_v62 = vadd.f32 %v3988_v29, %v1354_v44  ;;  %v4227_v63 = vmul.f32 %v5163_v38, %v4179_v11  ;;  %v1626_v0 = vrot.slane %v4202_v33, 7 }
 0x244   : > { %5200 = vst [vmem:[#allocation38_spill] sm:$0xff] %v4212_v4  ;;  %5201 = vst [vmem:[#allocation39_spill] sm:$0xff] %v4216_v10  ;;  %v4232_v1 = vadd.f32 %v3425_v2, %v5204_v14  ;;  %v4235_v46 = vadd.f32 %v3988_v29, %v1356_v55  ;;  %v1165_v45 = vmul.f32 %v3445_v18, %v992_v57  ;;  %v5015_v48 = vrot.slane %v4206_v51, 7 }
 0x245   : > { %5202 = vst [vmem:[#allocation95_spill] sm:$0xff] %v4220_v21  ;;  %5203 = vst [vmem:[#allocation96_spill] sm:$0xff] %v4227_v63  ;;  %v1271_v20 = vmul.f32 %v3453_v24, %v992_v57  ;;  %v1185_v50 = vmul.f32 %v3429_v6, %v4160_v5  ;;  %v1291_v42 = vmul.f32 %v3431_v7, %v4160_v5  ;;  %v1660_v2 = vsel %vm933_vm6, 0.0, %v1626_v0  ;;  %v5212_v21 = vld [vmem:[#allocation43_spill] sm:$0xff] }
 0x246   : > { %5205 = vst [vmem:[#allocation40_spill] sm:$0xff] %v4235_v46  ;;  %v1832_v47 = vmul.f32 %v3457_v27, %v1660_v2  ;;  %v1938_v32 = vmul.f32 %v3464_v31, %v1660_v2  ;;  %v991_v34 = vsel %vm933_vm6, 0.0, %v5015_v48  ;;  %v746_v44 = vadd.f32 %v4254_v15, %v5206_v36 }
 0x247   : > { %v1686_v5 = vrot.slane %v4202_v33, 1  ;;  %v1852_v58 = vmul.f32 %v3441_v13, %v4202_v33  ;;  %v1958_v40 = vmul.f32 %v3447_v19, %v4202_v33  ;;  %v5016_v55 = vrot.slane %v4232_v1, 7 }
 0x248   : > { %v1201_v35 = vadd.f32 %v1185_v50, %v1165_v45  ;;  %v1307_v22 = vadd.f32 %v1291_v42, %v1271_v20  ;;  %v1073_v59 = vmul.f32 %v3443_v17, %v991_v34  ;;  %v1163_v57 = vmul.f32 %v3445_v18, %v991_v34 }
 0x249   : > { %v1016_v56 = vrot.slane %v4206_v51, 1  ;;  %v1093_v14 = vmul.f32 %v5207_v39, %v4206_v51  ;;  %v1183_v2 = vmul.f32 %v3429_v6, %v4206_v51  ;;  %v1289_v36 = vmul.f32 %v3431_v7, %v4206_v51 }
 0x24a   : > { %v4273_v33 = vadd.f32 %v1852_v58, %v1832_v47  ;;  %v4275_v48 = vadd.f32 %v1958_v40, %v1938_v32  ;;  %v1269_v45 = vmul.f32 %v3453_v24, %v991_v34  ;;  %v4282_v50 = vsel %vm933_vm6, 0.0, %v5016_v55  ;;  %v4294_v34 = vld [vmem:[%s5071_s22] ss:$0 sm:$0xff]  ;;  %v5210_v58 = vld [vmem:[#allocation42_spill] sm:$0xff] }
 0x24b   : > { %v4286_v42 = vmul.f32 %v3433_v9, %v4232_v1  ;;  %v959_v4 = vrot.slane %v746_v44, 7  ;;  %v1020_v10 = vrot.slane %v746_v44, 1  ;;  %v4288_v49 = vadd.f32 %v1093_v14, %v1073_v59  ;;  %v5211_v14 = vld [vmem:[#allocation19_spill] sm:$0xff] }
 0x24c   : > { %5208 = vst [vmem:[#allocation41_spill] sm:$0xff] %v4273_v33  ;;  %5209 = vst [vmem:[#allocation17_spill] sm:$0xff] %v4275_v48  ;;  %v1199_v47 = vadd.f32 %v1183_v2, %v1163_v57  ;;  %v1186_v32 = vmul.f32 %v3429_v6, %v746_v44  ;;  %v1491_v40 = vadd.f32 %v4294_v34, %v5210_v58 }
 0x24d   : > { %v960_v20 = vsel %vm933_vm6, %v958_v12, %v959_v4  ;;  %v1021_v55 = vsel %vm994_vm7, %v1019_v8, %v1020_v10  ;;  %v1053_v33 = vsel %vm994_vm7, %v1020_v10, 0.0  ;;  %v1292_v59 = vmul.f32 %v3431_v7, %v746_v44 }
 0x24e   : > { %v1166_v57 = vmul.f32 %v3445_v18, %v960_v20  ;;  %v1221_v2 = vmul.f32 %v5211_v14, %v1021_v55  ;;  %v1272_v48 = vmul.f32 %v3453_v24, %v960_v20  ;;  %v738_v30 = vadd.f32 %v4254_v15, %v5212_v21 }
 0x24f   : > { %v1222_v46 = vmul.f32 %v5211_v14, %v1053_v33  ;;  %v1327_v58 = vmul.f32 %v3683_v54, %v1021_v55  ;;  %v1627_v12 = vrot.slane %v1491_v40, 7  ;;  %v1687_v4 = vrot.slane %v1491_v40, 1 }
 0x250   : > { %v1202_v8 = vadd.f32 %v1186_v32, %v1166_v57  ;;  %v4309_v41 = vadd.f32 %v1221_v2, %v1201_v35  ;;  %v1308_v10 = vadd.f32 %v1292_v59, %v1272_v48  ;;  %v1328_v44 = vmul.f32 %v3683_v54, %v1053_v33 }
 0x251   : > { %v1343_v37 = vadd.f32 %v1327_v58, %v1307_v22  ;;  %v1628_v26 = vsel %vm933_vm6, %v1626_v0, %v1627_v12  ;;  %v4314_v20 = vsel %vm994_vm7, %v1686_v5, %v1687_v4  ;;  %v1720_v21 = vsel %vm994_vm7, %v1687_v4, 0.0 }
 0x252   : > { %v4317_v63 = vadd.f32 %v1222_v46, %v1202_v8  ;;  %v1344_v61 = vadd.f32 %v1328_v44, %v1308_v10  ;;  %v1833_v55 = vmul.f32 %v3457_v27, %v1628_v26  ;;  %v1853_v35 = vmul.f32 %v3441_v13, %v1491_v40  ;;  %v4330_v46 = vld [vmem:[%s5068_s10 + $0x8] ss:$0 sm:$0xff]  ;;  %s4874_s10 = scalar_lea.hbm %s5314_s3, %s2489_s9 }
 0x253   : > { %v1305_v32 = vadd.f32 %v1289_v36, %v1269_v45  ;;  %v4323_v48 = vmul.f32 %v3455_v25, %v4282_v50  ;;  %v1939_v0 = vmul.f32 %v3464_v31, %v1628_v26  ;;  %v1959_v5 = vmul.f32 %v3447_v19, %v1491_v40 }
 0x254   : > { %v1869_v22 = vadd.f32 %v1853_v35, %v1833_v55  ;;  %v1889_v33 = vmul.f32 %v5163_v38, %v1720_v21  ;;  %v956_v59 = vrot.slane %v738_v30, 7  ;;  %v1017_v57 = vrot.slane %v738_v30, 1 }
 0x255   : > { %v4335_v36 = vmul.f32 %v3457_v27, %v4282_v50  ;;  %v4339_v45 = vmul.f32 %v3441_v13, %v4232_v1  ;;  %v1975_v26 = vadd.f32 %v1959_v5, %v1939_v0  ;;  %v1995_v40 = vmul.f32 %v4330_v46, %v1720_v21 }
 0x256   : > { %v4343_v2 = vadd.f32 %v1889_v33, %v1869_v22  ;;  %v5214_v58 = vrot.slane %v4206_v51, 7  ;;  %v1018_v4 = vsel %vm994_vm7, %v1016_v56, %v1017_v57  ;;  %v1052_v8 = vsel %vm994_vm7, %v1017_v57, 0.0 }
 0x257   : > { %v4350_v10 = vadd.f32 %v1995_v40, %v1975_v26  ;;  %v1094_v55 = vmul.f32 %v5207_v39, %v738_v30  ;;  %v1184_v21 = vmul.f32 %v3429_v6, %v738_v30  ;;  %v1219_v0 = vmul.f32 %v5211_v14, %v1018_v4 }
 0x258   : > { %5213 = vst [vmem:[#allocation42_spill] sm:$0xff] %v4343_v2  ;;  %v957_v12 = vsel %vm933_vm6, %v5214_v58, %v956_v59  ;;  %v1290_v5 = vmul.f32 %v3431_v7, %v738_v30  ;;  %v1220_v22 = vmul.f32 %v5211_v14, %v1052_v8  ;;  %v1325_v33 = vmul.f32 %v3683_v54, %v1018_v4  ;;  %v5216_v59 = vld [vmem:[#allocation44_spill] sm:$0xff] }
 0x259   : > { %5215 = vst [vmem:[#allocation19_spill] sm:$0xff] %v4350_v10  ;;  %v1074_v44 = vmul.f32 %v3443_v17, %v957_v12  ;;  %v1164_v35 = vmul.f32 %v3445_v18, %v957_v12  ;;  %v1270_v51 = vmul.f32 %v3453_v24, %v957_v12  ;;  %v4363_v57 = vadd.f32 %v4294_v34, %v5216_v59 }
 0x25a   : > { %v1235_v18 = vadd.f32 %v1219_v0, %v1199_v47  ;;  %v1326_v40 = vmul.f32 %v3683_v54, %v1052_v8  ;;  %v4372_v30 = vmul.f32 %v3464_v31, %v4282_v50  ;;  %v1341_v14 = vadd.f32 %v1325_v33, %v1305_v32  ;;  %v5221_v33 = vld [vmem:[#allocation89_spill] sm:$0xff] }
 0x25b   : > { %v1110_v56 = vadd.f32 %v1094_v55, %v1074_v44  ;;  %v1200_v6 = vadd.f32 %v1184_v21, %v1164_v35  ;;  %v1306_v26 = vadd.f32 %v1290_v5, %v1270_v51  ;;  %v1624_v58 = vrot.slane %v4363_v57, 7  ;;  %v5217_v55 = vld [vmem:[#allocation29_spill] sm:$0xff]  ;;  %v5218_v35 = vld [vmem:[#allocation47_spill] sm:$0xff] }
 0x25c   : > { %v5019_v12 = vrot.slane %v4363_v57, 1  ;;  %v1251_v21 = vadd.f32 %v1235_v18, %v5217_v55  ;;  %v823_v54 = vadd.f32 %v4254_v15, %v5218_v35  ;;  %v4384_v0 = vadd.f32 %v1341_v14, %v4147_v3 }
 0x25d   : > { %v1236_v44 = vadd.f32 %v1220_v22, %v1200_v6  ;;  %v1342_v47 = vadd.f32 %v1326_v40, %v1306_v26  ;;  %v5219_v50 = vrot.slane %v4232_v1, 7  ;;  %v5220_v51 = vrot.slane %v4232_v1, 1 }
 0x25e   : > { %v1761_v22 = vmul.f32 %v3433_v9, %v4363_v57  ;;  %v4403_v6 = vadd.f32 %v1343_v37, %v1251_v21  ;;  %v4408_v26 = vmul.f32 %v3447_v19, %v4232_v1  ;;  %v1851_v14 = vmul.f32 %v3441_v13, %v4363_v57  ;;  %v5226_v13 = vld [vmem:[#allocation22_spill] sm:$0xff] }
 0x25f   : > { %v1625_v32 = vsel %vm933_vm6, %v5219_v50, %v1624_v58  ;;  %v4394_v5 = vsel %vm994_vm7, %v5220_v51, %v5019_v12  ;;  %v1252_v59 = vadd.f32 %v1236_v44, %v5221_v33  ;;  %v4401_v3 = vadd.f32 %v1342_v47, %v4163_v53  ;;  %v5222_v44 = vld [vmem:[#allocation18_spill] sm:$0xff]  ;;  %v5227_v50 = vld [vmem:[#allocation52_spill] sm:$0xff]  ;;  %v5229_v33 = vld [vmem:[#allocation55_spill] sm:$0xff] }
 0x260   : > { %v1741_v18 = vmul.f32 %v3455_v25, %v1625_v32  ;;  %v1831_v40 = vmul.f32 %v3457_v27, %v1625_v32  ;;  %v1937_v58 = vmul.f32 %v3464_v31, %v1625_v32  ;;  %v1129_v55 = vmul.f32 %v5222_v44, %v1018_v4  ;;  %v5225_v27 = vld [vmem:[#allocation49_spill] sm:$0xff] }
 0x261   : > { %v4416_v53 = vadd.f32 %v1344_v61, %v1252_v59  ;;  %v1957_v21 = vmul.f32 %v3447_v19, %v4363_v57  ;;  %v4424_v1 = vstv %s577_s5  ;;  %v826_v35 = vadd.f32 %v4254_v15, %v5225_v27  ;;  %v5231_v27 = vld [vmem:[#allocation61_spill] sm:$0xff] }
 0x262   : > { %v4418_v37 = vadd.f32 %v1761_v22, %v1741_v18  ;;  %v4422_v47 = vadd.f32 %v1851_v14, %v1831_v40  ;;  %v1331_v32 = vadd.f32 %v5227_v50, %v5226_v13  ;;  %v1130_v51 = vmul.f32 %v5222_v44, %v1052_v8  ;;  %v5228_v22 = vld [vmem:[#allocation30_spill] sm:$0xff]  ;;  %v5230_v40 = vld [vmem:[#allocation60_spill] sm:$0xff] }
 0x263   : > { %v4431_v4 = vadd.f32 %v1957_v21, %v1937_v58  ;;  %v830_v61 = vmul.f32 %v4424_v1, %v823_v54  ;;  %v1332_v59 = vadd.f32 %v5229_v33, %v5228_v22  ;;  %v831_v18 = vmul.f32 %v4424_v1, %v826_v35 }
 0x264   : > { %5223 = vst [vmem:[#allocation43_spill] sm:$0xff] %v4418_v37  ;;  %5224 = vst [vmem:[#allocation44_spill] sm:$0xff] %v4422_v47  ;;  %v902_v14 = vadd.f32 %v4254_v15, %v5230_v40  ;;  %v4439_v12 = vstv %s580_s14  ;;  %v905_v2 = vadd.f32 %v4254_v15, %v5231_v27  ;;  %v1145_v58 = vadd.f32 %v1129_v55, %v4288_v49  ;;  %s5309_s14 = sld [smem:[#allocation109_spill]] }
 0x265   : > { %v934_v13 = vrot.slane %v830_v61, 7  ;;  %v995_v50 = vrot.slane %v830_v61, 1  ;;  %v1079_v8 = vmul.f32 %v5207_v39, %v830_v61  ;;  %v935_v54 = vrot.slane %v831_v18, 7 }
 0x266   : > { %v996_v21 = vrot.slane %v831_v18, 1  ;;  %v1080_v22 = vmul.f32 %v5207_v39, %v831_v18  ;;  %v909_v35 = vmul.f32 %v4439_v12, %v902_v14  ;;  %v910_v40 = vmul.f32 %v4439_v12, %v905_v2 }
 0x267   : > { %v984_v33 = vsel %vm933_vm6, 0.0, %v934_v13  ;;  %v1146_v37 = vadd.f32 %v1130_v51, %v1110_v56  ;;  %v1253_v10 = vadd.f32 %v4309_v41, %v1145_v58  ;;  %v936_v27 = vsel %vm933_vm6, %v934_v13, %v935_v54 }
 0x268   : > { %v1059_v15 = vmul.f32 %v3443_v17, %v984_v33  ;;  %v997_v61 = vsel %vm994_vm7, %v995_v50, %v996_v21  ;;  %v1045_v49 = vsel %vm994_vm7, %v996_v21, 0.0  ;;  %v1060_v55 = vmul.f32 %v3443_v17, %v936_v27 }
 0x269   : > { %v1115_v39 = vmul.f32 %v5222_v44, %v997_v61  ;;  %v1116_v18 = vmul.f32 %v5222_v44, %v1045_v49  ;;  %v961_v14 = vrot.slane %v909_v35, 7  ;;  %v1022_v2 = vrot.slane %v909_v35, 1  ;;  %v5233_v49 = vld [vmem:[#allocation46_spill] sm:$0xff] }
 0x26a   : > { %v1095_v47 = vadd.f32 %v1079_v8, %v1059_v15  ;;  %v1293_v56 = vmul.f32 %v3431_v7, %v909_v35  ;;  %v962_v41 = vrot.slane %v910_v40, 7  ;;  %v1096_v51 = vadd.f32 %v1080_v22, %v1060_v55  ;;  %v5232_v22 = vld [vmem:[#allocation45_spill] sm:$0xff] }
 0x26b   : > { %v993_v58 = vsel %vm933_vm6, 0.0, %v961_v14  ;;  %v1023_v13 = vrot.slane %v910_v40, 1  ;;  %v1254_v50 = vadd.f32 %v4317_v63, %v1146_v37  ;;  %v1294_v33 = vmul.f32 %v3431_v7, %v910_v40  ;;  %v2782_v63 = vld [vmem:[%s5067_s13 + $0x8] ss:$0 sm:$0xff] }
 0x26c   : > { %v1131_v54 = vadd.f32 %v1115_v39, %v1095_v47  ;;  %v1273_v21 = vmul.f32 %v3453_v24, %v993_v58  ;;  %v963_v17 = vsel %vm933_vm6, %v961_v14, %v962_v41  ;;  %v1132_v44 = vadd.f32 %v1116_v18, %v1096_v51  ;;  %v5234_v7 = vld [vmem:[#allocation65_spill] sm:$0xff]  ;;  %v5235_v18 = vld [vmem:[#allocation66_spill] sm:$0xff] }
 0x26d   : > { %v1024_v8 = vsel %vm994_vm7, %v1022_v2, %v1023_v13  ;;  %v1054_v15 = vsel %vm994_vm7, %v1023_v13, 0.0  ;;  %v1274_v35 = vmul.f32 %v3453_v24, %v963_v17  ;;  %v1529_v40 = vadd.f32 %v4294_v34, %v5234_v7  ;;  %v5236_v41 = vld [vmem:[#allocation70_spill] sm:$0xff]  ;;  %v5237_v51 = vld [vmem:[#allocation73_spill] sm:$0xff] }
 0x26e   : > { %v1239_v27 = vadd.f32 %v5232_v22, %v1131_v54  ;;  %v1309_v61 = vadd.f32 %v1293_v56, %v1273_v21  ;;  %v1329_v37 = vmul.f32 %v2782_v63, %v1024_v8  ;;  %v1330_v47 = vmul.f32 %v2782_v63, %v1054_v15 }
 0x26f   : > { %v1240_v55 = vadd.f32 %v5233_v49, %v1132_v44  ;;  %v1310_v39 = vadd.f32 %v1294_v33, %v1274_v35  ;;  %v1532_v14 = vadd.f32 %v4294_v34, %v5235_v18  ;;  %v1572_v56 = vadd.f32 %v4294_v34, %v5236_v41  ;;  %v5240_v41 = vld [vmem:[#allocation59_spill] sm:$0xff] }
 0x270   : > { %v1347_v2 = vadd.f32 %v1331_v32, %v1239_v27  ;;  %v1345_v24 = vadd.f32 %v1329_v37, %v1309_v61  ;;  %v1575_v58 = vadd.f32 %v4294_v34, %v5237_v51  ;;  %v1535_v21 = vmul.f32 %v1529_v40, %v4424_v1  ;;  %v5241_v51 = vld [vmem:[#allocation33_spill] sm:$0xff] }
 0x271   : > { %v1348_v13 = vadd.f32 %v1332_v59, %v1240_v55  ;;  %v1346_v54 = vadd.f32 %v1330_v47, %v1310_v39  ;;  %v1536_v17 = vmul.f32 %v1532_v14, %v4424_v1  ;;  %v4483_v33 = vadd.f32 %v4286_v42, %v4323_v48 }
 0x272   : > { %v4487_v32 = vadd.f32 %v4339_v45, %v4335_v36  ;;  %v4491_v44 = vadd.f32 %v4408_v26, %v4372_v30  ;;  %v4493_v8 = vadd.f32 %v1345_v24, %v1253_v10  ;;  %v4497_v34 = vmul.f32 %v5163_v38, %v4314_v20 }
 0x273   : > { %v5238_v1 = vrot.slane %v4363_v57, 1  ;;  %v4504_v42 = vadd.f32 %v1346_v54, %v1254_v50  ;;  %v1602_v48 = vrot.slane %v1535_v21, 7  ;;  %v1662_v36 = vrot.slane %v1535_v21, 1 }
 0x274   : > { %v1603_v45 = vrot.slane %v1536_v17, 7  ;;  %v1663_v15 = vrot.slane %v1536_v17, 1  ;;  %v4507_v30 = vmul.f32 %v1572_v56, %v4439_v12  ;;  %v4511_v10 = vmul.f32 %v4330_v46, %v4314_v20 }
 0x275   : > { %v4502_v59 = vsel %vm994_vm7, %v5238_v1, 0.0  ;;  %v1652_v26 = vsel %vm933_vm6, 0.0, %v1602_v48  ;;  %v1746_v57 = vmul.f32 %v3433_v9, %v1535_v21  ;;  %v1579_v35 = vmul.f32 %v1575_v58, %v4439_v12 }
 0x276   : > { %v1726_v50 = vmul.f32 %v3455_v25, %v1652_v26  ;;  %v1604_v22 = vsel %vm933_vm6, %v1602_v48, %v1603_v45  ;;  %v1664_v27 = vsel %vm994_vm7, %v1662_v36, %v1663_v15  ;;  %v1712_v61 = vsel %vm994_vm7, %v1663_v15, 0.0  ;;  %v5242_v15 = vld [vmem:[#allocation54_spill] sm:$0xff] }
 0x277   : > { %v4522_v63 = vmul.f32 %v5161_v23, %v4502_v59  ;;  %v1727_v20 = vmul.f32 %v3455_v25, %v1604_v22  ;;  %v1747_v37 = vmul.f32 %v3433_v9, %v1536_v17  ;;  %v1782_v47 = vmul.f32 %v5161_v23, %v1664_v27  ;;  %v5239_v9 = vld [vmem:[#allocation51_spill] sm:$0xff]  ;;  %v5244_v22 = vld [vmem:[#allocation25_spill] sm:$0xff] }
 0x278   : > { %v4528_v12 = vadd.f32 %v3988_v29, %v1347_v2  ;;  %v1762_v49 = vadd.f32 %v1746_v57, %v1726_v50  ;;  %v1783_v55 = vmul.f32 %v5161_v23, %v1712_v61  ;;  %v1629_v39 = vrot.slane %v4507_v30, 7  ;;  %v5243_v57 = vld [vmem:[#allocation48_spill] sm:$0xff] }
 0x279   : > { %v1763_v7 = vadd.f32 %v1747_v37, %v1727_v20  ;;  %v1689_v40 = vrot.slane %v4507_v30, 1  ;;  %v1630_v18 = vrot.slane %v1579_v35, 7  ;;  %v1690_v14 = vrot.slane %v1579_v35, 1 }
 0x27a   : > { %v4534_v24 = vadd.f32 %v3988_v29, %v1348_v13  ;;  %v1798_v25 = vadd.f32 %v1782_v47, %v1762_v49  ;;  %v1890_v56 = vadd.f32 %v5240_v41, %v5239_v9  ;;  %v1982_v2 = vmul.f32 %v4330_v46, %v5241_v51  ;;  %v5245_v49 = vld [vmem:[#allocation36_spill] sm:$0xff]  ;;  %v5248_v9 = vld [vmem:[#allocation58_spill] sm:$0xff] }
 0x27b   : > { %v1799_v58 = vadd.f32 %v1783_v55, %v1763_v7  ;;  %v1631_v54 = vsel %vm933_vm6, %v1629_v39, %v1630_v18  ;;  %v4542_v21 = vsel %vm994_vm7, %v1689_v40, %v1690_v14  ;;  %v1721_v17 = vsel %vm994_vm7, %v1690_v14, 0.0 }
 0x27c   : > { %v4547_v1 = vmul.f32 %v5163_v38, %v4502_v59  ;;  %v1941_v13 = vmul.f32 %v3464_v31, %v1631_v54  ;;  %v1961_v48 = vmul.f32 %v3447_v19, %v1579_v35  ;;  %v1906_v36 = vadd.f32 %v1890_v56, %v1798_v25  ;;  %v5247_v25 = vld [vmem:[#allocation50_spill] sm:$0xff]  ;;  %v5251_v54 = vld [vmem:[#allocation57_spill] sm:$0xff] }
 0x27d   : > { %v4553_v45 = vadd.f32 %v3988_v29, %v4401_v3  ;;  %v1907_v26 = vadd.f32 %v5242_v15, %v1799_v58  ;;  %v1983_v50 = vmul.f32 %v4330_v46, %v5243_v57  ;;  %v1998_v27 = vadd.f32 %v1982_v2, %v5244_v22  ;;  %v5249_v2 = vld [vmem:[#allocation75_spill] sm:$0xff] }
 0x27e   : > { %v1977_v61 = vadd.f32 %v1961_v48, %v1941_v13  ;;  %v1997_v20 = vmul.f32 %v4330_v46, %v1721_v17  ;;  %v2069_v37 = vmul.f32 0.044715, %v4528_v12  ;;  %v2070_v47 = vmul.f32 0.044715, %v4534_v24  ;;  %v5253_v57 = vld [vmem:[#allocation79_spill] sm:$0xff] }
 0x27f   : > { %v4564_v35 = vadd.f32 %v3988_v29, %v4416_v53  ;;  %v1661_v3 = vsel %vm933_vm6, 0.0, %v1629_v39  ;;  %v1999_v55 = vadd.f32 %v1983_v50, %v5245_v49  ;;  %v2014_v7 = vadd.f32 %v1998_v27, %v1906_v36  ;;  %v5250_v39 = vld [vmem:[#allocation35_spill] sm:$0xff]  ;;  %v5252_v36 = vld [vmem:[#allocation77_spill] sm:$0xff]  ;;  %v5255_v27 = vld [vmem:[#allocation24_spill] sm:$0xff] }
 0x280   : > { %v4568_v40 = vadd.f32 %v1997_v20, %v1977_v61  ;;  %v2085_v18 = vmul.f32 %v2069_v37, %v4528_v12  ;;  %v2086_v14 = vmul.f32 %v2070_v47, %v4534_v24  ;;  %v1800_v41 = vadd.f32 %v5248_v9, %v5247_v25  ;;  %v5256_v20 = vld [vmem:[#allocation53_spill] sm:$0xff] }
 0x281   : > { %v2015_v56 = vadd.f32 %v1999_v55, %v1907_v26  ;;  %v4576_v58 = vadd.f32 %v3988_v29, %v5249_v2  ;;  %v1876_v53 = vmul.f32 %v5163_v38, %v5241_v51  ;;  %v1893_v17 = vadd.f32 %v5251_v54, %v5250_v39  ;;  %v5257_v55 = vld [vmem:[#allocation84_spill] sm:$0xff] }
 0x282   : > { %5246 = vst [vmem:[#allocation29_spill] sm:$0xff] %v4568_v40  ;;  %v2101_v13 = vmul.f32 %v2085_v18, %v4528_v12  ;;  %v2102_v48 = vmul.f32 %v2086_v14, %v4534_v24  ;;  %v1984_v15 = vmul.f32 %v4330_v46, %v5252_v36  ;;  %v1985_v26 = vmul.f32 %v4330_v46, %v5253_v57  ;;  %v5258_v14 = vld [vmem:[#allocation83_spill] sm:$0xff]  ;;  %v5262_v57 = vld [vmem:[#allocation34_spill] sm:$0xff] }
 0x283   : > { %v4590_v50 = vadd.f32 %v3988_v29, %v4493_v8  ;;  %v1940_v22 = vmul.f32 %v3464_v31, %v1661_v3  ;;  %v1892_v61 = vadd.f32 %v1876_v53, %v5255_v27  ;;  %v1909_v37 = vadd.f32 %v1893_v17, %v5256_v20  ;;  %v5260_v31 = vld [vmem:[#allocation85_spill] sm:$0xff]  ;;  %v5264_v20 = vld [vmem:[#allocation76_spill] sm:$0xff] }
 0x284   : > { %v2117_v47 = vadd.f32 %v2101_v13, %v4528_v12  ;;  %v2118_v49 = vadd.f32 %v2102_v48, %v4534_v24  ;;  %v2000_v18 = vadd.f32 %v1984_v15, %v5257_v55  ;;  %v2001_v25 = vadd.f32 %v1985_v26, %v5258_v14  ;;  %v5263_v26 = vld [vmem:[#allocation56_spill] sm:$0xff]  ;;  %v5267_v55 = vld [vmem:[#allocation81_spill] sm:$0xff] }
 0x285   : > { %5254 = vst [vmem:[#allocation47_spill] sm:$0xff] %v4590_v50  ;;  %v4601_v9 = vadd.f32 %v3988_v29, %v4504_v42  ;;  %v1908_v8 = vadd.f32 %v1892_v61, %v1800_v41  ;;  %v2071_v2 = vmul.f32 0.044715, %v4576_v58  ;;  %v2072_v3 = vmul.f32 0.044715, %v5260_v31 }
 0x286   : > { %v1960_v53 = vmul.f32 %v3447_v19, %v4507_v30  ;;  %v2133_v39 = vmul.f32 0.7978846, %v2117_v47  ;;  %v2134_v54 = vmul.f32 0.7978846, %v2118_v49  ;;  %v4607_v17 = vadd.f32 %v2001_v25, %v1909_v37  ;;  %v5265_v47 = vld [vmem:[#allocation23_spill] sm:$0xff]  ;;  %v5269_v25 = vld [vmem:[#allocation69_spill] sm:$0xff] }
 0x287   : > { %5259 = vst [vmem:[#allocation89_spill] sm:$0xff] %v4601_v9  ;;  %v4609_v13 = vadd.f32 %v2000_v18, %v1908_v8  ;;  %v2087_v48 = vmul.f32 %v2071_v2, %v4576_v58  ;;  %v2088_v15 = vmul.f32 %v2072_v3, %v5260_v31  ;;  %v1786_v42 = vmul.f32 %v5161_v23, %v5241_v51  ;;  %v5268_v18 = vld [vmem:[#allocation87_spill] sm:$0xff] }
 0x288   : > { %v4615_v41 = vadd.f32 %v1960_v53, %v1940_v22  ;;  %2748 = vtanh.f32 %v2133_v39  ;;  %v1803_v27 = vadd.f32 %v5263_v26, %v5262_v57  ;;  %v1878_v19 = vmul.f32 %v5163_v38, %v5252_v36  ;;  %v5266_v22 = vld [vmem:[#allocation64_spill] sm:$0xff]  ;;  %v5270_v39 = vld [vmem:[#allocation78_spill] sm:$0xff] }
 0x289   : > { %2750 = vtanh.f32 %v2134_v54  ;;  %v2103_v30 = vmul.f32 %v2087_v48, %v4576_v58  ;;  %v2104_v61 = vmul.f32 %v2088_v15, %v5260_v31  ;;  %v4625_v37 = vadd.f32 %v3988_v29, %v5264_v20  ;;  %v4641_v48 = vld [vmem:[%s5271_s8] ss:$0 sm:$0xff]  ;;  %v5272_v26 = vld [vmem:[#allocation26_spill] sm:$0xff]  ;;  %s2457_s8 = sshll.u32 %s557_s28, 2 }
 0x28a   : > { %5261 = vst [vmem:[#allocation18_spill] sm:$0xff] %v4615_v41  ;;  %v1802_v51 = vadd.f32 %v1786_v42, %v5265_v47  ;;  %v1894_v49 = vadd.f32 %v1878_v19, %v5266_v22  ;;  %v1895_v14 = vadd.f32 %v5268_v18, %v5267_v55  ;;  %v1986_v8 = vmul.f32 %v4330_v46, %v5269_v25  ;;  %v5273_v47 = vld [vmem:[#allocation74_spill] sm:$0xff]  ;;  %v5274_v18 = vld [vmem:[#allocation88_spill] sm:$0xff]  ;;  %s559_s5 = scalar_lea.vmem [#allocation7], %s2457_s8 }
 0x28b   : > { %v2053_v2 = vmul.f32 0.5, %v4528_v12  ;;  %v2119_v3 = vadd.f32 %v2103_v30, %v4576_v58  ;;  %v2120_v53 = vadd.f32 %v2104_v61, %v5260_v31  ;;  %v1987_v54 = vmul.f32 %v4330_v46, %v5270_v39 }
 0x28c   : > { %v2054_v15 = vmul.f32 0.5, %v4534_v24  ;;  %v1910_v42 = vadd.f32 %v1894_v49, %v1802_v51  ;;  %v1911_v57 = vadd.f32 %v1895_v14, %v1803_v27  ;;  %v2002_v19 = vadd.f32 %v1986_v8, %v5272_v26  ;;  %v5275_v51 = vld [vmem:[#allocation80_spill] sm:$0xff]  ;;  %v5276_v49 = vld [vmem:[#allocation86_spill] sm:$0xff]  ;;  %v5279_v26 = vld [vmem:[#allocation21_spill] sm:$0xff] }
 0x28d   : > { %v2135_v20 = vmul.f32 0.7978846, %v2119_v3  ;;  %v2136_v12 = vmul.f32 0.7978846, %v2120_v53  ;;  %v2003_v30 = vadd.f32 %v1987_v54, %v5273_v47  ;;  %v2073_v61 = vmul.f32 0.044715, %v4625_v37 }
 0x28e   : > { %v2037_v22 = vadd.f32 %v4641_v48, %v2014_v7  ;;  %v4648_v55 = vadd.f32 %v2002_v19, %v1910_v42  ;;  %v2074_v39 = vmul.f32 0.044715, %v5274_v18  ;;  %v1788_v9 = vmul.f32 %v5161_v23, %v5252_v36  ;;  %v5277_v3 = vld [vmem:[#allocation82_spill] sm:$0xff] }
 0x28f   : > { %2752 = vtanh.f32 %v2135_v20  ;;  %v4653_v24 = vadd.f32 %v2003_v30, %v1911_v57  ;;  %v2089_v27 = vmul.f32 %v2073_v61, %v4625_v37  ;;  %v1805_v14 = vadd.f32 %v5276_v49, %v5275_v51  ;;  %v5278_v57 = vld [vmem:[#allocation72_spill] sm:$0xff] }
 0x290   : > { %v2038_v8 = vadd.f32 %v4641_v48, %v2015_v56  ;;  %2754 = vtanh.f32 %v2136_v12  ;;  %v2090_v7 = vmul.f32 %v2074_v39, %v5274_v18  ;;  %v1804_v53 = vadd.f32 %v1788_v9, %v5277_v3  ;;  %v5280_v39 = vld [vmem:[#allocation63_spill] sm:$0xff] }
 0x291   : > { %v2055_v54 = vmul.f32 0.5, %v4576_v58  ;;  %v2105_v42 = vmul.f32 %v2089_v27, %v4625_v37  ;;  %v1880_v36 = vmul.f32 %v5163_v38, %v5269_v25  ;;  %v1897_v19 = vadd.f32 %v5279_v26, %v5278_v57 }
 0x292   : > { %v2749_v20 = vpop.eup %2748  ;;  %v2106_v47 = vmul.f32 %v2090_v7, %v5274_v18  ;;  %v4670_v56 = vadd.f32 %v3988_v29, %v4156_v43  ;;  %v1988_v9 = vmul.f32 %v4330_v46, %v4152_v28  ;;  %v1989_v58 = vmul.f32 %v4330_v46, %v4179_v11 }
 0x293   : > { %v2751_v12 = vpop.eup %2750  ;;  %v2165_v30 = vadd.f32 1.0, %v2749_v20  ;;  %v2121_v61 = vadd.f32 %v2105_v42, %v4625_v37  ;;  %v1896_v27 = vadd.f32 %v1880_v36, %v5280_v39  ;;  %v1913_v51 = vadd.f32 %v1897_v19, %v1805_v14 }
 0x294   : > { %v2166_v49 = vadd.f32 1.0, %v2751_v12  ;;  %v2122_v7 = vadd.f32 %v2106_v47, %v5274_v18  ;;  %v2004_v43 = vadd.f32 %v1988_v9, %v4208_v52  ;;  %v2005_v3 = vadd.f32 %v1989_v58, %v4197_v60  ;;  %v5281_v9 = vld [vmem:[#allocation71_spill] sm:$0xff]  ;;  %v5282_v58 = vld [vmem:[#allocation20_spill] sm:$0xff] }
 0x295   : > { %v2181_v57 = vmul.f32 %v2165_v30, %v2053_v2  ;;  %v2056_v26 = vmul.f32 0.5, %v5260_v31  ;;  %v2137_v40 = vmul.f32 0.7978846, %v2121_v61  ;;  %v1912_v11 = vadd.f32 %v1896_v27, %v1804_v53  ;;  %v5283_v61 = vld [vmem:[#allocation62_spill] sm:$0xff] }
 0x296   : > { %v2182_v50 = vmul.f32 %v2166_v49, %v2054_v15  ;;  %v2138_v20 = vmul.f32 0.7978846, %v2122_v7  ;;  %v4682_v41 = vadd.f32 %v2005_v3, %v1913_v51  ;;  %v2075_v42 = vmul.f32 0.044715, %v4670_v56  ;;  %v5284_v51 = vld [vmem:[#allocation68_spill] sm:$0xff] }
 0x297   : > { %v2197_v36 = vmul.f32 %v2181_v57, %v2037_v22  ;;  %2756 = vtanh.f32 %v2137_v40  ;;  %v4685_v14 = vadd.f32 %v2004_v43, %v1912_v11  ;;  %v2076_v19 = vmul.f32 0.044715, %v4223_v62  ;;  %v5285_v49 = vld [vmem:[#allocation96_spill] sm:$0xff]  ;;  %v5286_v57 = vld [vmem:[#allocation94_spill] sm:$0xff] }
 0x298   : > { %v2198_v52 = vmul.f32 %v2182_v50, %v2038_v8  ;;  %v2040_v60 = vadd.f32 %v4641_v48, %v4607_v17  ;;  %2758 = vtanh.f32 %v2138_v20  ;;  %v2091_v31 = vmul.f32 %v2075_v42, %v4670_v56  ;;  %v5287_v20 = vld [vmem:[#allocation90_spill] sm:$0xff] }
 0x299   : > { %v2753_v2 = vpop.eup %2752  ;;  %v2039_v15 = vadd.f32 %v4641_v48, %v4609_v13  ;;  %v2092_v53 = vmul.f32 %v2076_v19, %v4223_v62  ;;  %v4696_v40 = vadd.f32 %v3988_v29, %v4168_v16  ;;  %v1790_v22 = vmul.f32 %v5161_v23, %v5269_v25 }
 0x29a   : > { %v2755_v50 = vpop.eup %2754  ;;  %v2213_v8 = vpack.c.bf16 %v2198_v52, %v2197_v36  ;;  %v2167_v47 = vadd.f32 1.0, %v2753_v2  ;;  %v2107_v17 = vmul.f32 %v2091_v31, %v4670_v56  ;;  %v1807_v12 = vadd.f32 %v5282_v58, %v5281_v9  ;;  %v5291_v9 = vld [vmem:[#allocation32_spill] sm:$0xff] }
 0x29b   : > { %v2168_v30 = vadd.f32 1.0, %v2755_v50  ;;  %v2108_v13 = vmul.f32 %v2092_v53, %v4223_v62  ;;  %v1806_v39 = vadd.f32 %v1790_v22, %v5283_v61  ;;  %v1882_v29 = vmul.f32 %v5163_v38, %v4152_v28 }
 0x29c   : > { %v2233_v16 = vsel %vm2228_vm8, %v2213_v8, 0  ;;  %v2183_v27 = vmul.f32 %v2167_v47, %v2055_v54  ;;  %v2123_v25 = vadd.f32 %v2107_v17, %v4670_v56  ;;  %v1899_v7 = vadd.f32 %v5285_v49, %v5284_v51  ;;  %v5289_v54 = vld [vmem:[#allocation67_spill] sm:$0xff]  ;;  %v5290_v8 = vld [vmem:[#allocation92_spill] sm:$0xff] }
 0x29d   : > { %2588 = vmatpush3.bf16.xpose.msra.mxu1 %v2233_v16  ;;  %v2184_v43 = vmul.f32 %v2168_v30, %v2056_v26  ;;  %v2124_v3 = vadd.f32 %v2108_v13, %v4223_v62  ;;  %v1898_v11 = vadd.f32 %v1882_v29, %v5286_v57  ;;  %v1990_v42 = vmul.f32 %v4330_v46, %v5287_v20  ;;  %v2783_v51 = vld [vmem:[%s5165_s12] ss:$0 sm:$0xff] }
 0x29e   : > { %v5288_v36 = vmov 0.0   ;;  %v2199_v19 = vmul.f32 %v2183_v27, %v2039_v15  ;;  %v2139_v52 = vmul.f32 0.7978846, %v2123_v25  ;;  %v1915_v31 = vadd.f32 %v1899_v7, %v1807_v12 }
 0x29f   : > { %2589 = vmatprep.subr.bf16.mxu1 %v5288_v36  ;;  %v1991_v2 = vmul.f32 %v4330_v46, %v5289_v54  ;;  %v2200_v53 = vmul.f32 %v2184_v43, %v2040_v60  ;;  %v2140_v22 = vmul.f32 0.7978846, %v2124_v3  ;;  %v1914_v50 = vadd.f32 %v1898_v11, %v1806_v39  ;;  %v5293_v11 = vld [vmem:[#allocation37_spill] sm:$0xff] }
 0x2a0   : > { %v2006_v26 = vadd.f32 %v1990_v42, %v5290_v8  ;;  %v2057_v47 = vmul.f32 0.5, %v4625_v37  ;;  %v2058_v17 = vmul.f32 0.5, %v5274_v18  ;;  %2760 = vtanh.f32 %v2139_v52  ;;  %v5292_v37 = vld [vmem:[#allocation40_spill] sm:$0xff]  ;;  %v5294_v42 = vld [vmem:[#allocation95_spill] sm:$0xff]  ;;  %v5295_v54 = vld [vmem:[#allocation93_spill] sm:$0xff] }
 0x2a1   : > { %v2007_v58 = vadd.f32 %v1991_v2, %v5291_v9  ;;  %v2757_v30 = vpop.eup %2756  ;;  %v2214_v13 = vpack.c.bf16 %v2200_v53, %v2199_v19  ;;  %2762 = vtanh.f32 %v2140_v22  ;;  %v2077_v12 = vmul.f32 0.044715, %v4696_v40  ;;  %v5296_v53 = vld [vmem:[#allocation91_spill] sm:$0xff] }
 0x2a2   : > { %v4722_v15 = vadd.f32 %v2006_v26, %v1914_v50  ;;  %v2759_v61 = vpop.eup %2758  ;;  %v2041_v60 = vadd.f32 %v4641_v48, %v4648_v55  ;;  %v2169_v39 = vadd.f32 1.0, %v2757_v30  ;;  %v2078_v16 = vmul.f32 0.044715, %v5292_v37  ;;  %v5297_v22 = vld [vmem:[#allocation39_spill] sm:$0xff]  ;;  %v5298_v26 = vld [vmem:[#allocation28_spill] sm:$0xff] }
 0x2a3   : > { %v4727_v29 = vadd.f32 %v2007_v58, %v1915_v31  ;;  %v2042_v18 = vadd.f32 %v4641_v48, %v4653_v24  ;;  %v2170_v27 = vadd.f32 1.0, %v2759_v61  ;;  %v2093_v25 = vmul.f32 %v2077_v12, %v4696_v40 }
 0x2a4   : > { %v4737_v49 = vadd.f32 %v2783_v51, %v4384_v0  ;;  %v2236_v55 = vsel %vm2228_vm8, %v2214_v13, 0  ;;  %v2185_v7 = vmul.f32 %v2169_v39, %v2057_v47  ;;  %v2094_v43 = vmul.f32 %v2078_v16, %v5292_v37 }
 0x2a5   : > { %v1792_v3 = vmul.f32 %v5161_v23, %v4152_v28  ;;  %2590 = vmatpush3.bf16.xpose.msra.mxu1 %v2236_v55  ;;  %v2186_v24 = vmul.f32 %v2170_v27, %v2058_v17  ;;  %v2109_v57 = vmul.f32 %v2093_v25, %v4696_v40  ;;  %v1809_v19 = vadd.f32 %v5294_v42, %v5293_v11 }
 0x2a6   : > { %v1884_v52 = vmul.f32 %v5163_v38, %v5287_v20  ;;  %2591 = vmatprep.subr.bf16.mxu1 %v5288_v36  ;;  %v2201_v0 = vmul.f32 %v2185_v7, %v2041_v60  ;;  %v2110_v31 = vmul.f32 %v2094_v43, %v5292_v37  ;;  %v1901_v28 = vadd.f32 %v5297_v22, %v5296_v53 }
 0x2a7   : > { %v1808_v2 = vadd.f32 %v1792_v3, %v5295_v54  ;;  %v2202_v50 = vmul.f32 %v2186_v24, %v2042_v18  ;;  %v2125_v8 = vadd.f32 %v2109_v57, %v4696_v40  ;;  %v1992_v17 = vmul.f32 %v4330_v46, %v4394_v5  ;;  %v5299_v54 = vld [vmem:[#allocation31_spill] sm:$0xff] }
 0x2a8   : > { %v1900_v47 = vadd.f32 %v1884_v52, %v5298_v26  ;;  %v2059_v9 = vmul.f32 0.5, %v4670_v56  ;;  %v2126_v58 = vadd.f32 %v2110_v31, %v5292_v37  ;;  %v1917_v30 = vadd.f32 %v1901_v28, %v1809_v19  ;;  %v5302_v26 = vld [vmem:[#allocation44_spill] sm:$0xff] }
 0x2a9   : > { %v1993_v13 = vmul.f32 %v4330_v46, %v4502_v59  ;;  %v2215_v12 = vpack.c.bf16 %v2202_v50, %v2201_v0  ;;  %v2141_v61 = vmul.f32 0.7978846, %v2125_v8  ;;  %v2008_v39 = vadd.f32 %v1992_v17, %v4491_v44  ;;  %v5301_v50 = vld [vmem:[#allocation27_spill] sm:$0xff]  ;;  %v5303_v17 = vld [vmem:[#allocation17_spill] sm:$0xff] }
 0x2aa   : > { %v1916_v60 = vadd.f32 %v1900_v47, %v1808_v2  ;;  %v2761_v16 = vpop.eup %2760  ;;  %v2060_v18 = vmul.f32 0.5, %v4223_v62  ;;  %v2142_v27 = vmul.f32 0.7978846, %v2126_v58  ;;  %v2079_v55 = vmul.f32 0.044715, %v4737_v49  ;;  %v5300_v2 = vld [vmem:[#allocation38_spill] sm:$0xff] }
 0x2ab   : > { %v2009_v25 = vadd.f32 %v1993_v13, %v4431_v4  ;;  %v2763_v56 = vpop.eup %2762  ;;  %v2239_v7 = vsel %vm2228_vm8, %v2215_v12, 0  ;;  %v2171_v43 = vadd.f32 1.0, %v2761_v16  ;;  %2764 = vtanh.f32 %v2141_v61 }
 0x2ac   : > { %v4766_v3 = vadd.f32 %v2008_v39, %v1916_v60  ;;  %v2172_v59 = vadd.f32 1.0, %v2763_v56  ;;  %2766 = vtanh.f32 %v2142_v27  ;;  %v2080_v44 = vmul.f32 0.044715, %v4553_v45  ;;  %v5304_v39 = vld [vmem:[#allocation19_spill] sm:$0xff] }
 0x2ad   : > { %v4768_v24 = vadd.f32 %v2009_v25, %v1917_v30  ;;  %2592 = vmatpush3.bf16.xpose.msra.mxu1 %v2239_v7  ;;  %v2043_v62 = vadd.f32 %v4641_v48, %v4685_v14  ;;  %v2044_v4 = vadd.f32 %v4641_v48, %v4682_v41  ;;  %v2187_v57 = vmul.f32 %v2171_v43, %v2059_v9 }
 0x2ae   : > { %v2095_v11 = vmul.f32 %v2079_v55, %v4737_v49  ;;  %2593 = vmatprep.subr.bf16.mxu1 %v5288_v36  ;;  %v2188_v42 = vmul.f32 %v2172_v59, %v2060_v18  ;;  %v2096_v19 = vmul.f32 %v2080_v44, %v4553_v45  ;;  %v4779_v52 = vadd.f32 %v2783_v51, %v4403_v6 }
 0x2af   : > { %v1794_v0 = vmul.f32 %v5161_v23, %v5287_v20  ;;  %v2203_v31 = vmul.f32 %v2187_v57, %v2043_v62  ;;  %v1811_v41 = vadd.f32 %v5300_v2, %v5299_v54  ;;  %v1886_v53 = vmul.f32 %v5163_v38, %v4394_v5  ;;  %v5305_v62 = vld [vmem:[#allocation43_spill] sm:$0xff]  ;;  %v5306_v57 = vld [vmem:[#allocation41_spill] sm:$0xff]  ;;  %v5308_v54 = vld [vmem:[#allocation42_spill] sm:$0xff] }
 0x2b0   : > { %v2111_v14 = vmul.f32 %v2095_v11, %v4737_v49  ;;  %v2204_v22 = vmul.f32 %v2188_v42, %v2044_v4  ;;  %v2112_v28 = vmul.f32 %v2096_v19, %v4553_v45  ;;  %v1903_v6 = vadd.f32 %v4547_v1, %v5302_v26  ;;  %v5312_v26 = vld [vmem:[#allocation89_spill] sm:$0xff] }
 0x2b1   : > { %v1810_v8 = vadd.f32 %v1794_v0, %v5301_v50  ;;  %v1996_v20 = vmul.f32 %v4330_v46, %v4542_v21  ;;  %v1902_v47 = vadd.f32 %v1886_v53, %v4487_v32  ;;  %v2010_v9 = vadd.f32 %v4511_v10, %v5303_v17 }
 0x2b2   : > { %v2127_v51 = vadd.f32 %v2111_v14, %v4737_v49  ;;  %v2216_v58 = vpack.c.bf16 %v2204_v22, %v2203_v31  ;;  %v2061_v38 = vmul.f32 0.5, %v4696_v40  ;;  %v2128_v30 = vadd.f32 %v2112_v28, %v4553_v45  ;;  %v5310_v22 = vld [vmem:[#allocation47_spill] sm:$0xff] }
 0x2b3   : > { %v1919_v13 = vadd.f32 %v1903_v6, %v1811_v41  ;;  %v1918_v61 = vadd.f32 %v1902_v47, %v1810_v8  ;;  %v2081_v1 = vmul.f32 0.044715, %v4779_v52  ;;  %v2082_v60 = vmul.f32 0.044715, %v4564_v35 }
 0x2b4   : > { %v2143_v12 = vmul.f32 0.7978846, %v2127_v51  ;;  %v2242_v46 = vsel %vm2228_vm8, %v2216_v58, 0  ;;  %v2144_v21 = vmul.f32 0.7978846, %v2128_v30  ;;  %v1796_v10 = vmul.f32 %v5161_v23, %v4394_v5 }
 0x2b5   : > { %v4804_v32 = vadd.f32 %v5304_v39, %v1919_v13  ;;  %v2765_v16 = vpop.eup %2764  ;;  %2594 = vmatpush3.bf16.xpose.msra.mxu1 %v2242_v46  ;;  %v4808_v40 = vadd.f32 %v2010_v9, %v1918_v61  ;;  %v2097_v18 = vmul.f32 %v2081_v1, %v4779_v52  ;;  %v2098_v27 = vmul.f32 %v2082_v60, %v4564_v35 }
 0x2b6   : > { %2768 = vtanh.f32 %v2143_v12  ;;  %v2767_v25 = vpop.eup %2766  ;;  %2595 = vmatprep.subr.bf16.mxu1 %v5288_v36  ;;  %v2062_v55 = vmul.f32 0.5, %v5292_v37  ;;  %v2173_v56 = vadd.f32 1.0, %v2765_v16  ;;  %v1812_v7 = vadd.f32 %v1796_v10, %v4483_v33  ;;  %v5307_v37 = vld [vmem:[#allocation18_spill] sm:$0xff] }
 0x2b7   : > { %2770 = vtanh.f32 %v2144_v21  ;;  %v2045_v23 = vadd.f32 %v4641_v48, %v4722_v15  ;;  %v2174_v5 = vadd.f32 1.0, %v2767_v25  ;;  %v2113_v43 = vmul.f32 %v2097_v18, %v4779_v52 }
 0x2b8   : > { %v2114_v59 = vmul.f32 %v2098_v27, %v4564_v35  ;;  %v2189_v44 = vmul.f32 %v2173_v56, %v2061_v38  ;;  %v1813_v4 = vadd.f32 %v4522_v63, %v5305_v62  ;;  %v1904_v11 = vadd.f32 %v4497_v34, %v5306_v57  ;;  %v2222_v63 = vld [vmem:[%s5309_s14] sm:$0xf]  ;;  %s2313_s14 = sshll.u32 %s559_s5, 4  ;;  %s4876_s14 = int_to_ptr.vmem [resolvable:$true] %s2313_s14 }
 0x2b9   : > { %v2012_v42 = vadd.f32 %v1996_v20, %v5307_v37  ;;  %v2046_v33 = vadd.f32 %v4641_v48, %v4727_v29  ;;  %v2190_v19 = vmul.f32 %v2174_v5, %v2062_v55  ;;  %v2129_v15 = vadd.f32 %v2113_v43, %v4779_v52  ;;  %v5311_v29 = vld [vmem:[#allocation29_spill] sm:$0xff]  ;;  %s2844_s18 = scalar_lea.vmem %s4876_s14, 64  ;;  %p2851_p5 = scmp.lt.s32.totalorder %s4876_s14, %s2849_s7 }
 0x2ba   : > { %v2130_v0 = vadd.f32 %v2114_v59, %v4564_v35  ;;  %v2205_v31 = vmul.f32 %v2189_v44, %v2045_v23  ;;  %v1920_v14 = vadd.f32 %v1904_v11, %v1812_v7  ;;  %v1921_v2 = vadd.f32 %v5308_v54, %v1813_v4  ;;  %p2845_p10 = scmp.ne.s32.totalorder %s4876_s14, %s2844_s18  ;;  %p2852_p6 = scmp.lt.s32.totalorder %s2850_s0, %s2844_s18 }
 0x2bb   : > { %v2206_v41 = vmul.f32 %v2190_v19, %v2046_v33  ;;  %v2145_v34 = vmul.f32 0.7978846, %v2129_v15  ;;  %v2083_v28 = vmul.f32 0.044715, %v5310_v22  ;;  %v2084_v6 = vmul.f32 0.044715, %v5312_v26 }
 0x2bc   : > { %v2146_v53 = vmul.f32 0.7978846, %v2130_v0  ;;  %v2028_v50 = vadd.f32 %v2012_v42, %v1920_v14  ;;  %v2029_v8 = vadd.f32 %v5311_v29, %v1921_v2  ;;  %v3007_v47 = vmov 0   ;;  %p2846_p4 = pnand %p2845_p10, %p5315_p12  ;;  %p2853_p8 = por %p2852_p6, %p2851_p5 }
 0x2bd   : > { %v2217_v20 = vpack.c.bf16 %v2206_v41, %v2205_v31  ;;  %2772 = vtanh.f32 %v2145_v34  ;;  %v2099_v51 = vmul.f32 %v2083_v28, %v5310_v22  ;;  %2746 = vset.pattern.permute.xlu1 %v3007_v47  ;;  %2747 = vset.pattern.permute.xlu0 %v3007_v47  ;;  %v2100_v17 = vmul.f32 %v2084_v6, %v5312_v26  ;;  %v2221_v34 = vld [vmem:[%s5313_s4] sm:$0x3] }
 0x2be   : > { %2774 = vtanh.f32 %v2146_v53  ;;  %2225 = vperm.xlu1 %2746, %v2222_v63   ;;  %v2063_v13 = vmul.f32 0.5, %v4737_v49  ;;  %v2064_v1 = vmul.f32 0.5, %v4553_v45  ;;  %v2047_v21 = vadd.f32 %v4641_v48, %v4766_v3  ;;  %p2847_p11 = pneg %p2846_p4 }
 0x2bf   : > { %v2245_v58 = vsel %vm2228_vm8, %v2217_v20, 0  ;;  %v2115_v38 = vmul.f32 %v2099_v51, %v5310_v22  ;;  %v2116_v61 = vmul.f32 %v2100_v17, %v5312_v26  ;;  %v2048_v16 = vadd.f32 %v4641_v48, %v4768_v24 }
 0x2c0   : > { %v2769_v9 = vpop.eup %2768  ;;  %2596 = vmatpush3.bf16.xpose.msra.mxu1 %v2245_v58  ;;  %v2065_v23 = vmul.f32 0.5, %v4779_v52  ;;  %v2066_v43 = vmul.f32 0.5, %v4564_v35  ;;  %v2049_v24 = vadd.f32 %v4641_v48, %v4808_v40  ;;  %v2050_v62 = vadd.f32 %v4641_v48, %v4804_v32  ;;  %p2854_p1 = pnand %p2853_p8, %p2847_p11 }
 0x2c1   : > { %v2771_v30 = vpop.eup %2770  ;;  %v2175_v12 = vadd.f32 1.0, %v2769_v9  ;;  %2597 = vmatprep.subr.bf16.mxu1 %v5288_v36  ;;  %v2131_v46 = vadd.f32 %v2115_v38, %v5310_v22  ;;  %v2132_v10 = vadd.f32 %v2116_v61, %v5312_v26  ;;  %v2067_v33 = vmul.f32 0.5, %v5310_v22 }
 0x2c2   : > { %v2176_v60 = vadd.f32 1.0, %v2771_v30  ;;  %v2068_v40 = vmul.f32 0.5, %v5312_v26  ;;  %v2051_v32 = vadd.f32 %v4641_v48, %v2028_v50  ;;  %v2052_v31 = vadd.f32 %v4641_v48, %v2029_v8 }
 0x2c3   : > { %v2191_v39 = vmul.f32 %v2175_v12, %v2063_v13  ;;  %v2147_v18 = vmul.f32 0.7978846, %v2131_v46  ;;  %v2148_v25 = vmul.f32 0.7978846, %v2132_v10 }
 0x2c4   : > { %v2192_v49 = vmul.f32 %v2176_v60, %v2064_v1 }
 0x2c5   : > { %v2207_v27 = vmul.f32 %v2191_v39, %v2047_v21  ;;  %2776 = vtanh.f32 %v2147_v18 }
 0x2c6   : > { %v2208_v55 = vmul.f32 %v2192_v49, %v2048_v16  ;;  %2778 = vtanh.f32 %v2148_v25 }
 0x2c7   : > { %v2773_v45 = vpop.eup %2772 }
 0x2c8   : > { %v2218_v56 = vpack.c.bf16 %v2208_v55, %v2207_v27  ;;  %v2775_v7 = vpop.eup %2774  ;;  %v2177_v5 = vadd.f32 1.0, %v2773_v45 }
 0x2c9   : > { %v2178_v59 = vadd.f32 1.0, %v2775_v7 }
 0x2ca   : > { %v2248_v3 = vsel %vm2228_vm8, %v2218_v56, 0  ;;  %v2193_v44 = vmul.f32 %v2177_v5, %v2065_v23 }
 0x2cb   : > { %2598 = vmatpush3.bf16.xpose.msra.mxu1 %v2248_v3  ;;  %v2194_v4 = vmul.f32 %v2178_v59, %v2066_v43 }
 0x2cc   : > { %2599 = vmatprep.subr.bf16.mxu1 %v5288_v36  ;;  %v2209_v57 = vmul.f32 %v2193_v44, %v2049_v24 }
 0x2cd   : > { %v2210_v11 = vmul.f32 %v2194_v4, %v2050_v62 }
 0x2cf   : > { %v2777_v52 = vpop.eup %2776  ;;  %v2219_v37 = vpack.c.bf16 %v2210_v11, %v2209_v57 }
 0x2d0   : > { %v2779_v42 = vpop.eup %2778  ;;  %v2179_v35 = vadd.f32 1.0, %v2777_v52 }
 0x2d1   : > { %v2251_v19 = vsel %vm2228_vm8, %v2219_v37, 0  ;;  %v2180_v15 = vadd.f32 1.0, %v2779_v42 }
 0x2d2   : > { %v2195_v0 = vmul.f32 %v2179_v35, %v2067_v33 }
 0x2d3   : > { %2600 = vmatpush3.bf16.xpose.msra.mxu1 %v2251_v19  ;;  %v2196_v14 = vmul.f32 %v2180_v15, %v2068_v40 }
 0x2d4   : > { %2601 = vmatprep.subr.bf16.mxu1 %v5288_v36  ;;  %v2211_v54 = vmul.f32 %v2195_v0, %v2051_v32 }
 0x2d5   : > { %v2212_v2 = vmul.f32 %v2196_v14, %v2052_v31 }
 0x2d7   : > { %v2220_v63 = vpack.c.bf16 %v2212_v2, %v2211_v54 }
 0x2d9   : > { %v2254_v41 = vsel %vm2228_vm8, %v2220_v63, 0 }
 0x2db   : > { %2602 = vmatpush3.bf16.xpose.msra.mxu1 %v2254_v41 }
 0x2e2   : > { %2604 = vmatmul.mubr.msk.bf16.vlgmr.msra.gmra.mrb[16].mxu1 %vm2228_vm8, %v2221_v34 }
 0x33d   : > { %v2226_v36 = vpop.permute.xlu1 %2225 }
 0x3b5   : > { %v2290_v48 = vpop.f32.mrb[16].mxu1 }
 0x3b6   : > { %v2291_v53 = vadd.f32 %v2290_v48, %v2226_v36  ;;  %v2605_v22 = vpop.f32.mrb[17].mxu1 }
 0x3b7   : > { %v2293_v28 = vpop.f32.mrb[18].mxu1 }
 0x3b8   : > { %2296 = vst [vmem:[%s559_s5] sm:$0xf] %v2291_v53  ;;  %v2606_v50 = vpop.f32.mrb[19].mxu1 }
 0x3b9   : > { %2857 = shalt.err (!%p2854_p1)
}
 0x3ba   : > { %s2858_s2 = scalar_lea.hbm %s4874_s10, 64  ;;  %s2862_s8 = scalar_lea.hbm %s5314_s3, 256 }
 0x3bb   : > { %p2859_p2 = scmp.ne.s32.totalorder %s4874_s10, %s2858_s2  ;;  %p2863_p13 = scmp.lt.u32.totalorder %s4874_s10, %s5314_s3 }
 0x3bc   : > { %p2864_p0 = scmp.lt.u32.totalorder %s2862_s8, %s2858_s2  ;;  %p2866_p10 = scmp.lt.u32.totalorder %s2858_s2, %s4874_s10 }
 0x3bd   : > { %p2860_p9 = pnand %p2859_p2, %p5315_p12 }
 0x3be   : > { %p2865_p3 = por %p2864_p0, %p2863_p13 }
 0x3bf   : > { %p2861_p7 = pneg %p2860_p9 }
 0x3c0   : > { %p2867_p4 = por %p2866_p10, %p2865_p3 }
 0x3c2   : > { %p2868_p11 = pnand %p2867_p4, %p2861_p7 }
 0x3c4   : > { %2871 = shalt.err (!%p2868_p11)
}
 0x3c5   : > { %2613 = dma.vmem_to_hbm [thread:$0]  (%p5315_p12), %s4876_s14, 64, %s4874_s10, %s2298_s17  }
 0x3c6 PF: > { %p2627_p5 = scmp.ge.s32.totalorder %s2998_s21, 2  ;;  %s2325_s9 = sand.u32 1, %s2946_s25  }
 0x3c7   : > { %p5316_p6 = scmp.ne.s32.totalorder %s5047_s11, 0  ;;  %s2326_s5 = scalar_lea.sflag [#allocation4], %s2325_s9 }
 0x3c9   : > { %p2623_p8 = pnand %p2627_p5, %p5316_p6 }
 0x3cb   : > { %2937 = dma.done.wait (!%p2623_p8), %s2326_s5, 64  }
 0x3cc   : > { %2939 = vsyncadd (!%p2623_p8), %s2326_s5, 4294967232  ;;  %s32_s21 = sadd.s32 1, %s2998_s21   ;;  %s5318_s24 = sld [smem:[#allocation16_spill]] }
 0x3cd   : > { %p4904_p1 = scmp.ge.s32.totalorder %s32_s21, 6   ;;  %s5319_s10 = sld [smem:[#allocation11_spill]] }
 0x3ce   : > { %s5320_s16 = sld [smem:[#allocation15_spill]]  ;;  %s5321_s17 = sld [smem:[#allocation12_spill]] }
 0x3cf   : > { %s5322_s11 = sld [smem:[#allocation13_spill]]  ;;  %s5323_s7 = sld [smem:[#allocation14_spill]] }
 0x3d0   : > { %s5325_s25 = smov %s2950_s26  ;;  %s5326_s26 = smov %s2954_s27 }
 0x3d1   : > { %s5328_s28 = smov %s2962_s29  ;;  %s5329_s29 = smov %s2966_s30 }
 0x3d2   : > { %s5327_s27 = smov %s5318_s24  ;;  %s5330_s30 = smov %s3280_s19 }
 0x3d3   : > { %s5331_s14 = smov %s2974_s15  ;;  %s5332_s15 = smov %s5319_s10 }
 0x3d4   : > { %s5333_s18 = smov %s2994_s20  ;;  %31 = sbr.rel (!%p4904_p1) target bundleno = 27 (0x1b), region = 133 }
 0x3d5   : > { %s5334_s19 = smov %s5322_s11  ;;  %s5335_s20 = smov %s5323_s7 }
 0x3db   :  { %2331 = vsyncpa [#allocation3], 1 }
 0x3dc   :  { %2333 = vsyncpa [#allocation3 + $0x1], 1 }
 0x3dd   :  { %2334 = vsyncpa [#allocation6], 1 }
 0x3de   :  { %2336 = vsyncpa [#allocation6 + $0x1], 1 }
 0x3df   :  { %2337 = vsyncpa [#allocation4], 1 }
 0x3e0   :  { %2339 = vsyncpa [#allocation4 + $0x1], 1 }

</bundles_post_ra>
